<compile_context>
chip_gen: v7x
topology: tpu7x:2x2x1
jax: 0.10.0
libtpu: 0.0.40
codegen_flags: <defaults>
</compile_context>

<pallas_src>
import jax
import jax.numpy as jnp
import numpy as np
from jax import lax
from jax.experimental import pallas as pl
from jax.experimental.pallas import tpu as pltpu


def _default_block_b(batch, n_q, target_rows=256):
    """Largest divisor of `batch` with block_b*n_q ~ target_rows while keeping
    >= 2 grid steps when batch >= 2 (v7x has two TensorCores)."""
    cap = max(1, target_rows // max(n_q, 1))
    if batch >= 2:
        cap = min(cap, max(1, batch // 2))
    best = 1
    for d in range(1, batch + 1):
        if batch % d == 0 and d <= cap:
            best = d
    return best


def _make_attention_kernel(*, block_b, n_q, m_kv, num_heads, head_dim,
                           fuse_kv, approx_recip, compute_dtype):
    Bt, N, M, H, hd = block_b, n_q, m_kv, num_heads, head_dim
    C = H * hd
    cd = compute_dtype

    def kernel(*args):
        if fuse_kv:
            (q_ref, kv_ref, wqt_ref, wkvt_ref, wpt_ref, bp_ref,
             o_ref, qp_s, kp_s, vp_s, x_s) = args
        else:
            (q_ref, k_ref, v_ref, wqt_ref, wkt_ref, wvt_ref, wpt_ref, bp_ref,
             o_ref, qp_s, kp_s, vp_s, x_s) = args

        # ---- 1) Fused full-width projections over all Bt batch elements.
        # (Bt, rows, C) -> (Bt*rows, C) is a free leading-dim collapse; the
        # softmax scale is already folded into Wq.T on the host; inputs are
        # cast to the MXU compute dtype in-kernel.
        q2d = q_ref[...].reshape(Bt * N, C).astype(cd)
        qp_s[...] = jnp.dot(q2d, wqt_ref[...],
                            preferred_element_type=jnp.float32).astype(cd)

        if fuse_kv:
            # k and v share one input tensor: one (Bt*M, C) @ (C, 2C) matmul
            # produces both projections (half the latency-bound MXU passes).
            kv2d = kv_ref[...].reshape(Bt * M, C).astype(cd)
            kvp = jnp.dot(kv2d, wkvt_ref[...],
                          preferred_element_type=jnp.float32)
            kp_s[...] = kvp[:, :C].astype(cd)
            vp_s[...] = kvp[:, C:].astype(cd)
        else:
            k2d = k_ref[...].reshape(Bt * M, C).astype(cd)
            v2d = v_ref[...].reshape(Bt * M, C).astype(cd)
            kp_s[...] = jnp.dot(k2d, wkt_ref[...],
                                preferred_element_type=jnp.float32).astype(cd)
            vp_s[...] = jnp.dot(v2d, wvt_ref[...],
                                preferred_element_type=jnp.float32).astype(cd)

        # ---- 2) Attention, one batch element at a time.  fori_loop bounds
        # live ranges to a single batch element; each head's output is stored
        # straight into the x scratch at its lane offset (no head_outs list,
        # no lane-axis concatenate).
        def per_batch(b, carry):
            q_start = pl.multiple_of(b * N, N)
            kv_start = pl.multiple_of(b * M, M)
            qb = qp_s[pl.ds(q_start, N), :]     # (N, C)
            kb = kp_s[pl.ds(kv_start, M), :]    # (M, C)
            vb = vp_s[pl.ds(kv_start, M), :]    # (M, C)
            for h in range(H):
                sl = slice(h * hd, (h + 1) * hd)
                qh, kh, vh = qb[:, sl], kb[:, sl], vb[:, sl]
                s = lax.dot_general(qh, kh, (((1,), (1,)), ((), ())),
                                    preferred_element_type=jnp.float32)  # (N, M)
                mx = jnp.max(s, axis=-1, keepdims=True)
                p = jnp.exp(s - mx)                              # f32, unnormalized
                l = jnp.sum(p, axis=-1, keepdims=True)           # (N, 1) f32
                oh = jnp.dot(p.astype(cd), vh,
                             preferred_element_type=jnp.float32)  # (N, hd) f32
                # Deferred softmax normalization: multiply the small (N, hd)
                # output; reciprocal runs on the otherwise-idle EUP slot.
                oh = oh * pl.reciprocal(l, approx=approx_recip)
                x_s[pl.ds(q_start, N), sl] = oh.astype(cd)
            return carry

        lax.fori_loop(0, Bt, per_batch, 0, unroll=True)

        # ---- 3) Single fused output projection + bias; o_ref written once.
        out = jnp.dot(x_s[...], wpt_ref[...],
                      preferred_element_type=jnp.float32) + bp_ref[...]
        o_ref[...] = out.reshape(Bt, N, C).astype(o_ref.dtype)

    return kernel


def prepare_attention_params(wq, wk, wv, wp, bp, *, num_heads,
                             compute_dtype=jnp.bfloat16, fuse_kv=False):
    """One-time host-side weight prep (keep out of the per-call hot path):
    transpose so the kernel does x @ W.T with lane-dense outputs, fold the
    softmax scale into Wq, optionally stack [Wk.T | Wv.T] for the fused KV
    projection, cast to the MXU compute dtype."""
    dim = wq.shape[0]
    assert dim % num_heads == 0
    scale = float(dim // num_heads) ** -0.5
    wqt = (wq * scale).T.astype(compute_dtype)            # (C, C), scale folded
    wpt = wp.T.astype(compute_dtype)                      # (C, C)
    bp2 = bp.reshape(1, dim).astype(jnp.float32)          # (1, C)
    if fuse_kv:
        wkvt = jnp.concatenate([wk.T, wv.T], axis=1).astype(compute_dtype)  # (C, 2C)
        return (wqt, wkvt, wpt, bp2)
    return (wqt, wk.T.astype(compute_dtype), wv.T.astype(compute_dtype), wpt, bp2)


def attention_pallas(q, k, v, params, *, num_heads, block_b=None,
                     compute_dtype=jnp.bfloat16, fuse_kv=None,
                     approx_recip=True, out_dtype=None,
                     vmem_limit_bytes=32 * 1024 * 1024):
    B, N, C = q.shape
    assert k.shape == v.shape and k.shape[0] == B and k.shape[2] == C
    M = k.shape[1]
    assert C % num_heads == 0
    hd = C // num_heads

    if fuse_kv is None:
        fuse_kv = k is v
    if block_b is None:
        block_b = _default_block_b(B, N)
    assert B % block_b == 0, (B, block_b)
    if out_dtype is None:
        out_dtype = q.dtype
    assert jnp.dtype(params[0].dtype) == jnp.dtype(compute_dtype)

    kernel = _make_attention_kernel(
        block_b=block_b, n_q=N, m_kv=M, num_heads=num_heads, head_dim=hd,
        fuse_kv=fuse_kv, approx_recip=approx_recip, compute_dtype=compute_dtype)

    q_spec = pl.BlockSpec((block_b, N, C), lambda b: (b, 0, 0))
    kv_spec = pl.BlockSpec((block_b, M, C), lambda b: (b, 0, 0))
    # Weights/bias: full blocks, constant index_map -> DMA'd from HBM once.
    wspec = lambda shape: pl.BlockSpec(shape, lambda b: (0, 0))

    if fuse_kv:
        wqt, wkvt, wpt, bp2 = params
        operands = (q, k, wqt, wkvt, wpt, bp2)
        in_specs = [q_spec, kv_spec,
                    wspec((C, C)), wspec((C, 2 * C)), wspec((C, C)),
                    wspec((1, C))]
    else:
        wqt, wkt, wvt, wpt, bp2 = params
        operands = (q, k, v, wqt, wkt, wvt, wpt, bp2)
        in_specs = [q_spec, kv_spec, kv_spec,
                    wspec((C, C)), wspec((C, C)), wspec((C, C)), wspec((C, C)),
                    wspec((1, C))]

    return pl.pallas_call(
        kernel,
        out_shape=jax.ShapeDtypeStruct((B, N, C), out_dtype),
        grid_spec=pltpu.PrefetchScalarGridSpec(
            num_scalar_prefetch=0,
            grid=(B // block_b,),
            in_specs=in_specs,
            out_specs=pl.BlockSpec((block_b, N, C), lambda b: (b, 0, 0)),
            scratch_shapes=[
                pltpu.VMEM((block_b * N, C), compute_dtype),  # projected q
                pltpu.VMEM((block_b * M, C), compute_dtype),  # projected k
                pltpu.VMEM((block_b * M, C), compute_dtype),  # projected v
                pltpu.VMEM((block_b * N, C), compute_dtype),  # attn out (pre-proj)
            ],
        ),
        compiler_params=pltpu.CompilerParams(
            dimension_semantics=("parallel",),
            vmem_limit_bytes=vmem_limit_bytes,
        ),
    )(*operands)


def attention_reference(q, k, v, wq, wk, wv, wp, bp, *, num_heads):
    """Plain-JAX transcription of the PyTorch forward, for verification."""
    B, N, C = q.shape
    _, M, _ = k.shape
    hd = C // num_heads
    scale = float(hd) ** -0.5
    qp = (q @ wq.T).reshape(B, N, num_heads, hd)
    kp = (k @ wk.T).reshape(B, M, num_heads, hd)
    vp = (v @ wv.T).reshape(B, M, num_heads, hd)
    attn = jnp.einsum('bnkc,bmkc->bknm', qp, kp) * scale
    attn = jax.nn.softmax(attn, axis=-1)
    x = jnp.einsum('bknm,bmkc->bnkc', attn, vp).reshape(B, N, C)
    return x @ wp.T + bp


if __name__ == "__main__":
    # Small, TPU-tile-friendly shapes consistent with the module.
    B, N, M, C, H = 8, 8, 16, 64, 8   # head_dim = 8

    key = jax.random.PRNGKey(0)
    kq, kk, kv_, kwq, kwk, kwv, kwp, kbp = jax.random.split(key, 8)

    q = jax.random.normal(kq, (B, N, C), dtype=jnp.float32)
    k = jax.random.normal(kk, (B, M, C), dtype=jnp.float32)
    v = jax.random.normal(kv_, (B, M, C), dtype=jnp.float32)

    # Deterministic synthetic parameters (nn.Linear(dim, dim) weights + proj bias).
    wq = jax.random.normal(kwq, (C, C), dtype=jnp.float32) * 0.05
    wk = jax.random.normal(kwk, (C, C), dtype=jnp.float32) * 0.05
    wv = jax.random.normal(kwv, (C, C), dtype=jnp.float32) * 0.05
    wp = jax.random.normal(kwp, (C, C), dtype=jnp.float32) * 0.05
    bp = jax.random.normal(kbp, (C,), dtype=jnp.float32) * 0.05

    # 1) General path (distinct k, v), f32 compute, exact reciprocal: tight check.
    ref = attention_reference(q, k, v, wq, wk, wv, wp, bp, num_heads=H)
    params_f32 = prepare_attention_params(wq, wk, wv, wp, bp, num_heads=H,
                                          compute_dtype=jnp.float32,
                                          fuse_kv=False)
    out = attention_pallas(q, k, v, params_f32, num_heads=H,
                           compute_dtype=jnp.float32, fuse_kv=False,
                           approx_recip=False)
    out = jax.block_until_ready(out)
    np.testing.assert_allclose(np.asarray(out), np.asarray(ref),
                               rtol=1e-5, atol=1e-5)

    # 2) Fused-KV path (k is v: the usual cross-attention case), bf16 MXU
    #    operands + f32 accumulation + approx reciprocal (recommended
    #    production config on v5e/v6e/v7x): loose check.
    kvt = k
    ref_kv = attention_reference(q, kvt, kvt, wq, wk, wv, wp, bp, num_heads=H)
    params_bf16 = prepare_attention_params(wq, wk, wv, wp, bp, num_heads=H,
                                           compute_dtype=jnp.bfloat16,
                                           fuse_kv=True)
    out_kv = attention_pallas(q, kvt, kvt, params_bf16, num_heads=H, block_b=4,
                              compute_dtype=jnp.bfloat16, fuse_kv=True,
                              approx_recip=True)
    out_kv = jax.block_until_ready(out_kv)
    np.testing.assert_allclose(np.asarray(out_kv), np.asarray(ref_kv),
                               rtol=3e-2, atol=3e-2)

    print("KERNEL_OK")
</pallas_src>

<mosaic_0001>
module attributes {stable_mosaic.version = 11 : i64} {
  func.func @kernel(%arg0: i32, %arg1: memref<4x8x64xf32, #tpu.memory_space<vmem>>, %arg2: memref<4x16x64xf32, #tpu.memory_space<vmem>>, %arg3: memref<4x16x64xf32, #tpu.memory_space<vmem>>, %arg4: memref<64x64xf32, #tpu.memory_space<vmem>>, %arg5: memref<64x64xf32, #tpu.memory_space<vmem>>, %arg6: memref<64x64xf32, #tpu.memory_space<vmem>>, %arg7: memref<64x64xf32, #tpu.memory_space<vmem>>, %arg8: memref<1x64xf32, #tpu.memory_space<vmem>>, %arg9: memref<4x8x64xf32, #tpu.memory_space<vmem>>, %arg10: memref<32x64xf32, #tpu.memory_space<vmem>>, %arg11: memref<64x64xf32, #tpu.memory_space<vmem>>, %arg12: memref<64x64xf32, #tpu.memory_space<vmem>>, %arg13: memref<32x64xf32, #tpu.memory_space<vmem>>) attributes {dimension_semantics = [#tpu.dimension_semantics<parallel>], iteration_bounds = array<i64: 2>, scalar_prefetch = 0 : i64, scratch_operands = 4 : i64, tpu.core_type = #tpu.core_type<tc>, window_params = [{transform_indices = @transform_0, window_bounds = array<i64: 4, 8, 64>}, {transform_indices = @transform_1, window_bounds = array<i64: 4, 16, 64>}, {transform_indices = @transform_2, window_bounds = array<i64: 4, 16, 64>}, {pipeline_mode = #tpu.pipeline_mode<synchronous>, transform_indices = @transform_3, window_bounds = array<i64: 64, 64>}, {pipeline_mode = #tpu.pipeline_mode<synchronous>, transform_indices = @transform_4, window_bounds = array<i64: 64, 64>}, {pipeline_mode = #tpu.pipeline_mode<synchronous>, transform_indices = @transform_5, window_bounds = array<i64: 64, 64>}, {pipeline_mode = #tpu.pipeline_mode<synchronous>, transform_indices = @transform_6, window_bounds = array<i64: 64, 64>}, {pipeline_mode = #tpu.pipeline_mode<synchronous>, transform_indices = @transform_7, window_bounds = array<i64: 1, 64>}, {transform_indices = @transform_8, window_bounds = array<i64: 4, 8, 64>}]} {
    %c0 = arith.constant 0 : index
    %c0_0 = arith.constant 0 : index
    %c0_1 = arith.constant 0 : index
    %0 = vector.load %arg1[%c0, %c0_0, %c0_1] : memref<4x8x64xf32, #tpu.memory_space<vmem>>, vector<4x8x64xf32>
    %1 = vector.shape_cast %0 : vector<4x8x64xf32> to vector<32x64xf32>
    %c0_2 = arith.constant 0 : index
    %c0_3 = arith.constant 0 : index
    %2 = vector.load %arg4[%c0_2, %c0_3] : memref<64x64xf32, #tpu.memory_space<vmem>>, vector<64x64xf32>
    %cst = arith.constant dense<0.000000e+00> : vector<32x64xf32>
    %3 = tpu.matmul %1, %2, %cst {dimension_numbers = #tpu.dot_dimension_numbers<[1], [0], [0], [1], [0, 0, 1, 1], [], []>} : vector<32x64xf32>, vector<64x64xf32>, vector<32x64xf32> -> vector<32x64xf32>
    %c0_4 = arith.constant 0 : index
    %c0_5 = arith.constant 0 : index
    %4 = vector.load %arg10[%c0_4, %c0_5] : memref<32x64xf32, #tpu.memory_space<vmem>>, vector<32x64xf32>
    tpu.vector_store %arg10[%c0_4, %c0_5], %3 {strides = array<i32>} : memref<32x64xf32, #tpu.memory_space<vmem>>, vector<32x64xf32>,
    %c0_6 = arith.constant 0 : index
    %c0_7 = arith.constant 0 : index
    %c0_8 = arith.constant 0 : index
    %5 = vector.load %arg2[%c0_6, %c0_7, %c0_8] : memref<4x16x64xf32, #tpu.memory_space<vmem>>, vector<4x16x64xf32>
    %6 = vector.shape_cast %5 : vector<4x16x64xf32> to vector<64x64xf32>
    %c0_9 = arith.constant 0 : index
    %c0_10 = arith.constant 0 : index
    %c0_11 = arith.constant 0 : index
    %7 = vector.load %arg3[%c0_9, %c0_10, %c0_11] : memref<4x16x64xf32, #tpu.memory_space<vmem>>, vector<4x16x64xf32>
    %8 = vector.shape_cast %7 : vector<4x16x64xf32> to vector<64x64xf32>
    %c0_12 = arith.constant 0 : index
    %c0_13 = arith.constant 0 : index
    %9 = vector.load %arg5[%c0_12, %c0_13] : memref<64x64xf32, #tpu.memory_space<vmem>>, vector<64x64xf32>
    %cst_14 = arith.constant dense<0.000000e+00> : vector<64x64xf32>
    %10 = tpu.matmul %6, %9, %cst_14 {dimension_numbers = #tpu.dot_dimension_numbers<[1], [0], [0], [1], [0, 0, 1, 1], [], []>} : vector<64x64xf32>, vector<64x64xf32>, vector<64x64xf32> -> vector<64x64xf32>
    %c0_15 = arith.constant 0 : index
    %c0_16 = arith.constant 0 : index
    %11 = vector.load %arg11[%c0_15, %c0_16] : memref<64x64xf32, #tpu.memory_space<vmem>>, vector<64x64xf32>
    tpu.vector_store %arg11[%c0_15, %c0_16], %10 {strides = array<i32>} : memref<64x64xf32, #tpu.memory_space<vmem>>, vector<64x64xf32>,
    %c0_17 = arith.constant 0 : index
    %c0_18 = arith.constant 0 : index
    %12 = vector.load %arg6[%c0_17, %c0_18] : memref<64x64xf32, #tpu.memory_space<vmem>>, vector<64x64xf32>
    %cst_19 = arith.constant dense<0.000000e+00> : vector<64x64xf32>
    %13 = tpu.matmul %8, %12, %cst_19 {dimension_numbers = #tpu.dot_dimension_numbers<[1], [0], [0], [1], [0, 0, 1, 1], [], []>} : vector<64x64xf32>, vector<64x64xf32>, vector<64x64xf32> -> vector<64x64xf32>
    %c0_20 = arith.constant 0 : index
    %c0_21 = arith.constant 0 : index
    %14 = vector.load %arg12[%c0_20, %c0_21] : memref<64x64xf32, #tpu.memory_space<vmem>>, vector<64x64xf32>
    tpu.vector_store %arg12[%c0_20, %c0_21], %13 {strides = array<i32>} : memref<64x64xf32, #tpu.memory_space<vmem>>, vector<64x64xf32>,
    %c0_i32 = arith.constant 0 : i32
    %c8_i32 = arith.constant 8 : i32
    %15 = arith.muli %c0_i32, %c8_i32 : i32
    %16 = tpu.assume_multiple %15, 8 : i32
    %c16_i32 = arith.constant 16 : i32
    %17 = arith.muli %c0_i32, %c16_i32 : i32
    %18 = tpu.assume_multiple %17, 16 : i32
    %19 = arith.index_cast %16 : i32 to index
    %c0_22 = arith.constant 0 : index
    %20 = vector.load %arg10[%19, %c0_22] : memref<32x64xf32, #tpu.memory_space<vmem>>, vector<8x64xf32>
    %21 = arith.index_cast %18 : i32 to index
    %c0_23 = arith.constant 0 : index
    %22 = vector.load %arg11[%21, %c0_23] : memref<64x64xf32, #tpu.memory_space<vmem>>, vector<16x64xf32>
    %23 = arith.index_cast %18 : i32 to index
    %c0_24 = arith.constant 0 : index
    %24 = vector.load %arg12[%23, %c0_24] : memref<64x64xf32, #tpu.memory_space<vmem>>, vector<16x64xf32>
    %25 = vector.extract_strided_slice %20 {offsets = [0, 0], sizes = [8, 8], strides = [1, 1]} : vector<8x64xf32> to vector<8x8xf32>
    %26 = vector.extract_strided_slice %22 {offsets = [0, 0], sizes = [16, 8], strides = [1, 1]} : vector<16x64xf32> to vector<16x8xf32>
    %27 = vector.extract_strided_slice %24 {offsets = [0, 0], sizes = [16, 8], strides = [1, 1]} : vector<16x64xf32> to vector<16x8xf32>
    %cst_25 = arith.constant dense<0.000000e+00> : vector<8x16xf32>
    %28 = tpu.matmul %25, %26, %cst_25 {dimension_numbers = #tpu.dot_dimension_numbers<[1], [1], [0], [0], [0, 0, 1, 0], [], []>} : vector<8x8xf32>, vector<16x8xf32>, vector<8x16xf32> -> vector<8x16xf32>
    %cst_26 = arith.constant dense<0xFF800000> : vector<8xf32>
    %29 = vector.multi_reduction <maximumf>, %28, %cst_26 [1] : vector<8x16xf32> to vector<8xf32>
    %30 = vector.shape_cast %29 : vector<8xf32> to vector<8x1xf32>
    %31 = vector.broadcast %30 : vector<8x1xf32> to vector<8x16xf32>
    %32 = arith.subf %28, %31 : vector<8x16xf32>
    %33 = math.exp %32 : vector<8x16xf32>
    %cst_27 = arith.constant dense<0.000000e+00> : vector<8xf32>
    %34 = vector.multi_reduction <add>, %33, %cst_27 [1] : vector<8x16xf32> to vector<8xf32>
    %35 = vector.shape_cast %34 : vector<8xf32> to vector<8x1xf32>
    %cst_28 = arith.constant dense<0.000000e+00> : vector<8x8xf32>
    %36 = tpu.matmul %33, %27, %cst_28 {dimension_numbers = #tpu.dot_dimension_numbers<[1], [0], [0], [1], [0, 0, 1, 1], [], []>} : vector<8x16xf32>, vector<16x8xf32>, vector<8x8xf32> -> vector<8x8xf32>
    %37 = tpu.reciprocal %35 : vector<8x1xf32> -> vector<8x1xf32>
    %38 = vector.broadcast %37 : vector<8x1xf32> to vector<8x8xf32>
    %39 = arith.mulf %36, %38 : vector<8x8xf32>
    %40 = arith.index_cast %16 : i32 to index
    %c0_29 = arith.constant 0 : index
    %41 = vector.load %arg13[%40, %c0_29] : memref<32x64xf32, #tpu.memory_space<vmem>>, vector<8x8xf32>
    tpu.vector_store %arg13[%40, %c0_29], %39 {strides = array<i32>} : memref<32x64xf32, #tpu.memory_space<vmem>>, vector<8x8xf32>,
    %42 = vector.extract_strided_slice %20 {offsets = [0, 8], sizes = [8, 8], strides = [1, 1]} : vector<8x64xf32> to vector<8x8xf32>
    %43 = vector.extract_strided_slice %22 {offsets = [0, 8], sizes = [16, 8], strides = [1, 1]} : vector<16x64xf32> to vector<16x8xf32>
    %44 = vector.extract_strided_slice %24 {offsets = [0, 8], sizes = [16, 8], strides = [1, 1]} : vector<16x64xf32> to vector<16x8xf32>
    %cst_30 = arith.constant dense<0.000000e+00> : vector<8x16xf32>
    %45 = tpu.matmul %42, %43, %cst_30 {dimension_numbers = #tpu.dot_dimension_numbers<[1], [1], [0], [0], [0, 0, 1, 0], [], []>} : vector<8x8xf32>, vector<16x8xf32>, vector<8x16xf32> -> vector<8x16xf32>
    %cst_31 = arith.constant dense<0xFF800000> : vector<8xf32>
    %46 = vector.multi_reduction <maximumf>, %45, %cst_31 [1] : vector<8x16xf32> to vector<8xf32>
    %47 = vector.shape_cast %46 : vector<8xf32> to vector<8x1xf32>
    %48 = vector.broadcast %47 : vector<8x1xf32> to vector<8x16xf32>
    %49 = arith.subf %45, %48 : vector<8x16xf32>
    %50 = math.exp %49 : vector<8x16xf32>
    %cst_32 = arith.constant dense<0.000000e+00> : vector<8xf32>
    %51 = vector.multi_reduction <add>, %50, %cst_32 [1] : vector<8x16xf32> to vector<8xf32>
    %52 = vector.shape_cast %51 : vector<8xf32> to vector<8x1xf32>
    %cst_33 = arith.constant dense<0.000000e+00> : vector<8x8xf32>
    %53 = tpu.matmul %50, %44, %cst_33 {dimension_numbers = #tpu.dot_dimension_numbers<[1], [0], [0], [1], [0, 0, 1, 1], [], []>} : vector<8x16xf32>, vector<16x8xf32>, vector<8x8xf32> -> vector<8x8xf32>
    %54 = tpu.reciprocal %52 : vector<8x1xf32> -> vector<8x1xf32>
    %55 = vector.broadcast %54 : vector<8x1xf32> to vector<8x8xf32>
    %56 = arith.mulf %53, %55 : vector<8x8xf32>
    %57 = arith.index_cast %16 : i32 to index
    %c8 = arith.constant 8 : index
    %58 = vector.load %arg13[%57, %c8] : memref<32x64xf32, #tpu.memory_space<vmem>>, vector<8x8xf32>
    tpu.vector_store %arg13[%57, %c8], %56 {strides = array<i32>} : memref<32x64xf32, #tpu.memory_space<vmem>>, vector<8x8xf32>,
    %59 = vector.extract_strided_slice %20 {offsets = [0, 16], sizes = [8, 8], strides = [1, 1]} : vector<8x64xf32> to vector<8x8xf32>
    %60 = vector.extract_strided_slice %22 {offsets = [0, 16], sizes = [16, 8], strides = [1, 1]} : vector<16x64xf32> to vector<16x8xf32>
    %61 = vector.extract_strided_slice %24 {offsets = [0, 16], sizes = [16, 8], strides = [1, 1]} : vector<16x64xf32> to vector<16x8xf32>
    %cst_34 = arith.constant dense<0.000000e+00> : vector<8x16xf32>
    %62 = tpu.matmul %59, %60, %cst_34 {dimension_numbers = #tpu.dot_dimension_numbers<[1], [1], [0], [0], [0, 0, 1, 0], [], []>} : vector<8x8xf32>, vector<16x8xf32>, vector<8x16xf32> -> vector<8x16xf32>
    %cst_35 = arith.constant dense<0xFF800000> : vector<8xf32>
    %63 = vector.multi_reduction <maximumf>, %62, %cst_35 [1] : vector<8x16xf32> to vector<8xf32>
    %64 = vector.shape_cast %63 : vector<8xf32> to vector<8x1xf32>
    %65 = vector.broadcast %64 : vector<8x1xf32> to vector<8x16xf32>
    %66 = arith.subf %62, %65 : vector<8x16xf32>
    %67 = math.exp %66 : vector<8x16xf32>
    %cst_36 = arith.constant dense<0.000000e+00> : vector<8xf32>
    %68 = vector.multi_reduction <add>, %67, %cst_36 [1] : vector<8x16xf32> to vector<8xf32>
    %69 = vector.shape_cast %68 : vector<8xf32> to vector<8x1xf32>
    %cst_37 = arith.constant dense<0.000000e+00> : vector<8x8xf32>
    %70 = tpu.matmul %67, %61, %cst_37 {dimension_numbers = #tpu.dot_dimension_numbers<[1], [0], [0], [1], [0, 0, 1, 1], [], []>} : vector<8x16xf32>, vector<16x8xf32>, vector<8x8xf32> -> vector<8x8xf32>
    %71 = tpu.reciprocal %69 : vector<8x1xf32> -> vector<8x1xf32>
    %72 = vector.broadcast %71 : vector<8x1xf32> to vector<8x8xf32>
    %73 = arith.mulf %70, %72 : vector<8x8xf32>
    %74 = arith.index_cast %16 : i32 to index
    %c16 = arith.constant 16 : index
    %75 = vector.load %arg13[%74, %c16] : memref<32x64xf32, #tpu.memory_space<vmem>>, vector<8x8xf32>
    tpu.vector_store %arg13[%74, %c16], %73 {strides = array<i32>} : memref<32x64xf32, #tpu.memory_space<vmem>>, vector<8x8xf32>,
    %76 = vector.extract_strided_slice %20 {offsets = [0, 24], sizes = [8, 8], strides = [1, 1]} : vector<8x64xf32> to vector<8x8xf32>
    %77 = vector.extract_strided_slice %22 {offsets = [0, 24], sizes = [16, 8], strides = [1, 1]} : vector<16x64xf32> to vector<16x8xf32>
    %78 = vector.extract_strided_slice %24 {offsets = [0, 24], sizes = [16, 8], strides = [1, 1]} : vector<16x64xf32> to vector<16x8xf32>
    %cst_38 = arith.constant dense<0.000000e+00> : vector<8x16xf32>
    %79 = tpu.matmul %76, %77, %cst_38 {dimension_numbers = #tpu.dot_dimension_numbers<[1], [1], [0], [0], [0, 0, 1, 0], [], []>} : vector<8x8xf32>, vector<16x8xf32>, vector<8x16xf32> -> vector<8x16xf32>
    %cst_39 = arith.constant dense<0xFF800000> : vector<8xf32>
    %80 = vector.multi_reduction <maximumf>, %79, %cst_39 [1] : vector<8x16xf32> to vector<8xf32>
    %81 = vector.shape_cast %80 : vector<8xf32> to vector<8x1xf32>
    %82 = vector.broadcast %81 : vector<8x1xf32> to vector<8x16xf32>
    %83 = arith.subf %79, %82 : vector<8x16xf32>
    %84 = math.exp %83 : vector<8x16xf32>
    %cst_40 = arith.constant dense<0.000000e+00> : vector<8xf32>
    %85 = vector.multi_reduction <add>, %84, %cst_40 [1] : vector<8x16xf32> to vector<8xf32>
    %86 = vector.shape_cast %85 : vector<8xf32> to vector<8x1xf32>
    %cst_41 = arith.constant dense<0.000000e+00> : vector<8x8xf32>
    %87 = tpu.matmul %84, %78, %cst_41 {dimension_numbers = #tpu.dot_dimension_numbers<[1], [0], [0], [1], [0, 0, 1, 1], [], []>} : vector<8x16xf32>, vector<16x8xf32>, vector<8x8xf32> -> vector<8x8xf32>
    %88 = tpu.reciprocal %86 : vector<8x1xf32> -> vector<8x1xf32>
    %89 = vector.broadcast %88 : vector<8x1xf32> to vector<8x8xf32>
    %90 = arith.mulf %87, %89 : vector<8x8xf32>
    %91 = arith.index_cast %16 : i32 to index
    %c24 = arith.constant 24 : index
    %92 = vector.load %arg13[%91, %c24] : memref<32x64xf32, #tpu.memory_space<vmem>>, vector<8x8xf32>
    tpu.vector_store %arg13[%91, %c24], %90 {strides = array<i32>} : memref<32x64xf32, #tpu.memory_space<vmem>>, vector<8x8xf32>,
    %93 = vector.extract_strided_slice %20 {offsets = [0, 32], sizes = [8, 8], strides = [1, 1]} : vector<8x64xf32> to vector<8x8xf32>
    %94 = vector.extract_strided_slice %22 {offsets = [0, 32], sizes = [16, 8], strides = [1, 1]} : vector<16x64xf32> to vector<16x8xf32>
    %95 = vector.extract_strided_slice %24 {offsets = [0, 32], sizes = [16, 8], strides = [1, 1]} : vector<16x64xf32> to vector<16x8xf32>
    %cst_42 = arith.constant dense<0.000000e+00> : vector<8x16xf32>
    %96 = tpu.matmul %93, %94, %cst_42 {dimension_numbers = #tpu.dot_dimension_numbers<[1], [1], [0], [0], [0, 0, 1, 0], [], []>} : vector<8x8xf32>, vector<16x8xf32>, vector<8x16xf32> -> vector<8x16xf32>
    %cst_43 = arith.constant dense<0xFF800000> : vector<8xf32>
    %97 = vector.multi_reduction <maximumf>, %96, %cst_43 [1] : vector<8x16xf32> to vector<8xf32>
    %98 = vector.shape_cast %97 : vector<8xf32> to vector<8x1xf32>
    %99 = vector.broadcast %98 : vector<8x1xf32> to vector<8x16xf32>
    %100 = arith.subf %96, %99 : vector<8x16xf32>
    %101 = math.exp %100 : vector<8x16xf32>
    %cst_44 = arith.constant dense<0.000000e+00> : vector<8xf32>
    %102 = vector.multi_reduction <add>, %101, %cst_44 [1] : vector<8x16xf32> to vector<8xf32>
    %103 = vector.shape_cast %102 : vector<8xf32> to vector<8x1xf32>
    %cst_45 = arith.constant dense<0.000000e+00> : vector<8x8xf32>
    %104 = tpu.matmul %101, %95, %cst_45 {dimension_numbers = #tpu.dot_dimension_numbers<[1], [0], [0], [1], [0, 0, 1, 1], [], []>} : vector<8x16xf32>, vector<16x8xf32>, vector<8x8xf32> -> vector<8x8xf32>
    %105 = tpu.reciprocal %103 : vector<8x1xf32> -> vector<8x1xf32>
    %106 = vector.broadcast %105 : vector<8x1xf32> to vector<8x8xf32>
    %107 = arith.mulf %104, %106 : vector<8x8xf32>
    %108 = arith.index_cast %16 : i32 to index
    %c32 = arith.constant 32 : index
    %109 = vector.load %arg13[%108, %c32] : memref<32x64xf32, #tpu.memory_space<vmem>>, vector<8x8xf32>
    tpu.vector_store %arg13[%108, %c32], %107 {strides = array<i32>} : memref<32x64xf32, #tpu.memory_space<vmem>>, vector<8x8xf32>,
    %110 = vector.extract_strided_slice %20 {offsets = [0, 40], sizes = [8, 8], strides = [1, 1]} : vector<8x64xf32> to vector<8x8xf32>
    %111 = vector.extract_strided_slice %22 {offsets = [0, 40], sizes = [16, 8], strides = [1, 1]} : vector<16x64xf32> to vector<16x8xf32>
    %112 = vector.extract_strided_slice %24 {offsets = [0, 40], sizes = [16, 8], strides = [1, 1]} : vector<16x64xf32> to vector<16x8xf32>
    %cst_46 = arith.constant dense<0.000000e+00> : vector<8x16xf32>
    %113 = tpu.matmul %110, %111, %cst_46 {dimension_numbers = #tpu.dot_dimension_numbers<[1], [1], [0], [0], [0, 0, 1, 0], [], []>} : vector<8x8xf32>, vector<16x8xf32>, vector<8x16xf32> -> vector<8x16xf32>
    %cst_47 = arith.constant dense<0xFF800000> : vector<8xf32>
    %114 = vector.multi_reduction <maximumf>, %113, %cst_47 [1] : vector<8x16xf32> to vector<8xf32>
    %115 = vector.shape_cast %114 : vector<8xf32> to vector<8x1xf32>
    %116 = vector.broadcast %115 : vector<8x1xf32> to vector<8x16xf32>
    %117 = arith.subf %113, %116 : vector<8x16xf32>
    %118 = math.exp %117 : vector<8x16xf32>
    %cst_48 = arith.constant dense<0.000000e+00> : vector<8xf32>
    %119 = vector.multi_reduction <add>, %118, %cst_48 [1] : vector<8x16xf32> to vector<8xf32>
    %120 = vector.shape_cast %119 : vector<8xf32> to vector<8x1xf32>
    %cst_49 = arith.constant dense<0.000000e+00> : vector<8x8xf32>
    %121 = tpu.matmul %118, %112, %cst_49 {dimension_numbers = #tpu.dot_dimension_numbers<[1], [0], [0], [1], [0, 0, 1, 1], [], []>} : vector<8x16xf32>, vector<16x8xf32>, vector<8x8xf32> -> vector<8x8xf32>
    %122 = tpu.reciprocal %120 : vector<8x1xf32> -> vector<8x1xf32>
    %123 = vector.broadcast %122 : vector<8x1xf32> to vector<8x8xf32>
    %124 = arith.mulf %121, %123 : vector<8x8xf32>
    %125 = arith.index_cast %16 : i32 to index
    %c40 = arith.constant 40 : index
    %126 = vector.load %arg13[%125, %c40] : memref<32x64xf32, #tpu.memory_space<vmem>>, vector<8x8xf32>
    tpu.vector_store %arg13[%125, %c40], %124 {strides = array<i32>} : memref<32x64xf32, #tpu.memory_space<vmem>>, vector<8x8xf32>,
    %127 = vector.extract_strided_slice %20 {offsets = [0, 48], sizes = [8, 8], strides = [1, 1]} : vector<8x64xf32> to vector<8x8xf32>
    %128 = vector.extract_strided_slice %22 {offsets = [0, 48], sizes = [16, 8], strides = [1, 1]} : vector<16x64xf32> to vector<16x8xf32>
    %129 = vector.extract_strided_slice %24 {offsets = [0, 48], sizes = [16, 8], strides = [1, 1]} : vector<16x64xf32> to vector<16x8xf32>
    %cst_50 = arith.constant dense<0.000000e+00> : vector<8x16xf32>
    %130 = tpu.matmul %127, %128, %cst_50 {dimension_numbers = #tpu.dot_dimension_numbers<[1], [1], [0], [0], [0, 0, 1, 0], [], []>} : vector<8x8xf32>, vector<16x8xf32>, vector<8x16xf32> -> vector<8x16xf32>
    %cst_51 = arith.constant dense<0xFF800000> : vector<8xf32>
    %131 = vector.multi_reduction <maximumf>, %130, %cst_51 [1] : vector<8x16xf32> to vector<8xf32>
    %132 = vector.shape_cast %131 : vector<8xf32> to vector<8x1xf32>
    %133 = vector.broadcast %132 : vector<8x1xf32> to vector<8x16xf32>
    %134 = arith.subf %130, %133 : vector<8x16xf32>
    %135 = math.exp %134 : vector<8x16xf32>
    %cst_52 = arith.constant dense<0.000000e+00> : vector<8xf32>
    %136 = vector.multi_reduction <add>, %135, %cst_52 [1] : vector<8x16xf32> to vector<8xf32>
    %137 = vector.shape_cast %136 : vector<8xf32> to vector<8x1xf32>
    %cst_53 = arith.constant dense<0.000000e+00> : vector<8x8xf32>
    %138 = tpu.matmul %135, %129, %cst_53 {dimension_numbers = #tpu.dot_dimension_numbers<[1], [0], [0], [1], [0, 0, 1, 1], [], []>} : vector<8x16xf32>, vector<16x8xf32>, vector<8x8xf32> -> vector<8x8xf32>
    %139 = tpu.reciprocal %137 : vector<8x1xf32> -> vector<8x1xf32>
    %140 = vector.broadcast %139 : vector<8x1xf32> to vector<8x8xf32>
    %141 = arith.mulf %138, %140 : vector<8x8xf32>
    %142 = arith.index_cast %16 : i32 to index
    %c48 = arith.constant 48 : index
    %143 = vector.load %arg13[%142, %c48] : memref<32x64xf32, #tpu.memory_space<vmem>>, vector<8x8xf32>
    tpu.vector_store %arg13[%142, %c48], %141 {strides = array<i32>} : memref<32x64xf32, #tpu.memory_space<vmem>>, vector<8x8xf32>,
    %144 = vector.extract_strided_slice %20 {offsets = [0, 56], sizes = [8, 8], strides = [1, 1]} : vector<8x64xf32> to vector<8x8xf32>
    %145 = vector.extract_strided_slice %22 {offsets = [0, 56], sizes = [16, 8], strides = [1, 1]} : vector<16x64xf32> to vector<16x8xf32>
    %146 = vector.extract_strided_slice %24 {offsets = [0, 56], sizes = [16, 8], strides = [1, 1]} : vector<16x64xf32> to vector<16x8xf32>
    %cst_54 = arith.constant dense<0.000000e+00> : vector<8x16xf32>
    %147 = tpu.matmul %144, %145, %cst_54 {dimension_numbers = #tpu.dot_dimension_numbers<[1], [1], [0], [0], [0, 0, 1, 0], [], []>} : vector<8x8xf32>, vector<16x8xf32>, vector<8x16xf32> -> vector<8x16xf32>
    %cst_55 = arith.constant dense<0xFF800000> : vector<8xf32>
    %148 = vector.multi_reduction <maximumf>, %147, %cst_55 [1] : vector<8x16xf32> to vector<8xf32>
    %149 = vector.shape_cast %148 : vector<8xf32> to vector<8x1xf32>
    %150 = vector.broadcast %149 : vector<8x1xf32> to vector<8x16xf32>
    %151 = arith.subf %147, %150 : vector<8x16xf32>
    %152 = math.exp %151 : vector<8x16xf32>
    %cst_56 = arith.constant dense<0.000000e+00> : vector<8xf32>
    %153 = vector.multi_reduction <add>, %152, %cst_56 [1] : vector<8x16xf32> to vector<8xf32>
    %154 = vector.shape_cast %153 : vector<8xf32> to vector<8x1xf32>
    %cst_57 = arith.constant dense<0.000000e+00> : vector<8x8xf32>
    %155 = tpu.matmul %152, %146, %cst_57 {dimension_numbers = #tpu.dot_dimension_numbers<[1], [0], [0], [1], [0, 0, 1, 1], [], []>} : vector<8x16xf32>, vector<16x8xf32>, vector<8x8xf32> -> vector<8x8xf32>
    %156 = tpu.reciprocal %154 : vector<8x1xf32> -> vector<8x1xf32>
    %157 = vector.broadcast %156 : vector<8x1xf32> to vector<8x8xf32>
    %158 = arith.mulf %155, %157 : vector<8x8xf32>
    %159 = arith.index_cast %16 : i32 to index
    %c56 = arith.constant 56 : index
    %160 = vector.load %arg13[%159, %c56] : memref<32x64xf32, #tpu.memory_space<vmem>>, vector<8x8xf32>
    tpu.vector_store %arg13[%159, %c56], %158 {strides = array<i32>} : memref<32x64xf32, #tpu.memory_space<vmem>>, vector<8x8xf32>,
    %c1_i32 = arith.constant 1 : i32
    %c8_i32_58 = arith.constant 8 : i32
    %161 = arith.muli %c1_i32, %c8_i32_58 : i32
    %162 = tpu.assume_multiple %161, 8 : i32
    %c16_i32_59 = arith.constant 16 : i32
    %163 = arith.muli %c1_i32, %c16_i32_59 : i32
    %164 = tpu.assume_multiple %163, 16 : i32
    %165 = arith.index_cast %162 : i32 to index
    %c0_60 = arith.constant 0 : index
    %166 = vector.load %arg10[%165, %c0_60] : memref<32x64xf32, #tpu.memory_space<vmem>>, vector<8x64xf32>
    %167 = arith.index_cast %164 : i32 to index
    %c0_61 = arith.constant 0 : index
    %168 = vector.load %arg11[%167, %c0_61] : memref<64x64xf32, #tpu.memory_space<vmem>>, vector<16x64xf32>
    %169 = arith.index_cast %164 : i32 to index
    %c0_62 = arith.constant 0 : index
    %170 = vector.load %arg12[%169, %c0_62] : memref<64x64xf32, #tpu.memory_space<vmem>>, vector<16x64xf32>
    %171 = vector.extract_strided_slice %166 {offsets = [0, 0], sizes = [8, 8], strides = [1, 1]} : vector<8x64xf32> to vector<8x8xf32>
    %172 = vector.extract_strided_slice %168 {offsets = [0, 0], sizes = [16, 8], strides = [1, 1]} : vector<16x64xf32> to vector<16x8xf32>
    %173 = vector.extract_strided_slice %170 {offsets = [0, 0], sizes = [16, 8], strides = [1, 1]} : vector<16x64xf32> to vector<16x8xf32>
    %cst_63 = arith.constant dense<0.000000e+00> : vector<8x16xf32>
    %174 = tpu.matmul %171, %172, %cst_63 {dimension_numbers = #tpu.dot_dimension_numbers<[1], [1], [0], [0], [0, 0, 1, 0], [], []>} : vector<8x8xf32>, vector<16x8xf32>, vector<8x16xf32> -> vector<8x16xf32>
    %cst_64 = arith.constant dense<0xFF800000> : vector<8xf32>
    %175 = vector.multi_reduction <maximumf>, %174, %cst_64 [1] : vector<8x16xf32> to vector<8xf32>
    %176 = vector.shape_cast %175 : vector<8xf32> to vector<8x1xf32>
    %177 = vector.broadcast %176 : vector<8x1xf32> to vector<8x16xf32>
    %178 = arith.subf %174, %177 : vector<8x16xf32>
    %179 = math.exp %178 : vector<8x16xf32>
    %cst_65 = arith.constant dense<0.000000e+00> : vector<8xf32>
    %180 = vector.multi_reduction <add>, %179, %cst_65 [1] : vector<8x16xf32> to vector<8xf32>
    %181 = vector.shape_cast %180 : vector<8xf32> to vector<8x1xf32>
    %cst_66 = arith.constant dense<0.000000e+00> : vector<8x8xf32>
    %182 = tpu.matmul %179, %173, %cst_66 {dimension_numbers = #tpu.dot_dimension_numbers<[1], [0], [0], [1], [0, 0, 1, 1], [], []>} : vector<8x16xf32>, vector<16x8xf32>, vector<8x8xf32> -> vector<8x8xf32>
    %183 = tpu.reciprocal %181 : vector<8x1xf32> -> vector<8x1xf32>
    %184 = vector.broadcast %183 : vector<8x1xf32> to vector<8x8xf32>
    %185 = arith.mulf %182, %184 : vector<8x8xf32>
    %186 = arith.index_cast %162 : i32 to index
    %c0_67 = arith.constant 0 : index
    %187 = vector.load %arg13[%186, %c0_67] : memref<32x64xf32, #tpu.memory_space<vmem>>, vector<8x8xf32>
    tpu.vector_store %arg13[%186, %c0_67], %185 {strides = array<i32>} : memref<32x64xf32, #tpu.memory_space<vmem>>, vector<8x8xf32>,
    %188 = vector.extract_strided_slice %166 {offsets = [0, 8], sizes = [8, 8], strides = [1, 1]} : vector<8x64xf32> to vector<8x8xf32>
    %189 = vector.extract_strided_slice %168 {offsets = [0, 8], sizes = [16, 8], strides = [1, 1]} : vector<16x64xf32> to vector<16x8xf32>
    %190 = vector.extract_strided_slice %170 {offsets = [0, 8], sizes = [16, 8], strides = [1, 1]} : vector<16x64xf32> to vector<16x8xf32>
    %cst_68 = arith.constant dense<0.000000e+00> : vector<8x16xf32>
    %191 = tpu.matmul %188, %189, %cst_68 {dimension_numbers = #tpu.dot_dimension_numbers<[1], [1], [0], [0], [0, 0, 1, 0], [], []>} : vector<8x8xf32>, vector<16x8xf32>, vector<8x16xf32> -> vector<8x16xf32>
    %cst_69 = arith.constant dense<0xFF800000> : vector<8xf32>
    %192 = vector.multi_reduction <maximumf>, %191, %cst_69 [1] : vector<8x16xf32> to vector<8xf32>
    %193 = vector.shape_cast %192 : vector<8xf32> to vector<8x1xf32>
    %194 = vector.broadcast %193 : vector<8x1xf32> to vector<8x16xf32>
    %195 = arith.subf %191, %194 : vector<8x16xf32>
    %196 = math.exp %195 : vector<8x16xf32>
    %cst_70 = arith.constant dense<0.000000e+00> : vector<8xf32>
    %197 = vector.multi_reduction <add>, %196, %cst_70 [1] : vector<8x16xf32> to vector<8xf32>
    %198 = vector.shape_cast %197 : vector<8xf32> to vector<8x1xf32>
    %cst_71 = arith.constant dense<0.000000e+00> : vector<8x8xf32>
    %199 = tpu.matmul %196, %190, %cst_71 {dimension_numbers = #tpu.dot_dimension_numbers<[1], [0], [0], [1], [0, 0, 1, 1], [], []>} : vector<8x16xf32>, vector<16x8xf32>, vector<8x8xf32> -> vector<8x8xf32>
    %200 = tpu.reciprocal %198 : vector<8x1xf32> -> vector<8x1xf32>
    %201 = vector.broadcast %200 : vector<8x1xf32> to vector<8x8xf32>
    %202 = arith.mulf %199, %201 : vector<8x8xf32>
    %203 = arith.index_cast %162 : i32 to index
    %c8_72 = arith.constant 8 : index
    %204 = vector.load %arg13[%203, %c8_72] : memref<32x64xf32, #tpu.memory_space<vmem>>, vector<8x8xf32>
    tpu.vector_store %arg13[%203, %c8_72], %202 {strides = array<i32>} : memref<32x64xf32, #tpu.memory_space<vmem>>, vector<8x8xf32>,
    %205 = vector.extract_strided_slice %166 {offsets = [0, 16], sizes = [8, 8], strides = [1, 1]} : vector<8x64xf32> to vector<8x8xf32>
    %206 = vector.extract_strided_slice %168 {offsets = [0, 16], sizes = [16, 8], strides = [1, 1]} : vector<16x64xf32> to vector<16x8xf32>
    %207 = vector.extract_strided_slice %170 {offsets = [0, 16], sizes = [16, 8], strides = [1, 1]} : vector<16x64xf32> to vector<16x8xf32>
    %cst_73 = arith.constant dense<0.000000e+00> : vector<8x16xf32>
    %208 = tpu.matmul %205, %206, %cst_73 {dimension_numbers = #tpu.dot_dimension_numbers<[1], [1], [0], [0], [0, 0, 1, 0], [], []>} : vector<8x8xf32>, vector<16x8xf32>, vector<8x16xf32> -> vector<8x16xf32>
    %cst_74 = arith.constant dense<0xFF800000> : vector<8xf32>
    %209 = vector.multi_reduction <maximumf>, %208, %cst_74 [1] : vector<8x16xf32> to vector<8xf32>
    %210 = vector.shape_cast %209 : vector<8xf32> to vector<8x1xf32>
    %211 = vector.broadcast %210 : vector<8x1xf32> to vector<8x16xf32>
    %212 = arith.subf %208, %211 : vector<8x16xf32>
    %213 = math.exp %212 : vector<8x16xf32>
    %cst_75 = arith.constant dense<0.000000e+00> : vector<8xf32>
    %214 = vector.multi_reduction <add>, %213, %cst_75 [1] : vector<8x16xf32> to vector<8xf32>
    %215 = vector.shape_cast %214 : vector<8xf32> to vector<8x1xf32>
    %cst_76 = arith.constant dense<0.000000e+00> : vector<8x8xf32>
    %216 = tpu.matmul %213, %207, %cst_76 {dimension_numbers = #tpu.dot_dimension_numbers<[1], [0], [0], [1], [0, 0, 1, 1], [], []>} : vector<8x16xf32>, vector<16x8xf32>, vector<8x8xf32> -> vector<8x8xf32>
    %217 = tpu.reciprocal %215 : vector<8x1xf32> -> vector<8x1xf32>
    %218 = vector.broadcast %217 : vector<8x1xf32> to vector<8x8xf32>
    %219 = arith.mulf %216, %218 : vector<8x8xf32>
    %220 = arith.index_cast %162 : i32 to index
    %c16_77 = arith.constant 16 : index
    %221 = vector.load %arg13[%220, %c16_77] : memref<32x64xf32, #tpu.memory_space<vmem>>, vector<8x8xf32>
    tpu.vector_store %arg13[%220, %c16_77], %219 {strides = array<i32>} : memref<32x64xf32, #tpu.memory_space<vmem>>, vector<8x8xf32>,
    %222 = vector.extract_strided_slice %166 {offsets = [0, 24], sizes = [8, 8], strides = [1, 1]} : vector<8x64xf32> to vector<8x8xf32>
    %223 = vector.extract_strided_slice %168 {offsets = [0, 24], sizes = [16, 8], strides = [1, 1]} : vector<16x64xf32> to vector<16x8xf32>
    %224 = vector.extract_strided_slice %170 {offsets = [0, 24], sizes = [16, 8], strides = [1, 1]} : vector<16x64xf32> to vector<16x8xf32>
    %cst_78 = arith.constant dense<0.000000e+00> : vector<8x16xf32>
    %225 = tpu.matmul %222, %223, %cst_78 {dimension_numbers = #tpu.dot_dimension_numbers<[1], [1], [0], [0], [0, 0, 1, 0], [], []>} : vector<8x8xf32>, vector<16x8xf32>, vector<8x16xf32> -> vector<8x16xf32>
    %cst_79 = arith.constant dense<0xFF800000> : vector<8xf32>
    %226 = vector.multi_reduction <maximumf>, %225, %cst_79 [1] : vector<8x16xf32> to vector<8xf32>
    %227 = vector.shape_cast %226 : vector<8xf32> to vector<8x1xf32>
    %228 = vector.broadcast %227 : vector<8x1xf32> to vector<8x16xf32>
    %229 = arith.subf %225, %228 : vector<8x16xf32>
    %230 = math.exp %229 : vector<8x16xf32>
    %cst_80 = arith.constant dense<0.000000e+00> : vector<8xf32>
    %231 = vector.multi_reduction <add>, %230, %cst_80 [1] : vector<8x16xf32> to vector<8xf32>
    %232 = vector.shape_cast %231 : vector<8xf32> to vector<8x1xf32>
    %cst_81 = arith.constant dense<0.000000e+00> : vector<8x8xf32>
    %233 = tpu.matmul %230, %224, %cst_81 {dimension_numbers = #tpu.dot_dimension_numbers<[1], [0], [0], [1], [0, 0, 1, 1], [], []>} : vector<8x16xf32>, vector<16x8xf32>, vector<8x8xf32> -> vector<8x8xf32>
    %234 = tpu.reciprocal %232 : vector<8x1xf32> -> vector<8x1xf32>
    %235 = vector.broadcast %234 : vector<8x1xf32> to vector<8x8xf32>
    %236 = arith.mulf %233, %235 : vector<8x8xf32>
    %237 = arith.index_cast %162 : i32 to index
    %c24_82 = arith.constant 24 : index
    %238 = vector.load %arg13[%237, %c24_82] : memref<32x64xf32, #tpu.memory_space<vmem>>, vector<8x8xf32>
    tpu.vector_store %arg13[%237, %c24_82], %236 {strides = array<i32>} : memref<32x64xf32, #tpu.memory_space<vmem>>, vector<8x8xf32>,
    %239 = vector.extract_strided_slice %166 {offsets = [0, 32], sizes = [8, 8], strides = [1, 1]} : vector<8x64xf32> to vector<8x8xf32>
    %240 = vector.extract_strided_slice %168 {offsets = [0, 32], sizes = [16, 8], strides = [1, 1]} : vector<16x64xf32> to vector<16x8xf32>
    %241 = vector.extract_strided_slice %170 {offsets = [0, 32], sizes = [16, 8], strides = [1, 1]} : vector<16x64xf32> to vector<16x8xf32>
    %cst_83 = arith.constant dense<0.000000e+00> : vector<8x16xf32>
    %242 = tpu.matmul %239, %240, %cst_83 {dimension_numbers = #tpu.dot_dimension_numbers<[1], [1], [0], [0], [0, 0, 1, 0], [], []>} : vector<8x8xf32>, vector<16x8xf32>, vector<8x16xf32> -> vector<8x16xf32>
    %cst_84 = arith.constant dense<0xFF800000> : vector<8xf32>
    %243 = vector.multi_reduction <maximumf>, %242, %cst_84 [1] : vector<8x16xf32> to vector<8xf32>
    %244 = vector.shape_cast %243 : vector<8xf32> to vector<8x1xf32>
    %245 = vector.broadcast %244 : vector<8x1xf32> to vector<8x16xf32>
    %246 = arith.subf %242, %245 : vector<8x16xf32>
    %247 = math.exp %246 : vector<8x16xf32>
    %cst_85 = arith.constant dense<0.000000e+00> : vector<8xf32>
    %248 = vector.multi_reduction <add>, %247, %cst_85 [1] : vector<8x16xf32> to vector<8xf32>
    %249 = vector.shape_cast %248 : vector<8xf32> to vector<8x1xf32>
    %cst_86 = arith.constant dense<0.000000e+00> : vector<8x8xf32>
    %250 = tpu.matmul %247, %241, %cst_86 {dimension_numbers = #tpu.dot_dimension_numbers<[1], [0], [0], [1], [0, 0, 1, 1], [], []>} : vector<8x16xf32>, vector<16x8xf32>, vector<8x8xf32> -> vector<8x8xf32>
    %251 = tpu.reciprocal %249 : vector<8x1xf32> -> vector<8x1xf32>
    %252 = vector.broadcast %251 : vector<8x1xf32> to vector<8x8xf32>
    %253 = arith.mulf %250, %252 : vector<8x8xf32>
    %254 = arith.index_cast %162 : i32 to index
    %c32_87 = arith.constant 32 : index
    %255 = vector.load %arg13[%254, %c32_87] : memref<32x64xf32, #tpu.memory_space<vmem>>, vector<8x8xf32>
    tpu.vector_store %arg13[%254, %c32_87], %253 {strides = array<i32>} : memref<32x64xf32, #tpu.memory_space<vmem>>, vector<8x8xf32>,
    %256 = vector.extract_strided_slice %166 {offsets = [0, 40], sizes = [8, 8], strides = [1, 1]} : vector<8x64xf32> to vector<8x8xf32>
    %257 = vector.extract_strided_slice %168 {offsets = [0, 40], sizes = [16, 8], strides = [1, 1]} : vector<16x64xf32> to vector<16x8xf32>
    %258 = vector.extract_strided_slice %170 {offsets = [0, 40], sizes = [16, 8], strides = [1, 1]} : vector<16x64xf32> to vector<16x8xf32>
    %cst_88 = arith.constant dense<0.000000e+00> : vector<8x16xf32>
    %259 = tpu.matmul %256, %257, %cst_88 {dimension_numbers = #tpu.dot_dimension_numbers<[1], [1], [0], [0], [0, 0, 1, 0], [], []>} : vector<8x8xf32>, vector<16x8xf32>, vector<8x16xf32> -> vector<8x16xf32>
    %cst_89 = arith.constant dense<0xFF800000> : vector<8xf32>
    %260 = vector.multi_reduction <maximumf>, %259, %cst_89 [1] : vector<8x16xf32> to vector<8xf32>
    %261 = vector.shape_cast %260 : vector<8xf32> to vector<8x1xf32>
    %262 = vector.broadcast %261 : vector<8x1xf32> to vector<8x16xf32>
    %263 = arith.subf %259, %262 : vector<8x16xf32>
    %264 = math.exp %263 : vector<8x16xf32>
    %cst_90 = arith.constant dense<0.000000e+00> : vector<8xf32>
    %265 = vector.multi_reduction <add>, %264, %cst_90 [1] : vector<8x16xf32> to vector<8xf32>
    %266 = vector.shape_cast %265 : vector<8xf32> to vector<8x1xf32>
    %cst_91 = arith.constant dense<0.000000e+00> : vector<8x8xf32>
    %267 = tpu.matmul %264, %258, %cst_91 {dimension_numbers = #tpu.dot_dimension_numbers<[1], [0], [0], [1], [0, 0, 1, 1], [], []>} : vector<8x16xf32>, vector<16x8xf32>, vector<8x8xf32> -> vector<8x8xf32>
    %268 = tpu.reciprocal %266 : vector<8x1xf32> -> vector<8x1xf32>
    %269 = vector.broadcast %268 : vector<8x1xf32> to vector<8x8xf32>
    %270 = arith.mulf %267, %269 : vector<8x8xf32>
    %271 = arith.index_cast %162 : i32 to index
    %c40_92 = arith.constant 40 : index
    %272 = vector.load %arg13[%271, %c40_92] : memref<32x64xf32, #tpu.memory_space<vmem>>, vector<8x8xf32>
    tpu.vector_store %arg13[%271, %c40_92], %270 {strides = array<i32>} : memref<32x64xf32, #tpu.memory_space<vmem>>, vector<8x8xf32>,
    %273 = vector.extract_strided_slice %166 {offsets = [0, 48], sizes = [8, 8], strides = [1, 1]} : vector<8x64xf32> to vector<8x8xf32>
    %274 = vector.extract_strided_slice %168 {offsets = [0, 48], sizes = [16, 8], strides = [1, 1]} : vector<16x64xf32> to vector<16x8xf32>
    %275 = vector.extract_strided_slice %170 {offsets = [0, 48], sizes = [16, 8], strides = [1, 1]} : vector<16x64xf32> to vector<16x8xf32>
    %cst_93 = arith.constant dense<0.000000e+00> : vector<8x16xf32>
    %276 = tpu.matmul %273, %274, %cst_93 {dimension_numbers = #tpu.dot_dimension_numbers<[1], [1], [0], [0], [0, 0, 1, 0], [], []>} : vector<8x8xf32>, vector<16x8xf32>, vector<8x16xf32> -> vector<8x16xf32>
    %cst_94 = arith.constant dense<0xFF800000> : vector<8xf32>
    %277 = vector.multi_reduction <maximumf>, %276, %cst_94 [1] : vector<8x16xf32> to vector<8xf32>
    %278 = vector.shape_cast %277 : vector<8xf32> to vector<8x1xf32>
    %279 = vector.broadcast %278 : vector<8x1xf32> to vector<8x16xf32>
    %280 = arith.subf %276, %279 : vector<8x16xf32>
    %281 = math.exp %280 : vector<8x16xf32>
    %cst_95 = arith.constant dense<0.000000e+00> : vector<8xf32>
    %282 = vector.multi_reduction <add>, %281, %cst_95 [1] : vector<8x16xf32> to vector<8xf32>
    %283 = vector.shape_cast %282 : vector<8xf32> to vector<8x1xf32>
    %cst_96 = arith.constant dense<0.000000e+00> : vector<8x8xf32>
    %284 = tpu.matmul %281, %275, %cst_96 {dimension_numbers = #tpu.dot_dimension_numbers<[1], [0], [0], [1], [0, 0, 1, 1], [], []>} : vector<8x16xf32>, vector<16x8xf32>, vector<8x8xf32> -> vector<8x8xf32>
    %285 = tpu.reciprocal %283 : vector<8x1xf32> -> vector<8x1xf32>
    %286 = vector.broadcast %285 : vector<8x1xf32> to vector<8x8xf32>
    %287 = arith.mulf %284, %286 : vector<8x8xf32>
    %288 = arith.index_cast %162 : i32 to index
    %c48_97 = arith.constant 48 : index
    %289 = vector.load %arg13[%288, %c48_97] : memref<32x64xf32, #tpu.memory_space<vmem>>, vector<8x8xf32>
    tpu.vector_store %arg13[%288, %c48_97], %287 {strides = array<i32>} : memref<32x64xf32, #tpu.memory_space<vmem>>, vector<8x8xf32>,
    %290 = vector.extract_strided_slice %166 {offsets = [0, 56], sizes = [8, 8], strides = [1, 1]} : vector<8x64xf32> to vector<8x8xf32>
    %291 = vector.extract_strided_slice %168 {offsets = [0, 56], sizes = [16, 8], strides = [1, 1]} : vector<16x64xf32> to vector<16x8xf32>
    %292 = vector.extract_strided_slice %170 {offsets = [0, 56], sizes = [16, 8], strides = [1, 1]} : vector<16x64xf32> to vector<16x8xf32>
    %cst_98 = arith.constant dense<0.000000e+00> : vector<8x16xf32>
    %293 = tpu.matmul %290, %291, %cst_98 {dimension_numbers = #tpu.dot_dimension_numbers<[1], [1], [0], [0], [0, 0, 1, 0], [], []>} : vector<8x8xf32>, vector<16x8xf32>, vector<8x16xf32> -> vector<8x16xf32>
    %cst_99 = arith.constant dense<0xFF800000> : vector<8xf32>
    %294 = vector.multi_reduction <maximumf>, %293, %cst_99 [1] : vector<8x16xf32> to vector<8xf32>
    %295 = vector.shape_cast %294 : vector<8xf32> to vector<8x1xf32>
    %296 = vector.broadcast %295 : vector<8x1xf32> to vector<8x16xf32>
    %297 = arith.subf %293, %296 : vector<8x16xf32>
    %298 = math.exp %297 : vector<8x16xf32>
    %cst_100 = arith.constant dense<0.000000e+00> : vector<8xf32>
    %299 = vector.multi_reduction <add>, %298, %cst_100 [1] : vector<8x16xf32> to vector<8xf32>
    %300 = vector.shape_cast %299 : vector<8xf32> to vector<8x1xf32>
    %cst_101 = arith.constant dense<0.000000e+00> : vector<8x8xf32>
    %301 = tpu.matmul %298, %292, %cst_101 {dimension_numbers = #tpu.dot_dimension_numbers<[1], [0], [0], [1], [0, 0, 1, 1], [], []>} : vector<8x16xf32>, vector<16x8xf32>, vector<8x8xf32> -> vector<8x8xf32>
    %302 = tpu.reciprocal %300 : vector<8x1xf32> -> vector<8x1xf32>
    %303 = vector.broadcast %302 : vector<8x1xf32> to vector<8x8xf32>
    %304 = arith.mulf %301, %303 : vector<8x8xf32>
    %305 = arith.index_cast %162 : i32 to index
    %c56_102 = arith.constant 56 : index
    %306 = vector.load %arg13[%305, %c56_102] : memref<32x64xf32, #tpu.memory_space<vmem>>, vector<8x8xf32>
    tpu.vector_store %arg13[%305, %c56_102], %304 {strides = array<i32>} : memref<32x64xf32, #tpu.memory_space<vmem>>, vector<8x8xf32>,
    %c2_i32 = arith.constant 2 : i32
    %c8_i32_103 = arith.constant 8 : i32
    %307 = arith.muli %c2_i32, %c8_i32_103 : i32
    %308 = tpu.assume_multiple %307, 8 : i32
    %c16_i32_104 = arith.constant 16 : i32
    %309 = arith.muli %c2_i32, %c16_i32_104 : i32
    %310 = tpu.assume_multiple %309, 16 : i32
    %311 = arith.index_cast %308 : i32 to index
    %c0_105 = arith.constant 0 : index
    %312 = vector.load %arg10[%311, %c0_105] : memref<32x64xf32, #tpu.memory_space<vmem>>, vector<8x64xf32>
    %313 = arith.index_cast %310 : i32 to index
    %c0_106 = arith.constant 0 : index
    %314 = vector.load %arg11[%313, %c0_106] : memref<64x64xf32, #tpu.memory_space<vmem>>, vector<16x64xf32>
    %315 = arith.index_cast %310 : i32 to index
    %c0_107 = arith.constant 0 : index
    %316 = vector.load %arg12[%315, %c0_107] : memref<64x64xf32, #tpu.memory_space<vmem>>, vector<16x64xf32>
    %317 = vector.extract_strided_slice %312 {offsets = [0, 0], sizes = [8, 8], strides = [1, 1]} : vector<8x64xf32> to vector<8x8xf32>
    %318 = vector.extract_strided_slice %314 {offsets = [0, 0], sizes = [16, 8], strides = [1, 1]} : vector<16x64xf32> to vector<16x8xf32>
    %319 = vector.extract_strided_slice %316 {offsets = [0, 0], sizes = [16, 8], strides = [1, 1]} : vector<16x64xf32> to vector<16x8xf32>
    %cst_108 = arith.constant dense<0.000000e+00> : vector<8x16xf32>
    %320 = tpu.matmul %317, %318, %cst_108 {dimension_numbers = #tpu.dot_dimension_numbers<[1], [1], [0], [0], [0, 0, 1, 0], [], []>} : vector<8x8xf32>, vector<16x8xf32>, vector<8x16xf32> -> vector<8x16xf32>
    %cst_109 = arith.constant dense<0xFF800000> : vector<8xf32>
    %321 = vector.multi_reduction <maximumf>, %320, %cst_109 [1] : vector<8x16xf32> to vector<8xf32>
    %322 = vector.shape_cast %321 : vector<8xf32> to vector<8x1xf32>
    %323 = vector.broadcast %322 : vector<8x1xf32> to vector<8x16xf32>
    %324 = arith.subf %320, %323 : vector<8x16xf32>
    %325 = math.exp %324 : vector<8x16xf32>
    %cst_110 = arith.constant dense<0.000000e+00> : vector<8xf32>
    %326 = vector.multi_reduction <add>, %325, %cst_110 [1] : vector<8x16xf32> to vector<8xf32>
    %327 = vector.shape_cast %326 : vector<8xf32> to vector<8x1xf32>
    %cst_111 = arith.constant dense<0.000000e+00> : vector<8x8xf32>
    %328 = tpu.matmul %325, %319, %cst_111 {dimension_numbers = #tpu.dot_dimension_numbers<[1], [0], [0], [1], [0, 0, 1, 1], [], []>} : vector<8x16xf32>, vector<16x8xf32>, vector<8x8xf32> -> vector<8x8xf32>
    %329 = tpu.reciprocal %327 : vector<8x1xf32> -> vector<8x1xf32>
    %330 = vector.broadcast %329 : vector<8x1xf32> to vector<8x8xf32>
    %331 = arith.mulf %328, %330 : vector<8x8xf32>
    %332 = arith.index_cast %308 : i32 to index
    %c0_112 = arith.constant 0 : index
    %333 = vector.load %arg13[%332, %c0_112] : memref<32x64xf32, #tpu.memory_space<vmem>>, vector<8x8xf32>
    tpu.vector_store %arg13[%332, %c0_112], %331 {strides = array<i32>} : memref<32x64xf32, #tpu.memory_space<vmem>>, vector<8x8xf32>,
    %334 = vector.extract_strided_slice %312 {offsets = [0, 8], sizes = [8, 8], strides = [1, 1]} : vector<8x64xf32> to vector<8x8xf32>
    %335 = vector.extract_strided_slice %314 {offsets = [0, 8], sizes = [16, 8], strides = [1, 1]} : vector<16x64xf32> to vector<16x8xf32>
    %336 = vector.extract_strided_slice %316 {offsets = [0, 8], sizes = [16, 8], strides = [1, 1]} : vector<16x64xf32> to vector<16x8xf32>
    %cst_113 = arith.constant dense<0.000000e+00> : vector<8x16xf32>
    %337 = tpu.matmul %334, %335, %cst_113 {dimension_numbers = #tpu.dot_dimension_numbers<[1], [1], [0], [0], [0, 0, 1, 0], [], []>} : vector<8x8xf32>, vector<16x8xf32>, vector<8x16xf32> -> vector<8x16xf32>
    %cst_114 = arith.constant dense<0xFF800000> : vector<8xf32>
    %338 = vector.multi_reduction <maximumf>, %337, %cst_114 [1] : vector<8x16xf32> to vector<8xf32>
    %339 = vector.shape_cast %338 : vector<8xf32> to vector<8x1xf32>
    %340 = vector.broadcast %339 : vector<8x1xf32> to vector<8x16xf32>
    %341 = arith.subf %337, %340 : vector<8x16xf32>
    %342 = math.exp %341 : vector<8x16xf32>
    %cst_115 = arith.constant dense<0.000000e+00> : vector<8xf32>
    %343 = vector.multi_reduction <add>, %342, %cst_115 [1] : vector<8x16xf32> to vector<8xf32>
    %344 = vector.shape_cast %343 : vector<8xf32> to vector<8x1xf32>
    %cst_116 = arith.constant dense<0.000000e+00> : vector<8x8xf32>
    %345 = tpu.matmul %342, %336, %cst_116 {dimension_numbers = #tpu.dot_dimension_numbers<[1], [0], [0], [1], [0, 0, 1, 1], [], []>} : vector<8x16xf32>, vector<16x8xf32>, vector<8x8xf32> -> vector<8x8xf32>
    %346 = tpu.reciprocal %344 : vector<8x1xf32> -> vector<8x1xf32>
    %347 = vector.broadcast %346 : vector<8x1xf32> to vector<8x8xf32>
    %348 = arith.mulf %345, %347 : vector<8x8xf32>
    %349 = arith.index_cast %308 : i32 to index
    %c8_117 = arith.constant 8 : index
    %350 = vector.load %arg13[%349, %c8_117] : memref<32x64xf32, #tpu.memory_space<vmem>>, vector<8x8xf32>
    tpu.vector_store %arg13[%349, %c8_117], %348 {strides = array<i32>} : memref<32x64xf32, #tpu.memory_space<vmem>>, vector<8x8xf32>,
    %351 = vector.extract_strided_slice %312 {offsets = [0, 16], sizes = [8, 8], strides = [1, 1]} : vector<8x64xf32> to vector<8x8xf32>
    %352 = vector.extract_strided_slice %314 {offsets = [0, 16], sizes = [16, 8], strides = [1, 1]} : vector<16x64xf32> to vector<16x8xf32>
    %353 = vector.extract_strided_slice %316 {offsets = [0, 16], sizes = [16, 8], strides = [1, 1]} : vector<16x64xf32> to vector<16x8xf32>
    %cst_118 = arith.constant dense<0.000000e+00> : vector<8x16xf32>
    %354 = tpu.matmul %351, %352, %cst_118 {dimension_numbers = #tpu.dot_dimension_numbers<[1], [1], [0], [0], [0, 0, 1, 0], [], []>} : vector<8x8xf32>, vector<16x8xf32>, vector<8x16xf32> -> vector<8x16xf32>
    %cst_119 = arith.constant dense<0xFF800000> : vector<8xf32>
    %355 = vector.multi_reduction <maximumf>, %354, %cst_119 [1] : vector<8x16xf32> to vector<8xf32>
    %356 = vector.shape_cast %355 : vector<8xf32> to vector<8x1xf32>
    %357 = vector.broadcast %356 : vector<8x1xf32> to vector<8x16xf32>
    %358 = arith.subf %354, %357 : vector<8x16xf32>
    %359 = math.exp %358 : vector<8x16xf32>
    %cst_120 = arith.constant dense<0.000000e+00> : vector<8xf32>
    %360 = vector.multi_reduction <add>, %359, %cst_120 [1] : vector<8x16xf32> to vector<8xf32>
    %361 = vector.shape_cast %360 : vector<8xf32> to vector<8x1xf32>
    %cst_121 = arith.constant dense<0.000000e+00> : vector<8x8xf32>
    %362 = tpu.matmul %359, %353, %cst_121 {dimension_numbers = #tpu.dot_dimension_numbers<[1], [0], [0], [1], [0, 0, 1, 1], [], []>} : vector<8x16xf32>, vector<16x8xf32>, vector<8x8xf32> -> vector<8x8xf32>
    %363 = tpu.reciprocal %361 : vector<8x1xf32> -> vector<8x1xf32>
    %364 = vector.broadcast %363 : vector<8x1xf32> to vector<8x8xf32>
    %365 = arith.mulf %362, %364 : vector<8x8xf32>
    %366 = arith.index_cast %308 : i32 to index
    %c16_122 = arith.constant 16 : index
    %367 = vector.load %arg13[%366, %c16_122] : memref<32x64xf32, #tpu.memory_space<vmem>>, vector<8x8xf32>
    tpu.vector_store %arg13[%366, %c16_122], %365 {strides = array<i32>} : memref<32x64xf32, #tpu.memory_space<vmem>>, vector<8x8xf32>,
    %368 = vector.extract_strided_slice %312 {offsets = [0, 24], sizes = [8, 8], strides = [1, 1]} : vector<8x64xf32> to vector<8x8xf32>
    %369 = vector.extract_strided_slice %314 {offsets = [0, 24], sizes = [16, 8], strides = [1, 1]} : vector<16x64xf32> to vector<16x8xf32>
    %370 = vector.extract_strided_slice %316 {offsets = [0, 24], sizes = [16, 8], strides = [1, 1]} : vector<16x64xf32> to vector<16x8xf32>
    %cst_123 = arith.constant dense<0.000000e+00> : vector<8x16xf32>
    %371 = tpu.matmul %368, %369, %cst_123 {dimension_numbers = #tpu.dot_dimension_numbers<[1], [1], [0], [0], [0, 0, 1, 0], [], []>} : vector<8x8xf32>, vector<16x8xf32>, vector<8x16xf32> -> vector<8x16xf32>
    %cst_124 = arith.constant dense<0xFF800000> : vector<8xf32>
    %372 = vector.multi_reduction <maximumf>, %371, %cst_124 [1] : vector<8x16xf32> to vector<8xf32>
    %373 = vector.shape_cast %372 : vector<8xf32> to vector<8x1xf32>
    %374 = vector.broadcast %373 : vector<8x1xf32> to vector<8x16xf32>
    %375 = arith.subf %371, %374 : vector<8x16xf32>
    %376 = math.exp %375 : vector<8x16xf32>
    %cst_125 = arith.constant dense<0.000000e+00> : vector<8xf32>
    %377 = vector.multi_reduction <add>, %376, %cst_125 [1] : vector<8x16xf32> to vector<8xf32>
    %378 = vector.shape_cast %377 : vector<8xf32> to vector<8x1xf32>
    %cst_126 = arith.constant dense<0.000000e+00> : vector<8x8xf32>
    %379 = tpu.matmul %376, %370, %cst_126 {dimension_numbers = #tpu.dot_dimension_numbers<[1], [0], [0], [1], [0, 0, 1, 1], [], []>} : vector<8x16xf32>, vector<16x8xf32>, vector<8x8xf32> -> vector<8x8xf32>
    %380 = tpu.reciprocal %378 : vector<8x1xf32> -> vector<8x1xf32>
    %381 = vector.broadcast %380 : vector<8x1xf32> to vector<8x8xf32>
    %382 = arith.mulf %379, %381 : vector<8x8xf32>
    %383 = arith.index_cast %308 : i32 to index
    %c24_127 = arith.constant 24 : index
    %384 = vector.load %arg13[%383, %c24_127] : memref<32x64xf32, #tpu.memory_space<vmem>>, vector<8x8xf32>
    tpu.vector_store %arg13[%383, %c24_127], %382 {strides = array<i32>} : memref<32x64xf32, #tpu.memory_space<vmem>>, vector<8x8xf32>,
    %385 = vector.extract_strided_slice %312 {offsets = [0, 32], sizes = [8, 8], strides = [1, 1]} : vector<8x64xf32> to vector<8x8xf32>
    %386 = vector.extract_strided_slice %314 {offsets = [0, 32], sizes = [16, 8], strides = [1, 1]} : vector<16x64xf32> to vector<16x8xf32>
    %387 = vector.extract_strided_slice %316 {offsets = [0, 32], sizes = [16, 8], strides = [1, 1]} : vector<16x64xf32> to vector<16x8xf32>
    %cst_128 = arith.constant dense<0.000000e+00> : vector<8x16xf32>
    %388 = tpu.matmul %385, %386, %cst_128 {dimension_numbers = #tpu.dot_dimension_numbers<[1], [1], [0], [0], [0, 0, 1, 0], [], []>} : vector<8x8xf32>, vector<16x8xf32>, vector<8x16xf32> -> vector<8x16xf32>
    %cst_129 = arith.constant dense<0xFF800000> : vector<8xf32>
    %389 = vector.multi_reduction <maximumf>, %388, %cst_129 [1] : vector<8x16xf32> to vector<8xf32>
    %390 = vector.shape_cast %389 : vector<8xf32> to vector<8x1xf32>
    %391 = vector.broadcast %390 : vector<8x1xf32> to vector<8x16xf32>
    %392 = arith.subf %388, %391 : vector<8x16xf32>
    %393 = math.exp %392 : vector<8x16xf32>
    %cst_130 = arith.constant dense<0.000000e+00> : vector<8xf32>
    %394 = vector.multi_reduction <add>, %393, %cst_130 [1] : vector<8x16xf32> to vector<8xf32>
    %395 = vector.shape_cast %394 : vector<8xf32> to vector<8x1xf32>
    %cst_131 = arith.constant dense<0.000000e+00> : vector<8x8xf32>
    %396 = tpu.matmul %393, %387, %cst_131 {dimension_numbers = #tpu.dot_dimension_numbers<[1], [0], [0], [1], [0, 0, 1, 1], [], []>} : vector<8x16xf32>, vector<16x8xf32>, vector<8x8xf32> -> vector<8x8xf32>
    %397 = tpu.reciprocal %395 : vector<8x1xf32> -> vector<8x1xf32>
    %398 = vector.broadcast %397 : vector<8x1xf32> to vector<8x8xf32>
    %399 = arith.mulf %396, %398 : vector<8x8xf32>
    %400 = arith.index_cast %308 : i32 to index
    %c32_132 = arith.constant 32 : index
    %401 = vector.load %arg13[%400, %c32_132] : memref<32x64xf32, #tpu.memory_space<vmem>>, vector<8x8xf32>
    tpu.vector_store %arg13[%400, %c32_132], %399 {strides = array<i32>} : memref<32x64xf32, #tpu.memory_space<vmem>>, vector<8x8xf32>,
    %402 = vector.extract_strided_slice %312 {offsets = [0, 40], sizes = [8, 8], strides = [1, 1]} : vector<8x64xf32> to vector<8x8xf32>
    %403 = vector.extract_strided_slice %314 {offsets = [0, 40], sizes = [16, 8], strides = [1, 1]} : vector<16x64xf32> to vector<16x8xf32>
    %404 = vector.extract_strided_slice %316 {offsets = [0, 40], sizes = [16, 8], strides = [1, 1]} : vector<16x64xf32> to vector<16x8xf32>
    %cst_133 = arith.constant dense<0.000000e+00> : vector<8x16xf32>
    %405 = tpu.matmul %402, %403, %cst_133 {dimension_numbers = #tpu.dot_dimension_numbers<[1], [1], [0], [0], [0, 0, 1, 0], [], []>} : vector<8x8xf32>, vector<16x8xf32>, vector<8x16xf32> -> vector<8x16xf32>
    %cst_134 = arith.constant dense<0xFF800000> : vector<8xf32>
    %406 = vector.multi_reduction <maximumf>, %405, %cst_134 [1] : vector<8x16xf32> to vector<8xf32>
    %407 = vector.shape_cast %406 : vector<8xf32> to vector<8x1xf32>
    %408 = vector.broadcast %407 : vector<8x1xf32> to vector<8x16xf32>
    %409 = arith.subf %405, %408 : vector<8x16xf32>
    %410 = math.exp %409 : vector<8x16xf32>
    %cst_135 = arith.constant dense<0.000000e+00> : vector<8xf32>
    %411 = vector.multi_reduction <add>, %410, %cst_135 [1] : vector<8x16xf32> to vector<8xf32>
    %412 = vector.shape_cast %411 : vector<8xf32> to vector<8x1xf32>
    %cst_136 = arith.constant dense<0.000000e+00> : vector<8x8xf32>
    %413 = tpu.matmul %410, %404, %cst_136 {dimension_numbers = #tpu.dot_dimension_numbers<[1], [0], [0], [1], [0, 0, 1, 1], [], []>} : vector<8x16xf32>, vector<16x8xf32>, vector<8x8xf32> -> vector<8x8xf32>
    %414 = tpu.reciprocal %412 : vector<8x1xf32> -> vector<8x1xf32>
    %415 = vector.broadcast %414 : vector<8x1xf32> to vector<8x8xf32>
    %416 = arith.mulf %413, %415 : vector<8x8xf32>
    %417 = arith.index_cast %308 : i32 to index
    %c40_137 = arith.constant 40 : index
    %418 = vector.load %arg13[%417, %c40_137] : memref<32x64xf32, #tpu.memory_space<vmem>>, vector<8x8xf32>
    tpu.vector_store %arg13[%417, %c40_137], %416 {strides = array<i32>} : memref<32x64xf32, #tpu.memory_space<vmem>>, vector<8x8xf32>,
    %419 = vector.extract_strided_slice %312 {offsets = [0, 48], sizes = [8, 8], strides = [1, 1]} : vector<8x64xf32> to vector<8x8xf32>
    %420 = vector.extract_strided_slice %314 {offsets = [0, 48], sizes = [16, 8], strides = [1, 1]} : vector<16x64xf32> to vector<16x8xf32>
    %421 = vector.extract_strided_slice %316 {offsets = [0, 48], sizes = [16, 8], strides = [1, 1]} : vector<16x64xf32> to vector<16x8xf32>
    %cst_138 = arith.constant dense<0.000000e+00> : vector<8x16xf32>
    %422 = tpu.matmul %419, %420, %cst_138 {dimension_numbers = #tpu.dot_dimension_numbers<[1], [1], [0], [0], [0, 0, 1, 0], [], []>} : vector<8x8xf32>, vector<16x8xf32>, vector<8x16xf32> -> vector<8x16xf32>
    %cst_139 = arith.constant dense<0xFF800000> : vector<8xf32>
    %423 = vector.multi_reduction <maximumf>, %422, %cst_139 [1] : vector<8x16xf32> to vector<8xf32>
    %424 = vector.shape_cast %423 : vector<8xf32> to vector<8x1xf32>
    %425 = vector.broadcast %424 : vector<8x1xf32> to vector<8x16xf32>
    %426 = arith.subf %422, %425 : vector<8x16xf32>
    %427 = math.exp %426 : vector<8x16xf32>
    %cst_140 = arith.constant dense<0.000000e+00> : vector<8xf32>
    %428 = vector.multi_reduction <add>, %427, %cst_140 [1] : vector<8x16xf32> to vector<8xf32>
    %429 = vector.shape_cast %428 : vector<8xf32> to vector<8x1xf32>
    %cst_141 = arith.constant dense<0.000000e+00> : vector<8x8xf32>
    %430 = tpu.matmul %427, %421, %cst_141 {dimension_numbers = #tpu.dot_dimension_numbers<[1], [0], [0], [1], [0, 0, 1, 1], [], []>} : vector<8x16xf32>, vector<16x8xf32>, vector<8x8xf32> -> vector<8x8xf32>
    %431 = tpu.reciprocal %429 : vector<8x1xf32> -> vector<8x1xf32>
    %432 = vector.broadcast %431 : vector<8x1xf32> to vector<8x8xf32>
    %433 = arith.mulf %430, %432 : vector<8x8xf32>
    %434 = arith.index_cast %308 : i32 to index
    %c48_142 = arith.constant 48 : index
    %435 = vector.load %arg13[%434, %c48_142] : memref<32x64xf32, #tpu.memory_space<vmem>>, vector<8x8xf32>
    tpu.vector_store %arg13[%434, %c48_142], %433 {strides = array<i32>} : memref<32x64xf32, #tpu.memory_space<vmem>>, vector<8x8xf32>,
    %436 = vector.extract_strided_slice %312 {offsets = [0, 56], sizes = [8, 8], strides = [1, 1]} : vector<8x64xf32> to vector<8x8xf32>
    %437 = vector.extract_strided_slice %314 {offsets = [0, 56], sizes = [16, 8], strides = [1, 1]} : vector<16x64xf32> to vector<16x8xf32>
    %438 = vector.extract_strided_slice %316 {offsets = [0, 56], sizes = [16, 8], strides = [1, 1]} : vector<16x64xf32> to vector<16x8xf32>
    %cst_143 = arith.constant dense<0.000000e+00> : vector<8x16xf32>
    %439 = tpu.matmul %436, %437, %cst_143 {dimension_numbers = #tpu.dot_dimension_numbers<[1], [1], [0], [0], [0, 0, 1, 0], [], []>} : vector<8x8xf32>, vector<16x8xf32>, vector<8x16xf32> -> vector<8x16xf32>
    %cst_144 = arith.constant dense<0xFF800000> : vector<8xf32>
    %440 = vector.multi_reduction <maximumf>, %439, %cst_144 [1] : vector<8x16xf32> to vector<8xf32>
    %441 = vector.shape_cast %440 : vector<8xf32> to vector<8x1xf32>
    %442 = vector.broadcast %441 : vector<8x1xf32> to vector<8x16xf32>
    %443 = arith.subf %439, %442 : vector<8x16xf32>
    %444 = math.exp %443 : vector<8x16xf32>
    %cst_145 = arith.constant dense<0.000000e+00> : vector<8xf32>
    %445 = vector.multi_reduction <add>, %444, %cst_145 [1] : vector<8x16xf32> to vector<8xf32>
    %446 = vector.shape_cast %445 : vector<8xf32> to vector<8x1xf32>
    %cst_146 = arith.constant dense<0.000000e+00> : vector<8x8xf32>
    %447 = tpu.matmul %444, %438, %cst_146 {dimension_numbers = #tpu.dot_dimension_numbers<[1], [0], [0], [1], [0, 0, 1, 1], [], []>} : vector<8x16xf32>, vector<16x8xf32>, vector<8x8xf32> -> vector<8x8xf32>
    %448 = tpu.reciprocal %446 : vector<8x1xf32> -> vector<8x1xf32>
    %449 = vector.broadcast %448 : vector<8x1xf32> to vector<8x8xf32>
    %450 = arith.mulf %447, %449 : vector<8x8xf32>
    %451 = arith.index_cast %308 : i32 to index
    %c56_147 = arith.constant 56 : index
    %452 = vector.load %arg13[%451, %c56_147] : memref<32x64xf32, #tpu.memory_space<vmem>>, vector<8x8xf32>
    tpu.vector_store %arg13[%451, %c56_147], %450 {strides = array<i32>} : memref<32x64xf32, #tpu.memory_space<vmem>>, vector<8x8xf32>,
    %c3_i32 = arith.constant 3 : i32
    %c8_i32_148 = arith.constant 8 : i32
    %453 = arith.muli %c3_i32, %c8_i32_148 : i32
    %454 = tpu.assume_multiple %453, 8 : i32
    %c16_i32_149 = arith.constant 16 : i32
    %455 = arith.muli %c3_i32, %c16_i32_149 : i32
    %456 = tpu.assume_multiple %455, 16 : i32
    %457 = arith.index_cast %454 : i32 to index
    %c0_150 = arith.constant 0 : index
    %458 = vector.load %arg10[%457, %c0_150] : memref<32x64xf32, #tpu.memory_space<vmem>>, vector<8x64xf32>
    %459 = arith.index_cast %456 : i32 to index
    %c0_151 = arith.constant 0 : index
    %460 = vector.load %arg11[%459, %c0_151] : memref<64x64xf32, #tpu.memory_space<vmem>>, vector<16x64xf32>
    %461 = arith.index_cast %456 : i32 to index
    %c0_152 = arith.constant 0 : index
    %462 = vector.load %arg12[%461, %c0_152] : memref<64x64xf32, #tpu.memory_space<vmem>>, vector<16x64xf32>
    %463 = vector.extract_strided_slice %458 {offsets = [0, 0], sizes = [8, 8], strides = [1, 1]} : vector<8x64xf32> to vector<8x8xf32>
    %464 = vector.extract_strided_slice %460 {offsets = [0, 0], sizes = [16, 8], strides = [1, 1]} : vector<16x64xf32> to vector<16x8xf32>
    %465 = vector.extract_strided_slice %462 {offsets = [0, 0], sizes = [16, 8], strides = [1, 1]} : vector<16x64xf32> to vector<16x8xf32>
    %cst_153 = arith.constant dense<0.000000e+00> : vector<8x16xf32>
    %466 = tpu.matmul %463, %464, %cst_153 {dimension_numbers = #tpu.dot_dimension_numbers<[1], [1], [0], [0], [0, 0, 1, 0], [], []>} : vector<8x8xf32>, vector<16x8xf32>, vector<8x16xf32> -> vector<8x16xf32>
    %cst_154 = arith.constant dense<0xFF800000> : vector<8xf32>
    %467 = vector.multi_reduction <maximumf>, %466, %cst_154 [1] : vector<8x16xf32> to vector<8xf32>
    %468 = vector.shape_cast %467 : vector<8xf32> to vector<8x1xf32>
    %469 = vector.broadcast %468 : vector<8x1xf32> to vector<8x16xf32>
    %470 = arith.subf %466, %469 : vector<8x16xf32>
    %471 = math.exp %470 : vector<8x16xf32>
    %cst_155 = arith.constant dense<0.000000e+00> : vector<8xf32>
    %472 = vector.multi_reduction <add>, %471, %cst_155 [1] : vector<8x16xf32> to vector<8xf32>
    %473 = vector.shape_cast %472 : vector<8xf32> to vector<8x1xf32>
    %cst_156 = arith.constant dense<0.000000e+00> : vector<8x8xf32>
    %474 = tpu.matmul %471, %465, %cst_156 {dimension_numbers = #tpu.dot_dimension_numbers<[1], [0], [0], [1], [0, 0, 1, 1], [], []>} : vector<8x16xf32>, vector<16x8xf32>, vector<8x8xf32> -> vector<8x8xf32>
    %475 = tpu.reciprocal %473 : vector<8x1xf32> -> vector<8x1xf32>
    %476 = vector.broadcast %475 : vector<8x1xf32> to vector<8x8xf32>
    %477 = arith.mulf %474, %476 : vector<8x8xf32>
    %478 = arith.index_cast %454 : i32 to index
    %c0_157 = arith.constant 0 : index
    %479 = vector.load %arg13[%478, %c0_157] : memref<32x64xf32, #tpu.memory_space<vmem>>, vector<8x8xf32>
    tpu.vector_store %arg13[%478, %c0_157], %477 {strides = array<i32>} : memref<32x64xf32, #tpu.memory_space<vmem>>, vector<8x8xf32>,
    %480 = vector.extract_strided_slice %458 {offsets = [0, 8], sizes = [8, 8], strides = [1, 1]} : vector<8x64xf32> to vector<8x8xf32>
    %481 = vector.extract_strided_slice %460 {offsets = [0, 8], sizes = [16, 8], strides = [1, 1]} : vector<16x64xf32> to vector<16x8xf32>
    %482 = vector.extract_strided_slice %462 {offsets = [0, 8], sizes = [16, 8], strides = [1, 1]} : vector<16x64xf32> to vector<16x8xf32>
    %cst_158 = arith.constant dense<0.000000e+00> : vector<8x16xf32>
    %483 = tpu.matmul %480, %481, %cst_158 {dimension_numbers = #tpu.dot_dimension_numbers<[1], [1], [0], [0], [0, 0, 1, 0], [], []>} : vector<8x8xf32>, vector<16x8xf32>, vector<8x16xf32> -> vector<8x16xf32>
    %cst_159 = arith.constant dense<0xFF800000> : vector<8xf32>
    %484 = vector.multi_reduction <maximumf>, %483, %cst_159 [1] : vector<8x16xf32> to vector<8xf32>
    %485 = vector.shape_cast %484 : vector<8xf32> to vector<8x1xf32>
    %486 = vector.broadcast %485 : vector<8x1xf32> to vector<8x16xf32>
    %487 = arith.subf %483, %486 : vector<8x16xf32>
    %488 = math.exp %487 : vector<8x16xf32>
    %cst_160 = arith.constant dense<0.000000e+00> : vector<8xf32>
    %489 = vector.multi_reduction <add>, %488, %cst_160 [1] : vector<8x16xf32> to vector<8xf32>
    %490 = vector.shape_cast %489 : vector<8xf32> to vector<8x1xf32>
    %cst_161 = arith.constant dense<0.000000e+00> : vector<8x8xf32>
    %491 = tpu.matmul %488, %482, %cst_161 {dimension_numbers = #tpu.dot_dimension_numbers<[1], [0], [0], [1], [0, 0, 1, 1], [], []>} : vector<8x16xf32>, vector<16x8xf32>, vector<8x8xf32> -> vector<8x8xf32>
    %492 = tpu.reciprocal %490 : vector<8x1xf32> -> vector<8x1xf32>
    %493 = vector.broadcast %492 : vector<8x1xf32> to vector<8x8xf32>
    %494 = arith.mulf %491, %493 : vector<8x8xf32>
    %495 = arith.index_cast %454 : i32 to index
    %c8_162 = arith.constant 8 : index
    %496 = vector.load %arg13[%495, %c8_162] : memref<32x64xf32, #tpu.memory_space<vmem>>, vector<8x8xf32>
    tpu.vector_store %arg13[%495, %c8_162], %494 {strides = array<i32>} : memref<32x64xf32, #tpu.memory_space<vmem>>, vector<8x8xf32>,
    %497 = vector.extract_strided_slice %458 {offsets = [0, 16], sizes = [8, 8], strides = [1, 1]} : vector<8x64xf32> to vector<8x8xf32>
    %498 = vector.extract_strided_slice %460 {offsets = [0, 16], sizes = [16, 8], strides = [1, 1]} : vector<16x64xf32> to vector<16x8xf32>
    %499 = vector.extract_strided_slice %462 {offsets = [0, 16], sizes = [16, 8], strides = [1, 1]} : vector<16x64xf32> to vector<16x8xf32>
    %cst_163 = arith.constant dense<0.000000e+00> : vector<8x16xf32>
    %500 = tpu.matmul %497, %498, %cst_163 {dimension_numbers = #tpu.dot_dimension_numbers<[1], [1], [0], [0], [0, 0, 1, 0], [], []>} : vector<8x8xf32>, vector<16x8xf32>, vector<8x16xf32> -> vector<8x16xf32>
    %cst_164 = arith.constant dense<0xFF800000> : vector<8xf32>
    %501 = vector.multi_reduction <maximumf>, %500, %cst_164 [1] : vector<8x16xf32> to vector<8xf32>
    %502 = vector.shape_cast %501 : vector<8xf32> to vector<8x1xf32>
    %503 = vector.broadcast %502 : vector<8x1xf32> to vector<8x16xf32>
    %504 = arith.subf %500, %503 : vector<8x16xf32>
    %505 = math.exp %504 : vector<8x16xf32>
    %cst_165 = arith.constant dense<0.000000e+00> : vector<8xf32>
    %506 = vector.multi_reduction <add>, %505, %cst_165 [1] : vector<8x16xf32> to vector<8xf32>
    %507 = vector.shape_cast %506 : vector<8xf32> to vector<8x1xf32>
    %cst_166 = arith.constant dense<0.000000e+00> : vector<8x8xf32>
    %508 = tpu.matmul %505, %499, %cst_166 {dimension_numbers = #tpu.dot_dimension_numbers<[1], [0], [0], [1], [0, 0, 1, 1], [], []>} : vector<8x16xf32>, vector<16x8xf32>, vector<8x8xf32> -> vector<8x8xf32>
    %509 = tpu.reciprocal %507 : vector<8x1xf32> -> vector<8x1xf32>
    %510 = vector.broadcast %509 : vector<8x1xf32> to vector<8x8xf32>
    %511 = arith.mulf %508, %510 : vector<8x8xf32>
    %512 = arith.index_cast %454 : i32 to index
    %c16_167 = arith.constant 16 : index
    %513 = vector.load %arg13[%512, %c16_167] : memref<32x64xf32, #tpu.memory_space<vmem>>, vector<8x8xf32>
    tpu.vector_store %arg13[%512, %c16_167], %511 {strides = array<i32>} : memref<32x64xf32, #tpu.memory_space<vmem>>, vector<8x8xf32>,
    %514 = vector.extract_strided_slice %458 {offsets = [0, 24], sizes = [8, 8], strides = [1, 1]} : vector<8x64xf32> to vector<8x8xf32>
    %515 = vector.extract_strided_slice %460 {offsets = [0, 24], sizes = [16, 8], strides = [1, 1]} : vector<16x64xf32> to vector<16x8xf32>
    %516 = vector.extract_strided_slice %462 {offsets = [0, 24], sizes = [16, 8], strides = [1, 1]} : vector<16x64xf32> to vector<16x8xf32>
    %cst_168 = arith.constant dense<0.000000e+00> : vector<8x16xf32>
    %517 = tpu.matmul %514, %515, %cst_168 {dimension_numbers = #tpu.dot_dimension_numbers<[1], [1], [0], [0], [0, 0, 1, 0], [], []>} : vector<8x8xf32>, vector<16x8xf32>, vector<8x16xf32> -> vector<8x16xf32>
    %cst_169 = arith.constant dense<0xFF800000> : vector<8xf32>
    %518 = vector.multi_reduction <maximumf>, %517, %cst_169 [1] : vector<8x16xf32> to vector<8xf32>
    %519 = vector.shape_cast %518 : vector<8xf32> to vector<8x1xf32>
    %520 = vector.broadcast %519 : vector<8x1xf32> to vector<8x16xf32>
    %521 = arith.subf %517, %520 : vector<8x16xf32>
    %522 = math.exp %521 : vector<8x16xf32>
    %cst_170 = arith.constant dense<0.000000e+00> : vector<8xf32>
    %523 = vector.multi_reduction <add>, %522, %cst_170 [1] : vector<8x16xf32> to vector<8xf32>
    %524 = vector.shape_cast %523 : vector<8xf32> to vector<8x1xf32>
    %cst_171 = arith.constant dense<0.000000e+00> : vector<8x8xf32>
    %525 = tpu.matmul %522, %516, %cst_171 {dimension_numbers = #tpu.dot_dimension_numbers<[1], [0], [0], [1], [0, 0, 1, 1], [], []>} : vector<8x16xf32>, vector<16x8xf32>, vector<8x8xf32> -> vector<8x8xf32>
    %526 = tpu.reciprocal %524 : vector<8x1xf32> -> vector<8x1xf32>
    %527 = vector.broadcast %526 : vector<8x1xf32> to vector<8x8xf32>
    %528 = arith.mulf %525, %527 : vector<8x8xf32>
    %529 = arith.index_cast %454 : i32 to index
    %c24_172 = arith.constant 24 : index
    %530 = vector.load %arg13[%529, %c24_172] : memref<32x64xf32, #tpu.memory_space<vmem>>, vector<8x8xf32>
    tpu.vector_store %arg13[%529, %c24_172], %528 {strides = array<i32>} : memref<32x64xf32, #tpu.memory_space<vmem>>, vector<8x8xf32>,
    %531 = vector.extract_strided_slice %458 {offsets = [0, 32], sizes = [8, 8], strides = [1, 1]} : vector<8x64xf32> to vector<8x8xf32>
    %532 = vector.extract_strided_slice %460 {offsets = [0, 32], sizes = [16, 8], strides = [1, 1]} : vector<16x64xf32> to vector<16x8xf32>
    %533 = vector.extract_strided_slice %462 {offsets = [0, 32], sizes = [16, 8], strides = [1, 1]} : vector<16x64xf32> to vector<16x8xf32>
    %cst_173 = arith.constant dense<0.000000e+00> : vector<8x16xf32>
    %534 = tpu.matmul %531, %532, %cst_173 {dimension_numbers = #tpu.dot_dimension_numbers<[1], [1], [0], [0], [0, 0, 1, 0], [], []>} : vector<8x8xf32>, vector<16x8xf32>, vector<8x16xf32> -> vector<8x16xf32>
    %cst_174 = arith.constant dense<0xFF800000> : vector<8xf32>
    %535 = vector.multi_reduction <maximumf>, %534, %cst_174 [1] : vector<8x16xf32> to vector<8xf32>
    %536 = vector.shape_cast %535 : vector<8xf32> to vector<8x1xf32>
    %537 = vector.broadcast %536 : vector<8x1xf32> to vector<8x16xf32>
    %538 = arith.subf %534, %537 : vector<8x16xf32>
    %539 = math.exp %538 : vector<8x16xf32>
    %cst_175 = arith.constant dense<0.000000e+00> : vector<8xf32>
    %540 = vector.multi_reduction <add>, %539, %cst_175 [1] : vector<8x16xf32> to vector<8xf32>
    %541 = vector.shape_cast %540 : vector<8xf32> to vector<8x1xf32>
    %cst_176 = arith.constant dense<0.000000e+00> : vector<8x8xf32>
    %542 = tpu.matmul %539, %533, %cst_176 {dimension_numbers = #tpu.dot_dimension_numbers<[1], [0], [0], [1], [0, 0, 1, 1], [], []>} : vector<8x16xf32>, vector<16x8xf32>, vector<8x8xf32> -> vector<8x8xf32>
    %543 = tpu.reciprocal %541 : vector<8x1xf32> -> vector<8x1xf32>
    %544 = vector.broadcast %543 : vector<8x1xf32> to vector<8x8xf32>
    %545 = arith.mulf %542, %544 : vector<8x8xf32>
    %546 = arith.index_cast %454 : i32 to index
    %c32_177 = arith.constant 32 : index
    %547 = vector.load %arg13[%546, %c32_177] : memref<32x64xf32, #tpu.memory_space<vmem>>, vector<8x8xf32>
    tpu.vector_store %arg13[%546, %c32_177], %545 {strides = array<i32>} : memref<32x64xf32, #tpu.memory_space<vmem>>, vector<8x8xf32>,
    %548 = vector.extract_strided_slice %458 {offsets = [0, 40], sizes = [8, 8], strides = [1, 1]} : vector<8x64xf32> to vector<8x8xf32>
    %549 = vector.extract_strided_slice %460 {offsets = [0, 40], sizes = [16, 8], strides = [1, 1]} : vector<16x64xf32> to vector<16x8xf32>
    %550 = vector.extract_strided_slice %462 {offsets = [0, 40], sizes = [16, 8], strides = [1, 1]} : vector<16x64xf32> to vector<16x8xf32>
    %cst_178 = arith.constant dense<0.000000e+00> : vector<8x16xf32>
    %551 = tpu.matmul %548, %549, %cst_178 {dimension_numbers = #tpu.dot_dimension_numbers<[1], [1], [0], [0], [0, 0, 1, 0], [], []>} : vector<8x8xf32>, vector<16x8xf32>, vector<8x16xf32> -> vector<8x16xf32>
    %cst_179 = arith.constant dense<0xFF800000> : vector<8xf32>
    %552 = vector.multi_reduction <maximumf>, %551, %cst_179 [1] : vector<8x16xf32> to vector<8xf32>
    %553 = vector.shape_cast %552 : vector<8xf32> to vector<8x1xf32>
    %554 = vector.broadcast %553 : vector<8x1xf32> to vector<8x16xf32>
    %555 = arith.subf %551, %554 : vector<8x16xf32>
    %556 = math.exp %555 : vector<8x16xf32>
    %cst_180 = arith.constant dense<0.000000e+00> : vector<8xf32>
    %557 = vector.multi_reduction <add>, %556, %cst_180 [1] : vector<8x16xf32> to vector<8xf32>
    %558 = vector.shape_cast %557 : vector<8xf32> to vector<8x1xf32>
    %cst_181 = arith.constant dense<0.000000e+00> : vector<8x8xf32>
    %559 = tpu.matmul %556, %550, %cst_181 {dimension_numbers = #tpu.dot_dimension_numbers<[1], [0], [0], [1], [0, 0, 1, 1], [], []>} : vector<8x16xf32>, vector<16x8xf32>, vector<8x8xf32> -> vector<8x8xf32>
    %560 = tpu.reciprocal %558 : vector<8x1xf32> -> vector<8x1xf32>
    %561 = vector.broadcast %560 : vector<8x1xf32> to vector<8x8xf32>
    %562 = arith.mulf %559, %561 : vector<8x8xf32>
    %563 = arith.index_cast %454 : i32 to index
    %c40_182 = arith.constant 40 : index
    %564 = vector.load %arg13[%563, %c40_182] : memref<32x64xf32, #tpu.memory_space<vmem>>, vector<8x8xf32>
    tpu.vector_store %arg13[%563, %c40_182], %562 {strides = array<i32>} : memref<32x64xf32, #tpu.memory_space<vmem>>, vector<8x8xf32>,
    %565 = vector.extract_strided_slice %458 {offsets = [0, 48], sizes = [8, 8], strides = [1, 1]} : vector<8x64xf32> to vector<8x8xf32>
    %566 = vector.extract_strided_slice %460 {offsets = [0, 48], sizes = [16, 8], strides = [1, 1]} : vector<16x64xf32> to vector<16x8xf32>
    %567 = vector.extract_strided_slice %462 {offsets = [0, 48], sizes = [16, 8], strides = [1, 1]} : vector<16x64xf32> to vector<16x8xf32>
    %cst_183 = arith.constant dense<0.000000e+00> : vector<8x16xf32>
    %568 = tpu.matmul %565, %566, %cst_183 {dimension_numbers = #tpu.dot_dimension_numbers<[1], [1], [0], [0], [0, 0, 1, 0], [], []>} : vector<8x8xf32>, vector<16x8xf32>, vector<8x16xf32> -> vector<8x16xf32>
    %cst_184 = arith.constant dense<0xFF800000> : vector<8xf32>
    %569 = vector.multi_reduction <maximumf>, %568, %cst_184 [1] : vector<8x16xf32> to vector<8xf32>
    %570 = vector.shape_cast %569 : vector<8xf32> to vector<8x1xf32>
    %571 = vector.broadcast %570 : vector<8x1xf32> to vector<8x16xf32>
    %572 = arith.subf %568, %571 : vector<8x16xf32>
    %573 = math.exp %572 : vector<8x16xf32>
    %cst_185 = arith.constant dense<0.000000e+00> : vector<8xf32>
    %574 = vector.multi_reduction <add>, %573, %cst_185 [1] : vector<8x16xf32> to vector<8xf32>
    %575 = vector.shape_cast %574 : vector<8xf32> to vector<8x1xf32>
    %cst_186 = arith.constant dense<0.000000e+00> : vector<8x8xf32>
    %576 = tpu.matmul %573, %567, %cst_186 {dimension_numbers = #tpu.dot_dimension_numbers<[1], [0], [0], [1], [0, 0, 1, 1], [], []>} : vector<8x16xf32>, vector<16x8xf32>, vector<8x8xf32> -> vector<8x8xf32>
    %577 = tpu.reciprocal %575 : vector<8x1xf32> -> vector<8x1xf32>
    %578 = vector.broadcast %577 : vector<8x1xf32> to vector<8x8xf32>
    %579 = arith.mulf %576, %578 : vector<8x8xf32>
    %580 = arith.index_cast %454 : i32 to index
    %c48_187 = arith.constant 48 : index
    %581 = vector.load %arg13[%580, %c48_187] : memref<32x64xf32, #tpu.memory_space<vmem>>, vector<8x8xf32>
    tpu.vector_store %arg13[%580, %c48_187], %579 {strides = array<i32>} : memref<32x64xf32, #tpu.memory_space<vmem>>, vector<8x8xf32>,
    %582 = vector.extract_strided_slice %458 {offsets = [0, 56], sizes = [8, 8], strides = [1, 1]} : vector<8x64xf32> to vector<8x8xf32>
    %583 = vector.extract_strided_slice %460 {offsets = [0, 56], sizes = [16, 8], strides = [1, 1]} : vector<16x64xf32> to vector<16x8xf32>
    %584 = vector.extract_strided_slice %462 {offsets = [0, 56], sizes = [16, 8], strides = [1, 1]} : vector<16x64xf32> to vector<16x8xf32>
    %cst_188 = arith.constant dense<0.000000e+00> : vector<8x16xf32>
    %585 = tpu.matmul %582, %583, %cst_188 {dimension_numbers = #tpu.dot_dimension_numbers<[1], [1], [0], [0], [0, 0, 1, 0], [], []>} : vector<8x8xf32>, vector<16x8xf32>, vector<8x16xf32> -> vector<8x16xf32>
    %cst_189 = arith.constant dense<0xFF800000> : vector<8xf32>
    %586 = vector.multi_reduction <maximumf>, %585, %cst_189 [1] : vector<8x16xf32> to vector<8xf32>
    %587 = vector.shape_cast %586 : vector<8xf32> to vector<8x1xf32>
    %588 = vector.broadcast %587 : vector<8x1xf32> to vector<8x16xf32>
    %589 = arith.subf %585, %588 : vector<8x16xf32>
    %590 = math.exp %589 : vector<8x16xf32>
    %cst_190 = arith.constant dense<0.000000e+00> : vector<8xf32>
    %591 = vector.multi_reduction <add>, %590, %cst_190 [1] : vector<8x16xf32> to vector<8xf32>
    %592 = vector.shape_cast %591 : vector<8xf32> to vector<8x1xf32>
    %cst_191 = arith.constant dense<0.000000e+00> : vector<8x8xf32>
    %593 = tpu.matmul %590, %584, %cst_191 {dimension_numbers = #tpu.dot_dimension_numbers<[1], [0], [0], [1], [0, 0, 1, 1], [], []>} : vector<8x16xf32>, vector<16x8xf32>, vector<8x8xf32> -> vector<8x8xf32>
    %594 = tpu.reciprocal %592 : vector<8x1xf32> -> vector<8x1xf32>
    %595 = vector.broadcast %594 : vector<8x1xf32> to vector<8x8xf32>
    %596 = arith.mulf %593, %595 : vector<8x8xf32>
    %597 = arith.index_cast %454 : i32 to index
    %c56_192 = arith.constant 56 : index
    %598 = vector.load %arg13[%597, %c56_192] : memref<32x64xf32, #tpu.memory_space<vmem>>, vector<8x8xf32>
    tpu.vector_store %arg13[%597, %c56_192], %596 {strides = array<i32>} : memref<32x64xf32, #tpu.memory_space<vmem>>, vector<8x8xf32>,
    %c4_i32 = arith.constant 4 : i32
    %c0_193 = arith.constant 0 : index
    %c0_194 = arith.constant 0 : index
    %599 = vector.load %arg13[%c0_193, %c0_194] : memref<32x64xf32, #tpu.memory_space<vmem>>, vector<32x64xf32>
    %c0_195 = arith.constant 0 : index
    %c0_196 = arith.constant 0 : index
    %600 = vector.load %arg7[%c0_195, %c0_196] : memref<64x64xf32, #tpu.memory_space<vmem>>, vector<64x64xf32>
    %cst_197 = arith.constant dense<0.000000e+00> : vector<32x64xf32>
    %601 = tpu.matmul %599, %600, %cst_197 {dimension_numbers = #tpu.dot_dimension_numbers<[1], [0], [0], [1], [0, 0, 1, 1], [], []>} : vector<32x64xf32>, vector<64x64xf32>, vector<32x64xf32> -> vector<32x64xf32>
    %c0_198 = arith.constant 0 : index
    %c0_199 = arith.constant 0 : index
    %602 = vector.load %arg8[%c0_198, %c0_199] : memref<1x64xf32, #tpu.memory_space<vmem>>, vector<1x64xf32>
    %603 = vector.broadcast %602 : vector<1x64xf32> to vector<32x64xf32>
    %604 = arith.addf %601, %603 : vector<32x64xf32>
    %605 = vector.shape_cast %604 : vector<32x64xf32> to vector<4x8x64xf32>
    %c0_200 = arith.constant 0 : index
    %c0_201 = arith.constant 0 : index
    %c0_202 = arith.constant 0 : index
    %606 = vector.load %arg9[%c0_200, %c0_201, %c0_202] : memref<4x8x64xf32, #tpu.memory_space<vmem>>, vector<4x8x64xf32>
    tpu.vector_store %arg9[%c0_200, %c0_201, %c0_202], %605 {strides = array<i32>} : memref<4x8x64xf32, #tpu.memory_space<vmem>>, vector<4x8x64xf32>,
    return
  }
  func.func @transform_0(%arg0: i32) -> (i32, i32, i32) {
    %c0_i32 = arith.constant 0 : i32
    %c0_i32_0 = arith.constant 0 : i32
    %c0_i32_1 = arith.constant 0 : i32
    return %arg0, %c0_i32, %c0_i32_0 : i32, i32, i32
  }
  func.func @transform_1(%arg0: i32) -> (i32, i32, i32) {
    %c0_i32 = arith.constant 0 : i32
    %c0_i32_0 = arith.constant 0 : i32
    %c0_i32_1 = arith.constant 0 : i32
    return %arg0, %c0_i32, %c0_i32_0 : i32, i32, i32
  }
  func.func @transform_2(%arg0: i32) -> (i32, i32, i32) {
    %c0_i32 = arith.constant 0 : i32
    %c0_i32_0 = arith.constant 0 : i32
    %c0_i32_1 = arith.constant 0 : i32
    return %arg0, %c0_i32, %c0_i32_0 : i32, i32, i32
  }
  func.func @transform_3(%arg0: i32) -> (i32, i32) {
    %c0_i32 = arith.constant 0 : i32
    %c0_i32_0 = arith.constant 0 : i32
    %c0_i32_1 = arith.constant 0 : i32
    return %c0_i32, %c0_i32_0 : i32, i32
  }
  func.func @transform_4(%arg0: i32) -> (i32, i32) {
    %c0_i32 = arith.constant 0 : i32
    %c0_i32_0 = arith.constant 0 : i32
    %c0_i32_1 = arith.constant 0 : i32
    return %c0_i32, %c0_i32_0 : i32, i32
  }
  func.func @transform_5(%arg0: i32) -> (i32, i32) {
    %c0_i32 = arith.constant 0 : i32
    %c0_i32_0 = arith.constant 0 : i32
    %c0_i32_1 = arith.constant 0 : i32
    return %c0_i32, %c0_i32_0 : i32, i32
  }
  func.func @transform_6(%arg0: i32) -> (i32, i32) {
    %c0_i32 = arith.constant 0 : i32
    %c0_i32_0 = arith.constant 0 : i32
    %c0_i32_1 = arith.constant 0 : i32
    return %c0_i32, %c0_i32_0 : i32, i32
  }
  func.func @transform_7(%arg0: i32) -> (i32, i32) {
    %c0_i32 = arith.constant 0 : i32
    %c0_i32_0 = arith.constant 0 : i32
    %c0_i32_1 = arith.constant 0 : i32
    return %c0_i32, %c0_i32_0 : i32, i32
  }
  func.func @transform_8(%arg0: i32) -> (i32, i32, i32) {
    %c0_i32 = arith.constant 0 : i32
    %c0_i32_0 = arith.constant 0 : i32
    %c0_i32_1 = arith.constant 0 : i32
    return %arg0, %c0_i32, %c0_i32_0 : i32, i32, i32
  }
}

</mosaic_0001>

<bundles_post_ra>
// kernel: tpu_custom_call.1
= control target key start
LH: loop header
LB: loop body
LE: loop exit
PB: predicated region body
PF: predicated region fallthrough
CT: control target
= control target key end

     0   :  { %s10386_s0 = inlined_call_operand.hbm [shape: f32[8,8,64], index: 0, kind: input, shape index: {}]   ;;  %s10387_s1 = inlined_call_operand.hbm [shape: f32[8,16,64], index: 1, kind: input, shape index: {}]   ;;  %s10388_s2 = inlined_call_operand.hbm [shape: f32[8,16,64], index: 2, kind: input, shape index: {}]   ;;  %s10389_s3 = inlined_call_operand.hbm [shape: f32[64,64], index: 3, kind: input, shape index: {}]   ;;  %s10390_s4 = inlined_call_operand.hbm [shape: f32[64,64], index: 4, kind: input, shape index: {}]   ;;  %s10391_s5 = inlined_call_operand.hbm [shape: f32[64,64], index: 5, kind: input, shape index: {}]   ;;  %s10392_s6 = inlined_call_operand.hbm [shape: f32[64,64], index: 6, kind: input, shape index: {}]   ;;  %s10393_s7 = inlined_call_operand.vmem [shape: f32[1,64], index: 7, kind: input, shape index: {}]   ;;  %s10394_s8 = inlined_call_operand.hbm [shape: f32[8,8,64], index: 8, kind: output, shape index: {}]  }
   0x1   :  { %10422 = sst [smem:[#allocation41_spill]] %s10387_s1 }
   0x2   :  { %10423 = sst [smem:[#allocation42_spill]] %s10389_s3 }
   0x3   :  { %10424 = sst [smem:[#allocation43_spill]] %s10391_s5 }
   0x4   :  { %10425 = sst [smem:[#allocation44_spill]] %s10393_s7 }
   0x5   :  { %10426 = sst [smem:[#allocation45_spill]] %s10394_s8 }
   0x6   :  { %13 = vsyncpa [#allocation7], 0 }
   0x7   :  { %15 = vsyncpa [#allocation7 + $0x1], 0 }
   0x8   :  { %16 = vsyncpa [#allocation10], 0 }
   0x9   :  { %18 = vsyncpa [#allocation10 + $0x1], 0 }
   0xa   :  { %19 = vsyncpa [#allocation13], 0 }
   0xb   :  { %20 = vsyncpa [#allocation16], 0 }
   0xc   :  { %21 = vsyncpa [#allocation8], 0 }
   0xd   :  { %23 = vsyncpa [#allocation8 + $0x1], 0  ;;  %s8993_s27 = smov 0   ;;  %s8995_s28 = smov 0  }
   0xe   :  { %s8997_s29 = smov 0   ;;  %s8999_s30 = smov 0  }
   0xf LB: > { %10427 = sst [smem:[#allocation24_spill]] %s8906_s27  ;;  %s9014_s9 = sadd.s32 4294967295, %s8918_s30   ;;  %s8918_s30 = sphi %s8999_s30, %s10492_s30   ;;  %s8914_s29 = sphi %s8997_s29, %s10494_s29   ;;  %s8910_s28 = sphi %s8995_s28, %s10496_s28   ;;  %s8906_s27 = sphi %s8993_s27, %s10495_s27  }
  0x10   : > { %10428 = sst [smem:[#allocation25_spill]] %s8914_s29  ;;  %s6834_s10 = sadd.s32 4294967294, %s8918_s30  }
  0x11   : > { %p49_p0 = scmp.ne.s32.totalorder %s8910_s28, %s8906_s27  ;;  %p10395_p1 = scmp.eq.s32.totalorder %s9014_s9, 0 }
  0x12   : > { %p236_p3 = scmp.eq.s32.totalorder %s6834_s10, 1  ;;  %p6835_p5 = scmp.ge.s32.totalorder %s8918_s30, 1 }
  0x13   : > { %p9023_p4 = por %p10395_p1, %p49_p0  ;;  %p243_p7 = scmp.lt.s32.totalorder %s8918_s30, 3 }
  0x14   : > { %p9028_p6 = por %p236_p3, %p49_p0  ;;  %s8920_s14 = smov [#allocation12]  }
  0x15   : > { %s10429_s11 = scalar_select %p9023_p4, 1, 0 }
  0x16   : > { %s10430_s12 = scalar_select %p9028_p6, 1, 0 }
  0x17   : > { %p9033_p8 = pnand %p6835_p5, %p243_p7  ;;  %s255_s15 = sshll.u32 %s8920_s14, 4  ;;  %s9037_s15 = int_to_ptr.vmem [resolvable:$true] %s255_s15 }
  0x18   : > { %10431 = sst [smem:[#allocation26_spill]] %s10430_s12  ;;  %s8921_s17 = smov [#allocation15]  }
  0x19   : > { %s10432_s13 = scalar_select %p9033_p8, 1, 0 }
  0x1a   : > { %p8133_p9 = pneg %p9033_p8  ;;  %s281_s18 = sshll.u32 %s8921_s17, 4  ;;  %s9048_s18 = int_to_ptr.vmem [resolvable:$true] %s281_s18 }
  0x1b   : > { %s10434_s3 = sld [smem:[#allocation42_spill]] }
  0x1c   : > { %p9044_p11 = pnand %p8133_p9, %p10395_p1 }
  0x1e   : > { %s10433_s16 = scalar_select %p9044_p11, 1, 0 }
  0x1f   : > { %p9058_p13 = pneg %p9044_p11 }
  0x21   : > { %s8638_s21 = scalar_lea.hbm %s10434_s3, 1024 }
  0x22   : > { %p8639_p12 = scmp.ne.s32.totalorder %s10434_s3, %s8638_s21  ;;  %p8645_p5 = scmp.lt.u32.totalorder %s8638_s21, %s10434_s3 }
  0x23   : > { %s10435_s24 = scalar_select %p9058_p13, 1, 0 }
  0x24   : > { %p8641_p0 = pnand %p9058_p13, %p8639_p12 }
  0x26   : > { %p8642_p3 = pneg %p8641_p0 }
  0x28   : > { %p8647_p7 = pnand %p8645_p5, %p8642_p3 }
  0x2a   : > { %8650 = shalt.err (!%p8647_p7)
}
  0x2b   : > { %s8651_s10 = scalar_lea.vmem %s9037_s15, 1024  ;;  %p8659_p2 = scmp.lt.s32.totalorder %s9037_s15, %s9037_s15 }
  0x2c   : > { %p8652_p9 = scmp.ne.s32.totalorder %s9037_s15, %s8651_s10  ;;  %p8660_p6 = scmp.lt.s32.totalorder %s8651_s10, %s8651_s10 }
  0x2e   : > { %p8654_p10 = pnand %p8652_p9, %p9058_p13  ;;  %p8661_p12 = por %p8660_p6, %p8659_p2 }
  0x30   : > { %p8655_p1 = pneg %p8654_p10 }
  0x32   : > { %p8662_p0 = pnand %p8661_p12, %p8655_p1 }
  0x34   : > { %8665 = shalt.err (!%p8662_p0)
}
  0x35   : > { %s10397_s14 = smov 128   ;;  %s10399_s17 = smov 8  }
  0x36   : > { %8136 = dma.hbm_to_vmem [thread:$0]  (!%p9044_p11), %s10434_s3, 1024, %s9037_s15, [#allocation13], %s10397_s14, %s10397_s14, %s10399_s17  }
  0x37   : > { %s10436_s5 = sld [smem:[#allocation43_spill]] }
  0x3d   : > { %s8666_s23 = scalar_lea.hbm %s10436_s5, 1024 }
  0x3e   : > { %p8667_p1 = scmp.ne.s32.totalorder %s10436_s5, %s8666_s23  ;;  %p8673_p10 = scmp.lt.u32.totalorder %s8666_s23, %s10436_s5 }
  0x40   : > { %p8669_p2 = pnand %p8667_p1, %p9058_p13 }
  0x42   : > { %p8670_p6 = pneg %p8669_p2 }
  0x44   : > { %p8675_p3 = pnand %p8673_p10, %p8670_p6 }
  0x46   : > { %8678 = shalt.err (!%p8675_p3)
}
  0x47   : > { %s8679_s15 = scalar_lea.vmem %s9048_s18, 1024  ;;  %p8687_p12 = scmp.lt.s32.totalorder %s9048_s18, %s9048_s18 }
  0x48   : > { %p8680_p5 = scmp.ne.s32.totalorder %s9048_s18, %s8679_s15  ;;  %p8688_p0 = scmp.lt.s32.totalorder %s8679_s15, %s8679_s15 }
  0x4a   : > { %p8682_p7 = pnand %p8680_p5, %p9058_p13  ;;  %p8689_p1 = por %p8688_p0, %p8687_p12 }
  0x4c   : > { %p8683_p9 = pneg %p8682_p7 }
  0x4e   : > { %p8690_p2 = pnand %p8689_p1, %p8683_p9 }
  0x50   : > { %8693 = shalt.err (!%p8690_p2)
}
  0x51   : > { %8142 = dma.hbm_to_vmem [thread:$0]  (!%p9044_p11), %s10436_s5, 1024, %s9048_s18, [#allocation16], %s10397_s14, %s10397_s14, %s10399_s17  }
  0x52   : > { %s9109_s20 = sadd.s32 1, %s8918_s30   ;;  %s36_s21 = sadd.s32 1, %s8914_s29 }
  0x53   : > { %10437 = sst [smem:[#allocation27_spill]] %s9109_s20  ;;  %s33_s22 = ssub.s32 %s8918_s30, %s9109_s20 }
  0x54   : > { %p43_p6 = scmp.ne.s32.totalorder %s8914_s29, %s8910_s28  ;;  %p34_p10 = scmp.eq.s32.totalorder %s33_s22, 0 }
  0x55   : > { %p44_p3 = scmp.eq.s32.totalorder %s8918_s30, 0  ;;  %p10438_p5 = scmp.eq.s32.totalorder %s9014_s9, 1 }
  0x56   : > { %p8164_p9 = scmp.lt.s32.totalorder %s8918_s30, 2  ;;  %s9128_s26 = sand.u32 1, %s8914_s29  }
  0x57   : > { %p9119_p7 = por %p10438_p5, %p43_p6  ;;  %p45_p12 = por %p44_p3, %p43_p6 }
  0x58   : > { %s9125_s25 = scalar_select %p34_p10, %s8914_s29, %s36_s21  }
  0x59   : > { %s10439_s23 = scalar_select %p9119_p7, 1, 0 }
  0x5a   : > { %10441 = sst [smem:[#allocation29_spill]] %s9125_s25  ;;  %s332_s18 = sand.u32 1, %s8918_s30  }
  0x5b   : > { %10440 = sst [smem:[#allocation28_spill]] %s10439_s23  ;;  %s10404_s10 = sshll.u32 %s9128_s26, 6 }
  0x5c   : > { %p9132_p0 = pnand %p8164_p9, %p45_p12  ;;  %s7021_s12 = sshll.u32 %s8918_s30, 10 }
  0x5d   : > { %s10443_s1 = sld [smem:[#allocation41_spill]]  ;;  %s336_s21 = scalar_lea.vmem [#allocation9], %s10404_s10 }
  0x5e   : > { %s10442_s15 = scalar_select %p9132_p0, 1, 0 }
  0x5f   : > { %s344_s17 = sshll.u32 %s336_s21, 4  ;;  %s9149_s25 = scalar_lea.hbm %s10388_s2, %s7021_s12  ;;  %s9144_s17 = int_to_ptr.vmem [resolvable:$true] %s344_s17 }
  0x60   : > { %s9151_s29 = scalar_lea.sflag [#allocation10], %s332_s18  ;;  %p9157_p2 = pneg %p9132_p0 }
  0x62   : > { %s10444_s19 = scalar_select %p9157_p2, 1, 0 }
  0x63   : > { %s9140_s14 = scalar_lea.hbm %s10443_s1, %s7021_s12  ;;  %s8699_s10 = scalar_lea.hbm %s10443_s1, 2048 }
  0x64   : > { %s8694_s20 = scalar_lea.hbm %s9140_s14, 1024  ;;  %p8700_p3 = scmp.lt.u32.totalorder %s9140_s14, %s10443_s1 }
  0x65   : > { %p8695_p1 = scmp.ne.s32.totalorder %s9140_s14, %s8694_s20  ;;  %p8701_p5 = scmp.lt.u32.totalorder %s8699_s10, %s8694_s20 }
  0x66   : > { %p8703_p12 = scmp.lt.u32.totalorder %s8694_s20, %s9140_s14 }
  0x67   : > { %p8697_p6 = pnand %p9157_p2, %p8695_p1  ;;  %p8702_p9 = por %p8701_p5, %p8700_p3 }
  0x69   : > { %p8698_p10 = pneg %p8697_p6  ;;  %p8704_p7 = por %p8703_p12, %p8702_p9 }
  0x6b   : > { %p8705_p4 = pnand %p8704_p7, %p8698_p10 }
  0x6d   : > { %8708 = shalt.err (!%p8705_p4)
}
  0x6e   : > { %s8709_s18 = scalar_lea.vmem %s9144_s17, 1024  ;;  %s8924_s12 = smov [#allocation9]  }
  0x6f   : > { %p8710_p1 = scmp.ne.s32.totalorder %s9144_s17, %s8709_s18  ;;  %s8714_s22 = sshll.u32 %s8924_s12, 4  ;;  %s8715_s22 = int_to_ptr.vmem [resolvable:$false] %s8714_s22 }
  0x70   : > { %s8716_s21 = scalar_lea.vmem %s8715_s22, 2048  ;;  %p8717_p11 = scmp.lt.s32.totalorder %s9144_s17, %s8715_s22 }
  0x71   : > { %p8712_p6 = pnand %p8710_p1, %p9157_p2  ;;  %p8718_p13 = scmp.lt.s32.totalorder %s8716_s21, %s8709_s18 }
  0x73   : > { %p8713_p8 = pneg %p8712_p6  ;;  %p8719_p3 = por %p8718_p13, %p8717_p11 }
  0x75   : > { %p8720_p5 = pnand %p8719_p3, %p8713_p8 }
  0x77   : > { %8723 = shalt.err (!%p8720_p5)
}
  0x78   : > { %s10445_s20 = smov 8   ;;  %s10446_s10 = smov 128  }
  0x79   : > { %8152 = dma.hbm_to_vmem [thread:$0]  (!%p9132_p0), %s9140_s14, 1024, %s9144_s17, %s9151_s29, %s10446_s10, %s10446_s10, %s10445_s20  }
  0x7a   : > { %s10447_s3 = sshll.u32 %s9128_s26, 6  ;;  %s8925_s18 = smov [#allocation14]  }
  0x7b   : > { %s358_s5 = scalar_lea.vmem [#allocation11], %s10447_s3  ;;  %s268_s22 = sshll.u32 %s8925_s18, 4  ;;  %s269_s22 = int_to_ptr.vmem [resolvable:$true] %s268_s22 }
  0x7c   : > { %s366_s12 = sshll.u32 %s358_s5, 4  ;;  %s8724_s27 = scalar_lea.hbm %s10390_s4, 1024  ;;  %s9186_s12 = int_to_ptr.vmem [resolvable:$true] %s366_s12 }
  0x7d   : > { %p8725_p4 = scmp.ne.s32.totalorder %s10390_s4, %s8724_s27  ;;  %p10448_p8 = scmp.ne.s32.totalorder %s10435_s24, 0 }
  0x7e   : > { %p8731_p7 = scmp.lt.u32.totalorder %s8724_s27, %s10390_s4 }
  0x7f   : > { %p8727_p11 = pnand %p8725_p4, %p10448_p8 }
  0x81   : > { %p8728_p13 = pneg %p8727_p11 }
  0x83   : > { %p8733_p10 = pnand %p8731_p7, %p8728_p13 }
  0x85   : > { %8736 = shalt.err (!%p8733_p10)
}
  0x86   : > { %s8737_s3 = scalar_lea.vmem %s269_s22, 1024  ;;  %p8745_p6 = scmp.lt.s32.totalorder %s269_s22, %s269_s22 }
  0x87   : > { %p8738_p9 = scmp.ne.s32.totalorder %s269_s22, %s8737_s3  ;;  %p8746_p3 = scmp.lt.s32.totalorder %s8737_s3, %s8737_s3 }
  0x89   : > { %p8740_p12 = pnand %p8738_p9, %p10448_p8  ;;  %p8747_p5 = por %p8746_p3, %p8745_p6 }
  0x8b   : > { %p8741_p1 = pneg %p8740_p12 }
  0x8d   : > { %p8748_p0 = pnand %p8747_p5, %p8741_p1 }
  0x8f   : > { %8751 = shalt.err (!%p8748_p0)
}
  0x90   : > { %p10449_p4 = scmp.ne.s32.totalorder %s10433_s16, 0  ;;  %s8926_s27 = smov [#allocation17]  }
  0x91   : > { %s294_s23 = sshll.u32 %s8926_s27, 4  ;;  %s6841_s5 = sshll.u32 %s9128_s26, 5  ;;  %s295_s23 = int_to_ptr.vmem [resolvable:$true] %s294_s23 }
  0x92   : > { %8139 = dma.hbm_to_vmem [thread:$0]  (!%p10449_p4), %s10390_s4, 1024, %s269_s22, [#allocation13], %s10446_s10, %s10446_s10, %s10445_s20  }
  0x93   : > { %s8752_s14 = scalar_lea.hbm %s10392_s6, 1024 }
  0x94   : > { %p8753_p0 = scmp.ne.s32.totalorder %s10392_s6, %s8752_s14  ;;  %p8759_p7 = scmp.lt.u32.totalorder %s8752_s14, %s10392_s6 }
  0x96   : > { %p8755_p11 = pnand %p8753_p0, %p10448_p8 }
  0x98   : > { %p8756_p13 = pneg %p8755_p11 }
  0x9a   : > { %p8761_p10 = pnand %p8759_p7, %p8756_p13 }
  0x9c   : > { %8764 = shalt.err (!%p8761_p10)
}
  0x9d   : > { %s8765_s22 = scalar_lea.vmem %s295_s23, 1024  ;;  %p8773_p6 = scmp.lt.s32.totalorder %s295_s23, %s295_s23 }
  0x9e   : > { %p8766_p9 = scmp.ne.s32.totalorder %s295_s23, %s8765_s22  ;;  %p8774_p3 = scmp.lt.s32.totalorder %s8765_s22, %s8765_s22 }
  0xa0   : > { %p8768_p12 = pnand %p8766_p9, %p10448_p8  ;;  %p8775_p5 = por %p8774_p3, %p8773_p6 }
  0xa2   : > { %p8769_p1 = pneg %p8768_p12 }
  0xa4   : > { %p8776_p2 = pnand %p8775_p5, %p8769_p1 }
  0xa6   : > { %8779 = shalt.err (!%p8776_p2)
}
  0xa7   : > { %8145 = dma.hbm_to_vmem [thread:$0]  (!%p10449_p4), %s10392_s6, 1024, %s295_s23, [#allocation16], %s10446_s10, %s10446_s10, %s10445_s20  }
  0xa8   : > { %s7019_s24 = sshll.u32 %s8918_s30, 9  ;;  %s315_s16 = scalar_lea.vmem [#allocation6], %s6841_s5 }
  0xa9   : > { %s9235_s21 = scalar_lea.hbm %s10386_s0, %s7019_s24  ;;  %s322_s14 = sshll.u32 %s315_s16, 4  ;;  %s9237_s14 = int_to_ptr.vmem [resolvable:$true] %s322_s14 }
  0xaa   : > { %s312_s17 = scalar_lea.sflag [#allocation7], %s9128_s26  ;;  %s8780_s3 = scalar_lea.hbm %s9235_s21, 512 }
  0xab   : > { %p8781_p2 = scmp.ne.s32.totalorder %s9235_s21, %s8780_s3  ;;  %p10450_p8 = scmp.ne.s32.totalorder %s10444_s19, 0 }
  0xac   : > { %s8785_s22 = scalar_lea.hbm %s10386_s0, 1024  ;;  %p8786_p11 = scmp.lt.u32.totalorder %s9235_s21, %s10386_s0 }
  0xad   : > { %p8783_p0 = pnand %p8781_p2, %p10450_p8  ;;  %p8787_p13 = scmp.lt.u32.totalorder %s8785_s22, %s8780_s3 }
  0xae   : > { %p8789_p10 = scmp.lt.u32.totalorder %s8780_s3, %s9235_s21 }
  0xaf   : > { %p8784_p4 = pneg %p8783_p0  ;;  %p8788_p7 = por %p8787_p13, %p8786_p11 }
  0xb1   : > { %p8790_p9 = por %p8789_p10, %p8788_p7 }
  0xb3   : > { %p8791_p12 = pnand %p8790_p9, %p8784_p4 }
  0xb5   : > { %8794 = shalt.err (!%p8791_p12)
}
  0xb6   : > { %s8795_s5 = scalar_lea.vmem %s9237_s14, 512  ;;  %s8927_s24 = smov [#allocation6]  }
  0xb7   : > { %p8796_p1 = scmp.ne.s32.totalorder %s9237_s14, %s8795_s5  ;;  %s8800_s27 = sshll.u32 %s8927_s24, 4  ;;  %s8801_s27 = int_to_ptr.vmem [resolvable:$false] %s8800_s27 }
  0xb8   : > { %s8802_s18 = scalar_lea.vmem %s8801_s27, 1024  ;;  %p8803_p5 = scmp.lt.s32.totalorder %s9237_s14, %s8801_s27 }
  0xb9   : > { %p8798_p6 = pnand %p8796_p1, %p10450_p8  ;;  %p8804_p2 = scmp.lt.s32.totalorder %s8802_s18, %s8795_s5 }
  0xbb   : > { %p8799_p3 = pneg %p8798_p6  ;;  %p8805_p0 = por %p8804_p2, %p8803_p5 }
  0xbd   : > { %p8806_p11 = pnand %p8805_p0, %p8799_p3 }
  0xbf   : > { %8809 = shalt.err (!%p8806_p11)
}
  0xc0   : > { %p10451_p4 = scmp.ne.s32.totalorder %s10442_s15, 0  ;;  %s8810_s16 = scalar_lea.hbm %s9149_s25, 1024 }
  0xc1   : > { %p8811_p13 = scmp.ne.s32.totalorder %s9149_s25, %s8810_s16  ;;  %s8815_s1 = scalar_lea.hbm %s10388_s2, 2048 }
  0xc2   : > { %8149 = dma.hbm_to_vmem [thread:$0]  (!%p10451_p4), %s9235_s21, 512, %s9237_s14, %s312_s17, %s10446_s10, %s10446_s10, %s10445_s20  }
  0xc3   : > { %p8813_p7 = pnand %p8811_p13, %p10450_p8  ;;  %p8816_p9 = scmp.lt.u32.totalorder %s9149_s25, %s10388_s2 }
  0xc4   : > { %p8817_p12 = scmp.lt.u32.totalorder %s8815_s1, %s8810_s16  ;;  %p8819_p6 = scmp.lt.u32.totalorder %s8810_s16, %s9149_s25 }
  0xc5   : > { %p8814_p10 = pneg %p8813_p7 }
  0xc6   : > { %p8818_p1 = por %p8817_p12, %p8816_p9 }
  0xc8   : > { %p8820_p3 = por %p8819_p6, %p8818_p1 }
  0xca   : > { %p8821_p5 = pnand %p8820_p3, %p8814_p10 }
  0xcc   : > { %8824 = shalt.err (!%p8821_p5)
}
  0xcd   : > { %s8825_s26 = scalar_lea.vmem %s9186_s12, 1024  ;;  %s8928_s21 = smov [#allocation11]  }
  0xce   : > { %p8826_p2 = scmp.ne.s32.totalorder %s9186_s12, %s8825_s26  ;;  %s8830_s14 = sshll.u32 %s8928_s21, 4  ;;  %s8831_s14 = int_to_ptr.vmem [resolvable:$false] %s8830_s14 }
  0xcf   : > { %s8832_s17 = scalar_lea.vmem %s8831_s14, 2048  ;;  %p8833_p13 = scmp.lt.s32.totalorder %s9186_s12, %s8831_s14 }
  0xd0   : > { %p8828_p0 = pnand %p8826_p2, %p10450_p8  ;;  %p8834_p7 = scmp.lt.s32.totalorder %s8832_s17, %s8825_s26 }
  0xd2   : > { %p8829_p11 = pneg %p8828_p0  ;;  %p8835_p9 = por %p8834_p7, %p8833_p13 }
  0xd4   : > { %p8836_p12 = pnand %p8835_p9, %p8829_p11 }
  0xd6   : > { %8839 = shalt.err (!%p8836_p12)
}
  0xd7   : > { %8155 = dma.hbm_to_vmem [thread:$0]  (!%p10451_p4), %s9149_s25, 1024, %s9186_s12, %s9151_s29, %s10446_s10, %s10446_s10, %s10445_s20  }
  0xd8   : > { %p10452_p8 = scmp.ne.s32.totalorder %s10432_s13, 0 }
  0xda   : > { %378 = sbr.rel (%p10452_p8) target bundleno = 12767 (0x31df), region = 52 }
  0xe1   : > { %s9294_s19 = sand.u32 1, %s8910_s28   ;;  %p10453_p10 = scmp.ne.s32.totalorder %s10429_s11, 0 }
  0xe2   : > { %s6853_s8 = sshll.u32 %s9294_s19, 5  ;;  %s381_s5 = scalar_lea.sflag [#allocation7], %s9294_s19 }
  0xe3   : > { %s9300_s15 = scalar_lea.vmem [#allocation6], %s6853_s8 }
  0xe4   : > { %8885 = dma.done.wait (%p10453_p10), %s381_s5, 512  }
  0xe5   : > { %8887 = vsyncadd (%p10453_p10), %s381_s5, 4294966784  ;;  %s389_s29 = sand.u32 1, %s9014_s9   ;;  %s6854_s13 = sshll.u32 %s9294_s19, 6 }
  0xe6   : > { %s390_s25 = scalar_lea.sflag [#allocation10], %s389_s29  ;;  %s9308_s20 = scalar_lea.vmem [#allocation9], %s6854_s13 }
  0xe7   : > { %8889 = dma.done.wait (%p10453_p10), %s390_s25, 2048  }
  0xe8   : > { %8891 = vsyncadd (%p10453_p10), %s390_s25, 4294965248  ;;  %s9314_s10 = scalar_lea.vmem [#allocation11], %s6854_s13  ;;  %p10454_p4 = scmp.eq.s32.totalorder %s9014_s9, 0 }
  0xea   : > { %8893 = dma.done.wait (%p10454_p4), [#allocation13], 2048   ;;  %p10455_p1 = pmov %p10454_p4 }
  0xec   : > { %8895 = vsyncadd (%p10455_p1), [#allocation13], 4294965248  ;;  %p10456_p6 = pmov %p10455_p1 }
  0xed   : > { %p10457_p3 = pmov %p10455_p1 }
  0xee   : > { %8897 = dma.done.wait (%p10456_p6), [#allocation16], 2048  }
  0xef   : > { %8899 = vsyncadd (%p10457_p3), [#allocation16], 4294965248  ;;  %v469_v0 = vld [vmem:[#allocation12] sm:$0xff]  ;;  %v470_v1 = vld [vmem:[#allocation12 + $0x8] sm:$0xff]  ;;  %vm477_vm0 = vcmask 523264   ;;  %v8929_v32 = vmov 0.0|0.0  }
  0xf0   : > { %v595_v2 = vld [vmem:[#allocation14] sm:$0xff]  ;;  %v7821_v3 = vpack.c.bf16 %v470_v1, %v469_v0  ;;  %v596_v4 = vld [vmem:[#allocation14 + $0x8] sm:$0xff]  ;;  %v471_v5 = vld [vmem:[#allocation12 + $0x10] sm:$0xff]  ;;  %vm8930_vm1 = vmmov 0   ;;  %v10420_v35 = vmov 0.0   ;;  %vm890_vm2 = vcmask 64512  }
  0xf1   : > { %v472_v6 = vld [vmem:[#allocation12 + $0x18] sm:$0xff]  ;;  %v7837_v7 = vpack.c.bf16 %v596_v4, %v595_v2  ;;  %v597_v9 = vld [vmem:[#allocation14 + $0x10] sm:$0xff]  ;;  %v473_v11 = vld [vmem:[#allocation12 + $0x20] sm:$0xff]  ;;  %s8932_s11 = smov 120   ;;  %s8933_s12 = smov 112   ;;  %vm970_vm4 = vcmask 130048  }
  0xf2   : > { %v7825_v8 = vpack.c.bf16 %v472_v6, %v471_v5  ;;  %v598_v10 = vld [vmem:[#allocation14 + $0x18] sm:$0xff]  ;;  %7822 = vmatprep.subr.bf16.mxu0 %v7821_v3  ;;  %v474_v13 = vld [vmem:[#allocation12 + $0x28] sm:$0xff]  ;;  %v599_v14 = vld [vmem:[#allocation14 + $0x20] sm:$0xff]  ;;  %s8934_s24 = smov 104   ;;  %s8935_s27 = smov 96   ;;  %vm1234_vm5 = vcmask 130112  }
  0xf3   : > { %v7841_v12 = vpack.c.bf16 %v598_v10, %v597_v9  ;;  %v600_v15 = vld [vmem:[#allocation14 + $0x28] sm:$0xff]  ;;  %7838 = vmatprep.subr.bf16.mxu1 %v7837_v7  ;;  %7824 = vmatpush3.bf16.msra.mxu0 %v7821_v3  ;;  %v7829_v16 = vpack.c.bf16 %v474_v13, %v473_v11  ;;  %v465_v17 = vld [vmem:[%s9300_s15] sm:$0xff]  ;;  %v475_v20 = vld [vmem:[#allocation12 + $0x30] sm:$0xff]  ;;  %s8936_s18 = smov 88   ;;  %s8937_s16 = smov 80   ;;  %vm1412_vm6 = vcmask 195712  }
  0xf4   : > { %7840 = vmatpush3.bf16.msra.mxu1 %v7837_v7  ;;  %7826 = vmatprep.subr.bf16.mxu0 %v7825_v8  ;;  %v579_v18 = vld [vmem:[%s9308_s20] sm:$0xff]  ;;  %v7845_v19 = vpack.c.bf16 %v600_v15, %v599_v14  ;;  %v476_v21 = vld [vmem:[#allocation12 + $0x38] sm:$0xff]  ;;  %v601_v22 = vld [vmem:[#allocation14 + $0x30] sm:$0xff]  ;;  %s8938_s3 = smov 72   ;;  %s8939_s23 = smov 16   ;;  %vm1590_vm7 = vcmask 261312  }
  0xf5   : > { %7842 = vmatprep.subr.bf16.mxu1 %v7841_v12  ;;  %7289 = vmatprep.mubr.msk.f32.mxu0 %vm477_vm0, %v465_v17  ;;  %v602_v23 = vld [vmem:[#allocation14 + $0x38] sm:$0xff]  ;;  %v7833_v24 = vpack.c.bf16 %v476_v21, %v475_v20  ;;  %v466_v26 = vld [vmem:[%s9300_s15 + $0x8] sm:$0xff]  ;;  %v581_v28 = vld [vmem:[%s9308_s20 + $0x10] sm:$0xff]  ;;  %s8940_s1 = smov 8   ;;  %s8941_s22 = smov 24   ;;  %vm1768_vm8 = vcmask 326912  }
  0xf6   : > { %7311 = vmatprep.mubr.msk.f32.mxu1 %vm477_vm0, %v579_v18  ;;  %v7849_v25 = vpack.c.bf16 %v602_v23, %v601_v22  ;;  %v580_v27 = vld [vmem:[%s9308_s20 + $0x8] sm:$0xff]  ;;  %v582_v29 = vld [vmem:[%s9308_s20 + $0x18] sm:$0xff]  ;;  %v583_v30 = vld [vmem:[%s9308_s20 + $0x20] sm:$0xff]  ;;  %s8942_s7 = smov 32   ;;  %s8943_s26 = smov 40   ;;  %vm1946_vm9 = vcmask 392512  }
  0xf7   : > { %7828 = vmatpush3.bf16.msra.mxu0 %v7825_v8  ;;  %v584_v31 = vld [vmem:[%s9308_s20 + $0x28] sm:$0xff]  ;;  %v585_v33 = vld [vmem:[%s9308_s20 + $0x30] sm:$0xff]  ;;  %v586_v34 = vld [vmem:[%s9308_s20 + $0x38] sm:$0xff]  ;;  %s8944_s21 = smov 48   ;;  %s8945_s14 = smov 56   ;;  %vm2124_vm10 = vcmask 458112  }
  0xf8   : > { %7844 = vmatpush3.bf16.msra.mxu1 %v7841_v12  ;;  %7830 = vmatprep.subr.bf16.mxu0 %v7829_v16  ;;  %v740_v40 = vld [vmem:[#allocation15] sm:$0xff]  ;;  %v741_v41 = vld [vmem:[#allocation15 + $0x8] sm:$0xff]  ;;  %v742_v42 = vld [vmem:[#allocation15 + $0x10] sm:$0xff]  ;;  %vm2302_vm11 = vcmask 523712   ;;  %s460_s29 = scalar_lea.vmem [#allocation18], %s6853_s8  ;;  %s10485_s13 = sld [smem:[#allocation28_spill]] }
  0xf9   : > { %7846 = vmatprep.subr.bf16.mxu1 %v7845_v19  ;;  %v7853_v43 = vpack.c.bf16 %v741_v41, %v740_v40  ;;  %v743_v44 = vld [vmem:[#allocation15 + $0x18] sm:$0xff]  ;;  %v744_v45 = vld [vmem:[#allocation15 + $0x20] sm:$0xff]  ;;  %v745_v47 = vld [vmem:[#allocation15 + $0x28] sm:$0xff]  ;;  %s6680_s25 = sshll.u32 %s460_s29, 4  ;;  %s7024_s20 = sshll.u32 %s9014_s9, 9  ;;  %s10334_s25 = int_to_ptr.vmem [resolvable:$true] %s6680_s25 }
  0xfa   : > { %v7857_v46 = vpack.c.bf16 %v743_v44, %v742_v42  ;;  %v467_v48 = vld [vmem:[%s9300_s15 + $0x10] sm:$0xff]  ;;  %v468_v49 = vld [vmem:[%s9300_s15 + $0x18] sm:$0xff]  ;;  %v587_v50 = vld [vmem:[%s9314_s10] sm:$0xff]  ;;  %v7861_v54 = vpack.c.bf16 %v745_v47, %v744_v45  ;;  %s10484_s15 = sld [smem:[#allocation44_spill]]  ;;  %s8840_s9 = scalar_lea.vmem %s10334_s25, 512 }
  0xfb   : > { %7832 = vmatpush3.bf16.msra.mxu0 %v7829_v16  ;;  %vm9359_vm3 = vmpackc.low %vm890_vm2, %vm890_vm2  ;;  %v746_v56 = vld [vmem:[#allocation15 + $0x30] sm:$0xff]  ;;  %v747_v57 = vld [vmem:[#allocation15 + $0x38] sm:$0xff]  ;;  %p8841_p5 = scmp.ne.s32.totalorder %s10334_s25, %s8840_s9 }
  0xfc   : > { %7848 = vmatpush3.bf16.msra.mxu1 %v7845_v19  ;;  %7834 = vmatprep.subr.bf16.mxu0 %v7833_v24  ;;  %v7865_v60 = vpack.c.bf16 %v747_v57, %v746_v56  ;;  %v588_v61 = vld [vmem:[%s9314_s10 + $0x8] sm:$0xff]  ;;  %v589_v23 = vld [vmem:[%s9314_s10 + $0x10] sm:$0xff] }
  0xfd   : > { %7850 = vmatprep.subr.bf16.mxu1 %v7849_v25 }
  0xfe   : > { %p10487_p2 = scmp.ne.s32.totalorder %s10485_s13, 0 }
  0xff   : > { %7836 = vmatpush3.bf16.msra.mxu0 %v7833_v24  ;;  %v590_v24 = vld [vmem:[%s9314_s10 + $0x18] sm:$0xff] }
 0x100   : > { %7852 = vmatpush3.bf16.msra.mxu1 %v7849_v25  ;;  %7854 = vmatprep.subr.bf16.mxu0 %v7853_v43  ;;  %p8842_p0 = pnand %p8841_p5, %p10487_p2 }
 0x101   : > { %7869 = vmatprep.subr.bf16.mxu1 %v8929_v32 }
 0x102   : > { %7290 = vmatmul.mubr.msk.f32.vlgmr.msra.gmra.mrb[0].mxu0 %vm477_vm0, %v466_v26  ;;  %p8843_p11 = pneg %p8842_p0 }
 0x103   : > { %7312 = vmatmul.mubr.msk.f32.vlgmr.msra.gmra.mrb[0].mxu1 %vm477_vm0, %v580_v27  ;;  %7292 = vmatprep.mubr.msk.f32.mxu0 %vm477_vm0, %v467_v48 }
 0x104   : > { %7314 = vmatprep.mubr.msk.f32.mxu1 %vm477_vm0, %v581_v28  ;;  %7856 = vmatpush3.bf16.msra.mxu0 %v7853_v43 }
 0x105   : > { %7858 = vmatprep.subr.bf16.mxu0 %v7857_v46 }
 0x106   : > { %7293 = vmatmul.mubr.msk.f32.gmra.mrb[2].mxu0 %vm477_vm0, %v468_v49 }
 0x107   : > { %7315 = vmatmul.mubr.msk.f32.gmra.mrb[2].mxu1 %vm477_vm0, %v582_v29  ;;  %7339 = vmatprep.mubr.msk.f32.mxu0 %vm477_vm0, %v587_v50  ;;  %v591_v29 = vld [vmem:[%s9314_s10 + $0x20] sm:$0xff] }
 0x108   : > { %7317 = vmatprep.mubr.msk.f32.mxu1 %vm477_vm0, %v583_v30  ;;  %7860 = vmatpush3.bf16.msra.mxu0 %v7857_v46  ;;  %v592_v30 = vld [vmem:[%s9314_s10 + $0x28] sm:$0xff] }
 0x109   : > { %7862 = vmatprep.subr.bf16.mxu0 %v7861_v54 }
 0x10b   : > { %7318 = vmatmul.mubr.msk.f32.gmra.mrb[4].mxu1 %vm477_vm0, %v584_v31  ;;  %v593_v31 = vld [vmem:[%s9314_s10 + $0x30] sm:$0xff] }
 0x10c   : > { %7320 = vmatprep.mubr.msk.f32.mxu1 %vm477_vm0, %v585_v33  ;;  %7864 = vmatpush3.bf16.msra.mxu0 %v7861_v54  ;;  %v594_v33 = vld [vmem:[%s9314_s10 + $0x38] sm:$0xff] }
 0x10d   : > { %7866 = vmatprep.subr.bf16.mxu0 %v7865_v60 }
 0x10f   : > { %7321 = vmatmul.mubr.msk.f32.gmra.mrb[6].mxu1 %vm477_vm0, %v586_v34 }
 0x110   : > { %7355 = vmatprep.mubr.msk.f32.mxu1 %vm8930_vm1, %v10420_v35  ;;  %7868 = vmatpush3.bf16.msra.mxu0 %v7865_v60 }
 0x111   : > { %7876 = vmatprep.subr.bf16.mxu0 %v8929_v32 }
 0x113   : > { %7340 = vmatmul.mubr.msk.f32.vlgmr.msra.gmra.mrb[4].mxu0 %vm477_vm0, %v588_v61 }
 0x114   : > { %7342 = vmatprep.mubr.msk.f32.mxu0 %vm477_vm0, %v589_v23 }
 0x117   : > { %7343 = vmatmul.mubr.msk.f32.gmra.mrb[6].mxu0 %vm477_vm0, %v590_v24 }
 0x118   : > { %7345 = vmatprep.mubr.msk.f32.mxu0 %vm477_vm0, %v591_v29 }
 0x11b   : > { %7346 = vmatmul.mubr.msk.f32.gmra.mrb[8].mxu0 %vm477_vm0, %v592_v30 }
 0x11c   : > { %7348 = vmatprep.mubr.msk.f32.mxu0 %vm477_vm0, %v593_v31 }
 0x11f   : > { %7349 = vmatmul.mubr.msk.f32.gmra.mrb[10].mxu0 %vm477_vm0, %v594_v33 }
 0x120   : > { %7369 = vmatprep.mubr.msk.f32.mxu0 %vm8930_vm1, %v10420_v35 }
 0x1d5   : > { %v7291_v36 = vpop.f32.mrb[0].mxu0 }
 0x1d6   : > { %576 = vst.msk [vmem:[#allocation2 + $0x8] sm:$0xff] %vm477_vm0, %v7291_v36  ;;  %v7313_v37 = vpop.f32.mrb[0].mxu1  ;;  %v556_v38 = vpop.f32.mrb[1].mxu0 }
 0x1d7   : > { %733 = vst.msk [vmem:[#allocation3 + $0x8] sm:$0xff] %vm477_vm0, %v7313_v37  ;;  %575 = vst.msk [vmem:[#allocation2] sm:$0xff] %vm477_vm0, %v556_v38  ;;  %v693_v39 = vpop.f32.mrb[1].mxu1 }
 0x1d8   : > { %732 = vst.msk [vmem:[#allocation3] sm:$0xff] %vm477_vm0, %v693_v39 }
 0x1d9   : > { %v7294_v16 = vpop.f32.mrb[2].mxu0 }
 0x1da   : > { %v7316_v62 = vpop.f32.mrb[2].mxu1  ;;  %578 = vst.msk [vmem:[#allocation2 + $0x18] sm:$0xff] %vm477_vm0, %v7294_v16  ;;  %v566_v17 = vpop.f32.mrb[3].mxu0 }
 0x1db   : > { %735 = vst.msk [vmem:[#allocation3 + $0x18] sm:$0xff] %vm477_vm0, %v7316_v62  ;;  %v703_v63 = vpop.f32.mrb[3].mxu1  ;;  %577 = vst.msk [vmem:[#allocation2 + $0x10] sm:$0xff] %vm477_vm0, %v566_v17 }
 0x1dc   : > { %734 = vst.msk [vmem:[#allocation3 + $0x10] sm:$0xff] %vm477_vm0, %v703_v63 }
 0x1de   : > { %v9355_v51 = vld [vmem:[#allocation2] sm:$0xff]  ;;  %v887_v52 = vld [vmem:[#allocation3 + $0x8] sm:$0xff]  ;;  %v7319_v0 = vpop.f32.mrb[4].mxu1 }
 0x1df   : > { %1056 = vrot.lane.b32.xlu1 %v9355_v51, %s8932_s11  ;;  %v886_v55 = vld [vmem:[#allocation3] sm:$0xff]  ;;  %737 = vst.msk [vmem:[#allocation3 + $0x28] sm:$0xff] %vm477_vm0, %v7319_v0  ;;  %v713_v1 = vpop.f32.mrb[5].mxu1 }
 0x1e0   : > { %v7870_v58 = vpack.c.bf16 %v887_v52, %v886_v55  ;;  %v9367_v59 = vpack.i.bf16 %v887_v52, %v886_v55  ;;  %736 = vst.msk [vmem:[#allocation3 + $0x20] sm:$0xff] %vm477_vm0, %v713_v1 }
 0x1e2   : > { %7872 = vmatpush3.bf16.xpose.msk.msra.mxu1 %vm9359_vm3, %v7870_v58  ;;  %v7322_v2 = vpop.f32.mrb[6].mxu1  ;;  %v9391_v5 = vld [vmem:[#allocation3 + $0x18] sm:$0xff] }
 0x1e3   : > { %8232 = vrot.lane.b32.xlu1 %v9367_v59, %s8933_s12  ;;  %7873 = vmatprep.subr.bf16.mxu1 %v8929_v32  ;;  %739 = vst.msk [vmem:[#allocation3 + $0x38] sm:$0xff] %vm477_vm0, %v7322_v2  ;;  %v723_v3 = vpop.f32.mrb[7].mxu1  ;;  %v9389_v4 = vld [vmem:[#allocation3 + $0x10] sm:$0xff] }
 0x1e4   : > { %738 = vst.msk [vmem:[#allocation3 + $0x30] sm:$0xff] %vm477_vm0, %v723_v3  ;;  %v7926_v6 = vpack.c.bf16 %v9391_v5, %v9389_v4  ;;  %v9397_v7 = vpack.i.bf16 %v9391_v5, %v9389_v4 }
 0x1e6   : > { %v9401_v9 = vld [vmem:[#allocation3 + $0x28] sm:$0xff]  ;;  %v7341_v21 = vpop.f32.mrb[4].mxu0 }
 0x1e7   : > { %1236 = vrot.lane.b32.xlu1 %v9355_v51, %s8933_s12  ;;  %v9399_v8 = vld [vmem:[#allocation3 + $0x20] sm:$0xff]  ;;  %878 = vst.msk [vmem:[#allocation4 + $0x8] sm:$0xff] %vm477_vm0, %v7341_v21  ;;  %v838_v22 = vpop.f32.mrb[5].mxu0 }
 0x1e8   : > { %v7982_v10 = vpack.c.bf16 %v9401_v9, %v9399_v8  ;;  %v9407_v11 = vpack.i.bf16 %v9401_v9, %v9399_v8  ;;  %877 = vst.msk [vmem:[#allocation4] sm:$0xff] %vm477_vm0, %v838_v22 }
 0x1e9   : > { %7356 = vmatmul.mubr.msk.f32.vlgmr.msra.gmra.mrb[8].mxu1 %vm890_vm2, %v9355_v51 }
 0x1ea   : > { %7362 = vmatprep.mubr.msk.f32.mxu1 %vm8930_vm1, %v10420_v35  ;;  %v9411_v13 = vld [vmem:[#allocation3 + $0x38] sm:$0xff]  ;;  %v7344_v55 = vpop.f32.mrb[6].mxu0 }
 0x1eb   : > { %v9409_v12 = vld [vmem:[#allocation3 + $0x30] sm:$0xff]  ;;  %880 = vst.msk [vmem:[#allocation4 + $0x18] sm:$0xff] %vm477_vm0, %v7344_v55  ;;  %v848_v56 = vpop.f32.mrb[7].mxu0 }
 0x1ec   : > { %v9417_v15 = vpack.i.bf16 %v9411_v13, %v9409_v12  ;;  %879 = vst.msk [vmem:[#allocation4 + $0x10] sm:$0xff] %vm477_vm0, %v848_v56 }
 0x1ee   : > { %v889_v26 = vld [vmem:[#allocation4 + $0x8] sm:$0xff]  ;;  %v7347_v57 = vpop.f32.mrb[8].mxu0 }
 0x1ef   : > { %v888_v25 = vld [vmem:[#allocation4] sm:$0xff]  ;;  %882 = vst.msk [vmem:[#allocation4 + $0x28] sm:$0xff] %vm477_vm0, %v7347_v57  ;;  %v858_v58 = vpop.f32.mrb[9].mxu0 }
 0x1f0   : > { %v7874_v27 = vpack.c.bf16 %v889_v26, %v888_v25  ;;  %v9428_v28 = vpack.i.bf16 %v889_v26, %v888_v25  ;;  %881 = vst.msk [vmem:[#allocation4 + $0x20] sm:$0xff] %vm477_vm0, %v858_v58 }
 0x1f2   : > { %7875 = vmatpush3.bf16.msra.mxu1 %v7874_v27  ;;  %8237 = vrot.lane.b32.xlu1 %v9428_v28, %s8932_s11  ;;  %v7350_v60 = vpop.f32.mrb[10].mxu0  ;;  %v9472_v63 = vld [vmem:[#allocation4 + $0x18] sm:$0xff] }
 0x1f3   : > { %7883 = vmatprep.subr.bf16.mxu1 %v8929_v32  ;;  %884 = vst.msk [vmem:[#allocation4 + $0x38] sm:$0xff] %vm477_vm0, %v7350_v60  ;;  %v868_v61 = vpop.f32.mrb[11].mxu0  ;;  %v9470_v62 = vld [vmem:[#allocation4 + $0x10] sm:$0xff] }
 0x1f4   : > { %883 = vst.msk [vmem:[#allocation4 + $0x30] sm:$0xff] %vm477_vm0, %v868_v61  ;;  %v9476_v0 = vpack.i.bf16 %v9472_v63, %v9470_v62 }
 0x1f6   : > { %v9480_v2 = vld [vmem:[#allocation4 + $0x28] sm:$0xff] }
 0x1f7   : > { %v9478_v1 = vld [vmem:[#allocation4 + $0x20] sm:$0xff] }
 0x1f8   : > { %v9484_v3 = vpack.i.bf16 %v9480_v2, %v9478_v1 }
 0x1fa   : > { %v5139_v17 = vld [vmem:[#allocation4 + $0x38] sm:$0xff] }
 0x1fb   : > { %v5138_v16 = vld [vmem:[#allocation4 + $0x30] sm:$0xff] }
 0x251   : > { %v1057_v34 = vpop.permute.xlu1 %1056 }
 0x255   : > { %v8233_v36 = vpop.permute.xlu1 %8232 }
 0x256   : > { %v8235_v48 = vunpack.i.h.bf16 %v8233_v36  ;;  %v8234_v49 = vunpack.i.l.bf16 %v8233_v36 }
 0x258   : > { %v7884_v54 = vpack.c.bf16 %v8235_v48, %v8234_v49 }
 0x259   : > { %v1237_v39 = vpop.permute.xlu1 %1236 }
 0x264   : > { %v8238_v45 = vpop.permute.xlu1 %8237 }
 0x265   : > { %v8240_v46 = vunpack.i.h.bf16 %v8238_v45  ;;  %v8239_v47 = vunpack.i.l.bf16 %v8238_v45 }
 0x267   : > { %v7881_v50 = vpack.c.bf16 %v8240_v46, %v8239_v47 }
 0x2bc   : > { %v966_v18 = vpop.f32.mrb[8].mxu1 }
 0x2bd   : > { %v7357_v19 = vpop.f32.mrb[9].mxu1  ;;  %v971_v20 = vsel %vm970_vm4, %v966_v18, -inf }
 0x2be   : > { %972 = vmax.xlane.f32.xlu0 %v971_v20 }
 0x2d4   : > { %8227 = vrot.lane.b32.xlu0 %v9367_v59, %s8932_s11 }
 0x34b   : > { %v973_v37 = vpop.xlane.xlu0 %972 }
 0x34c   : > { %v974_v38 = vsub.f32 %v966_v18, %v973_v37  ;;  %v9486_v18 = vpack.i.bf16 %v5139_v17, %v5138_v16 }
 0x34e   : > { %v975_v40 = vmul.f32 1.442695, %v974_v38 }
 0x34f   : > { %v8228_v41 = vpop.permute.xlu0 %8227 }
 0x350   : > { %8506 = vpow2.f32 %v975_v40  ;;  %v8230_v42 = vunpack.i.h.bf16 %v8228_v41  ;;  %v8229_v43 = vunpack.i.l.bf16 %v8228_v41 }
 0x352   : > { %v7877_v44 = vpack.c.bf16 %v8230_v42, %v8229_v43 }
 0x354   : > { %7879 = vmatpush3.bf16.xpose.msk.msra.mxu0 %vm9359_vm3, %v7877_v44 }
 0x355   : > { %7880 = vmatprep.subr.bf16.mxu0 %v8929_v32 }
 0x35a   : > { %v9448_v52 = vpop.eup %8506 }
 0x35b   : > { %7363 = vmatmul.mubr.msk.f32.vlgmr.msra.gmra.mrb[10].mxu1 %vm970_vm4, %v9448_v52  ;;  %7370 = vmatmul.mubr.msk.f32.vlgmr.msra.gmra.mrb[12].mxu0 %vm890_vm2, %v1057_v34 }
 0x35c   : > { %7886 = vmatpush3.bf16.xpose.msk.msra.mxu1 %vm9359_vm3, %v7884_v54  ;;  %7383 = vmatprep.mubr.msk.f32.mxu1 %vm8930_vm1, %v10420_v35 }
 0x35d   : > { %7882 = vmatpush3.bf16.msra.mxu0 %v7881_v50  ;;  %7376 = vmatprep.mubr.msk.f32.mxu0 %vm8930_vm1, %v10420_v35 }
 0x35e   : > { %7887 = vmatprep.subr.bf16.mxu0 %v8929_v32  ;;  %7894 = vmatprep.subr.bf16.mxu1 %v8929_v32 }
 0x363   : > { %7384 = vmatmul.mubr.msk.f32.vlgmr.msra.gmra.mrb[12].mxu1 %vm890_vm2, %v1237_v39 }
 0x364   : > { %7404 = vmatprep.mubr.msk.f32.mxu1 %vm8930_vm1, %v10420_v35 }
 0x42e   : > { %v9488_v19 = vpop.f32.mrb[10].mxu1  ;;  %v1134_v20 = vpop.f32.mrb[12].mxu0 }
 0x42f   : > { %10460 = vst [vmem:[#allocation30_spill] sm:$0xff] %v9488_v19  ;;  %v7364_v21 = vpop.f32.mrb[11].mxu1  ;;  %v7371_v22 = vpop.f32.mrb[13].mxu0  ;;  %v1138_v23 = vsel %vm970_vm4, %v1134_v20, -inf }
 0x430   : > { %1139 = vmax.xlane.f32.xlu1 %v1138_v23 }
 0x436   : > { %v1314_v24 = vpop.f32.mrb[12].mxu1 }
 0x437   : > { %v7385_v25 = vpop.f32.mrb[13].mxu1  ;;  %v1318_v26 = vsel %vm970_vm4, %v1314_v24, -inf }
 0x438   : > { %1319 = vmax.xlane.f32.xlu0 %v1318_v26 }
 0x441   : > { %8247 = vrot.lane.b32.xlu1 %v9367_v59, %s8934_s24 }
 0x445   : > { %1414 = vrot.lane.b32.xlu1 %v9355_v51, %s8934_s24 }
 0x44e   : > { %8242 = vrot.lane.b32.xlu0 %v9428_v28, %s8933_s12 }
 0x452   : > { %8252 = vrot.lane.b32.xlu0 %v9428_v28, %s8934_s24 }
 0x456   : > { %8257 = vrot.lane.b32.xlu0 %v9367_v59, %s8935_s27 }
 0x45a   : > { %1592 = vrot.lane.b32.xlu0 %v9355_v51, %s8935_s27 }
 0x4bd   : > { %v1140_v27 = vpop.xlane.xlu1 %1139 }
 0x4be   : > { %v1141_v29 = vsub.f32 %v1134_v20, %v1140_v27 }
 0x4c0   : > { %v1142_v30 = vmul.f32 1.442695, %v1141_v29 }
 0x4c1   : > { %v8248_v42 = vpop.permute.xlu1 %8247 }
 0x4c2   : > { %8508 = vpow2.f32 %v1142_v30  ;;  %v8250_v46 = vunpack.i.h.bf16 %v8248_v42  ;;  %v8249_v47 = vunpack.i.l.bf16 %v8248_v42 }
 0x4c4   : > { %v7891_v49 = vpack.c.bf16 %v8250_v46, %v8249_v47 }
 0x4c5   : > { %v1320_v31 = vpop.xlane.xlu0 %1319  ;;  %v1415_v50 = vpop.permute.xlu1 %1414 }
 0x4c6   : > { %v1321_v33 = vsub.f32 %v1314_v24, %v1320_v31 }
 0x4c8   : > { %v1322_v34 = vmul.f32 1.442695, %v1321_v33 }
 0x4c9   : > { %v8243_v36 = vpop.permute.xlu0 %8242 }
 0x4ca   : > { %8510 = vpow2.f32 %v1322_v34  ;;  %v8245_v37 = vunpack.i.h.bf16 %v8243_v36  ;;  %v8244_v38 = vunpack.i.l.bf16 %v8243_v36 }
 0x4cc   : > { %v9504_v39 = vpop.eup %8508  ;;  %v7888_v40 = vpack.c.bf16 %v8245_v37, %v8244_v38 }
 0x4cd   : > { %v8253_v41 = vpop.permute.xlu0 %8252  ;;  %7377 = vmatmul.mubr.msk.f32.vlgmr.msra.gmra.mrb[14].mxu0 %vm970_vm4, %v9504_v39 }
 0x4ce   : > { %v8255_v43 = vunpack.i.h.bf16 %v8253_v41  ;;  %v8254_v44 = vunpack.i.l.bf16 %v8253_v41  ;;  %7889 = vmatpush3.bf16.msra.mxu0 %v7888_v40  ;;  %7390 = vmatprep.mubr.msk.f32.mxu0 %vm8930_vm1, %v10420_v35 }
 0x4cf   : > { %7890 = vmatprep.subr.bf16.mxu0 %v8929_v32 }
 0x4d0   : > { %v7895_v45 = vpack.c.bf16 %v8255_v43, %v8254_v44 }
 0x4d1   : > { %v8258_v25 = vpop.permute.xlu0 %8257 }
 0x4d2   : > { %7896 = vmatpush3.bf16.msra.mxu1 %v7895_v45  ;;  %v8260_v26 = vunpack.i.h.bf16 %v8258_v25  ;;  %v8259_v27 = vunpack.i.l.bf16 %v8258_v25 }
 0x4d3   : > { %7897 = vmatprep.subr.bf16.mxu1 %v8929_v32 }
 0x4d4   : > { %v9512_v48 = vpop.eup %8510  ;;  %v7898_v30 = vpack.c.bf16 %v8260_v26, %v8259_v27 }
 0x4d5   : > { %7391 = vmatmul.mubr.msk.f32.vlgmr.msra.gmra.mrb[16].mxu0 %vm970_vm4, %v9512_v48  ;;  %v1593_v31 = vpop.permute.xlu0 %1592 }
 0x4d6   : > { %7397 = vmatprep.mubr.msk.f32.mxu0 %vm8930_vm1, %v10420_v35 }
 0x4d7   : > { %7893 = vmatpush3.bf16.xpose.msk.msra.mxu0 %vm9359_vm3, %v7891_v49 }
 0x4d8   : > { %7901 = vmatprep.subr.bf16.mxu0 %v8929_v32 }
 0x4de   : > { %7398 = vmatmul.mubr.msk.f32.vlgmr.msra.gmra.mrb[18].mxu0 %vm890_vm2, %v1415_v50 }
 0x4df   : > { %7418 = vmatprep.mubr.msk.f32.mxu0 %vm8930_vm1, %v10420_v35 }
 0x5a0   : > { %v9524_v54 = vpop.f32.mrb[14].mxu0 }
 0x5a1   : > { %v7378_v55 = vpop.f32.mrb[15].mxu0 }
 0x5a8   : > { %v9526_v56 = vpop.f32.mrb[16].mxu0 }
 0x5a9   : > { %v7392_v57 = vpop.f32.mrb[17].mxu0 }
 0x5b1   : > { %v1492_v58 = vpop.f32.mrb[18].mxu0 }
 0x5b2   : > { %v7399_v60 = vpop.f32.mrb[19].mxu0  ;;  %v1496_v61 = vsel %vm970_vm4, %v1492_v58, -inf }
 0x5b3   : > { %1497 = vmax.xlane.f32.xlu1 %v1496_v61 }
 0x5c4   : > { %8262 = vrot.lane.b32.xlu1 %v9428_v28, %s8935_s27 }
 0x5c8   : > { %1770 = vrot.lane.b32.xlu1 %v9355_v51, %s8936_s18 }
 0x640   : > { %v1498_v16 = vpop.xlane.xlu1 %1497 }
 0x641   : > { %v1499_v17 = vsub.f32 %v1492_v58, %v1498_v16 }
 0x643   : > { %v1500_v20 = vmul.f32 1.442695, %v1499_v17 }
 0x644   : > { %v8263_v21 = vpop.permute.xlu1 %8262 }
 0x645   : > { %8512 = vpow2.f32 %v1500_v20  ;;  %v8265_v22 = vunpack.i.h.bf16 %v8263_v21  ;;  %v8264_v23 = vunpack.i.l.bf16 %v8263_v21 }
 0x647   : > { %v7902_v24 = vpack.c.bf16 %v8265_v22, %v8264_v23 }
 0x648   : > { %v1771_v58 = vpop.permute.xlu1 %1770 }
 0x649   : > { %7903 = vmatpush3.bf16.msra.mxu0 %v7902_v24 }
 0x64a   : > { %7904 = vmatprep.subr.bf16.mxu0 %v8929_v32 }
 0x64f   : > { %v9534_v29 = vpop.eup %8512 }
 0x650   : > { %7405 = vmatmul.mubr.msk.f32.vlgmr.msra.gmra.mrb[14].mxu1 %vm970_vm4, %v9534_v29 }
 0x651   : > { %7900 = vmatpush3.bf16.xpose.msk.msra.mxu1 %vm9359_vm3, %v7898_v30  ;;  %7411 = vmatprep.mubr.msk.f32.mxu1 %vm8930_vm1, %v10420_v35 }
 0x652   : > { %7908 = vmatprep.subr.bf16.mxu1 %v8929_v32 }
 0x658   : > { %7412 = vmatmul.mubr.msk.f32.vlgmr.msra.gmra.mrb[16].mxu1 %vm890_vm2, %v1593_v31 }
 0x659   : > { %7432 = vmatprep.mubr.msk.f32.mxu1 %vm8930_vm1, %v10420_v35 }
 0x723   : > { %v9546_v33 = vpop.f32.mrb[14].mxu1 }
 0x724   : > { %v7406_v34 = vpop.f32.mrb[15].mxu1 }
 0x72b   : > { %v1670_v36 = vpop.f32.mrb[16].mxu1 }
 0x72c   : > { %v7413_v37 = vpop.f32.mrb[17].mxu1  ;;  %v1674_v38 = vsel %vm970_vm4, %v1670_v36, -inf }
 0x72d   : > { %1675 = vmax.xlane.f32.xlu0 %v1674_v38 }
 0x743   : > { %8267 = vrot.lane.b32.xlu0 %v9367_v59, %s8936_s18 }
 0x747   : > { %8272 = vrot.lane.b32.xlu0 %v9428_v28, %s8936_s18 }
 0x74b   : > { %8277 = vrot.lane.b32.xlu0 %v9367_v59, %s8937_s16 }
 0x74f   : > { %1948 = vrot.lane.b32.xlu0 %v9355_v51, %s8937_s16 }
 0x7ba   : > { %v1676_v40 = vpop.xlane.xlu0 %1675 }
 0x7bb   : > { %v1677_v41 = vsub.f32 %v1670_v36, %v1676_v40 }
 0x7bd   : > { %v1678_v42 = vmul.f32 1.442695, %v1677_v41 }
 0x7be   : > { %v8268_v43 = vpop.permute.xlu0 %8267 }
 0x7bf   : > { %8514 = vpow2.f32 %v1678_v42  ;;  %v8270_v47 = vunpack.i.h.bf16 %v8268_v43  ;;  %v8269_v49 = vunpack.i.l.bf16 %v8268_v43 }
 0x7c1   : > { %v7905_v57 = vpack.c.bf16 %v8270_v47, %v8269_v49 }
 0x7c2   : > { %v8273_v44 = vpop.permute.xlu0 %8272 }
 0x7c3   : > { %v8275_v45 = vunpack.i.h.bf16 %v8273_v44  ;;  %v8274_v46 = vunpack.i.l.bf16 %v8273_v44 }
 0x7c5   : > { %v7909_v50 = vpack.c.bf16 %v8275_v45, %v8274_v46 }
 0x7c6   : > { %v8278_v30 = vpop.permute.xlu0 %8277 }
 0x7c7   : > { %7910 = vmatpush3.bf16.msra.mxu1 %v7909_v50  ;;  %v8280_v31 = vunpack.i.h.bf16 %v8278_v30  ;;  %v8279_v34 = vunpack.i.l.bf16 %v8278_v30 }
 0x7c8   : > { %7911 = vmatprep.subr.bf16.mxu1 %v8929_v32 }
 0x7c9   : > { %v9558_v55 = vpop.eup %8514  ;;  %v7912_v37 = vpack.c.bf16 %v8280_v31, %v8279_v34 }
 0x7ca   : > { %7419 = vmatmul.mubr.msk.f32.vlgmr.msra.gmra.mrb[20].mxu0 %vm970_vm4, %v9558_v55 }
 0x7cb   : > { %7907 = vmatpush3.bf16.xpose.msk.msra.mxu0 %vm9359_vm3, %v7905_v57  ;;  %7425 = vmatprep.mubr.msk.f32.mxu0 %vm8930_vm1, %v10420_v35 }
 0x7cc   : > { %7915 = vmatprep.subr.bf16.mxu0 %v8929_v32 }
 0x7d2   : > { %7426 = vmatmul.mubr.msk.f32.vlgmr.msra.gmra.mrb[22].mxu0 %vm890_vm2, %v1771_v58 }
 0x7d3   : > { %7446 = vmatprep.mubr.msk.f32.mxu0 %vm8930_vm1, %v10420_v35 }
 0x89d   : > { %v9570_v60 = vpop.f32.mrb[20].mxu0 }
 0x89e   : > { %v7420_v61 = vpop.f32.mrb[21].mxu0 }
 0x8a5   : > { %v1848_v16 = vpop.f32.mrb[22].mxu0 }
 0x8a6   : > { %v7427_v17 = vpop.f32.mrb[23].mxu0  ;;  %v1852_v20 = vsel %vm970_vm4, %v1848_v16, -inf }
 0x8a7   : > { %1853 = vmax.xlane.f32.xlu1 %v1852_v20 }
 0x8b8   : > { %8282 = vrot.lane.b32.xlu1 %v9428_v28, %s8937_s16 }
 0x8bc   : > { %8287 = vrot.lane.b32.xlu1 %v9367_v59, %s8938_s3  ;;  %v1949_v59 = vpop.permute.xlu0 %1948 }
 0x934   : > { %v1854_v21 = vpop.xlane.xlu1 %1853 }
 0x935   : > { %v1855_v22 = vsub.f32 %v1848_v16, %v1854_v21 }
 0x937   : > { %v1856_v23 = vmul.f32 1.442695, %v1855_v22 }
 0x938   : > { %v8283_v24 = vpop.permute.xlu1 %8282 }
 0x939   : > { %8516 = vpow2.f32 %v1856_v23  ;;  %v8285_v25 = vunpack.i.h.bf16 %v8283_v24  ;;  %v8284_v26 = vunpack.i.l.bf16 %v8283_v24 }
 0x93b   : > { %v7916_v27 = vpack.c.bf16 %v8285_v25, %v8284_v26 }
 0x93c   : > { %v8288_v49 = vpop.permute.xlu1 %8287 }
 0x93d   : > { %7917 = vmatpush3.bf16.msra.mxu0 %v7916_v27  ;;  %v8290_v61 = vunpack.i.h.bf16 %v8288_v49  ;;  %v8289_v16 = vunpack.i.l.bf16 %v8288_v49 }
 0x93e   : > { %7918 = vmatprep.subr.bf16.mxu0 %v8929_v32 }
 0x943   : > { %v9578_v36 = vpop.eup %8516 }
 0x944   : > { %7433 = vmatmul.mubr.msk.f32.vlgmr.msra.gmra.mrb[18].mxu1 %vm970_vm4, %v9578_v36 }
 0x945   : > { %7914 = vmatpush3.bf16.xpose.msk.msra.mxu1 %vm9359_vm3, %v7912_v37  ;;  %7439 = vmatprep.mubr.msk.f32.mxu1 %vm8930_vm1, %v10420_v35 }
 0x946   : > { %7922 = vmatprep.subr.bf16.mxu1 %v8929_v32 }
 0x94c   : > { %7440 = vmatmul.mubr.msk.f32.vlgmr.msra.gmra.mrb[20].mxu1 %vm890_vm2, %v1949_v59 }
 0x94d   : > { %7460 = vmatprep.mubr.msk.f32.mxu1 %vm8930_vm1, %v10420_v35 }
 0xa17   : > { %v9590_v38 = vpop.f32.mrb[18].mxu1 }
 0xa18   : > { %10461 = vst [vmem:[#allocation31_spill] sm:$0xff] %v9590_v38  ;;  %v7434_v40 = vpop.f32.mrb[19].mxu1 }
 0xa1f   : > { %v2026_v41 = vpop.f32.mrb[20].mxu1 }
 0xa20   : > { %v7441_v42 = vpop.f32.mrb[21].mxu1  ;;  %v2030_v43 = vsel %vm970_vm4, %v2026_v41, -inf }
 0xa21   : > { %2031 = vmax.xlane.f32.xlu0 %v2030_v43 }
 0xa37   : > { %2126 = vrot.lane.b32.xlu0 %v9355_v51, %s8938_s3  ;;  %v7919_v51 = vpack.c.bf16 %v8290_v61, %v8289_v16 }
 0xa3b   : > { %8292 = vrot.lane.b32.xlu0 %v9428_v28, %s8938_s3  ;;  %v7930_v28 = vpack.c.bf16 %v9472_v63, %v9470_v62  ;;  %v9618_v62 = vld [vmem:[#allocation2 + $0x8] sm:$0xff] }
 0xaae   : > { %v2032_v44 = vpop.xlane.xlu0 %2031 }
 0xaaf   : > { %v2033_v45 = vsub.f32 %v2026_v41, %v2032_v44 }
 0xab1   : > { %v2034_v46 = vmul.f32 1.442695, %v2033_v45 }
 0xab2   : > { %v2127_v47 = vpop.permute.xlu0 %2126 }
 0xab3   : > { %8518 = vpow2.f32 %v2034_v46 }
 0xab6   : > { %v8293_v50 = vpop.permute.xlu0 %8292 }
 0xab7   : > { %v8295_v57 = vunpack.i.h.bf16 %v8293_v50  ;;  %v8294_v58 = vunpack.i.l.bf16 %v8293_v50 }
 0xab9   : > { %v7923_v17 = vpack.c.bf16 %v8295_v57, %v8294_v58 }
 0xabb   : > { %7924 = vmatpush3.bf16.msra.mxu1 %v7923_v17 }
 0xabc   : > { %7925 = vmatprep.subr.bf16.mxu1 %v8929_v32 }
 0xabd   : > { %v9598_v20 = vpop.eup %8518 }
 0xabe   : > { %7447 = vmatmul.mubr.msk.f32.vlgmr.msra.gmra.mrb[24].mxu0 %vm970_vm4, %v9598_v20 }
 0xabf   : > { %7921 = vmatpush3.bf16.xpose.msk.msra.mxu0 %vm9359_vm3, %v7919_v51  ;;  %7453 = vmatprep.mubr.msk.f32.mxu0 %vm8930_vm1, %v10420_v35 }
 0xac0   : > { %7929 = vmatprep.subr.bf16.mxu0 %v8929_v32 }
 0xac6   : > { %7454 = vmatmul.mubr.msk.f32.vlgmr.msra.gmra.mrb[26].mxu0 %vm890_vm2, %v2127_v47 }
 0xac7   : > { %7931 = vmatpush3.bf16.msra.mxu0 %v7930_v28  ;;  %7474 = vmatprep.mubr.msk.f32.mxu0 %vm8930_vm1, %v10420_v35 }
 0xac8   : > { %7932 = vmatprep.subr.bf16.mxu0 %v8929_v32 }
 0xb91   : > { %v9613_v21 = vpop.f32.mrb[24].mxu0 }
 0xb92   : > { %10462 = vst [vmem:[#allocation32_spill] sm:$0xff] %v9613_v21  ;;  %v7448_v22 = vpop.f32.mrb[25].mxu0 }
 0xb99   : > { %v2204_v23 = vpop.f32.mrb[26].mxu0 }
 0xb9a   : > { %v7455_v24 = vpop.f32.mrb[27].mxu0  ;;  %v2208_v25 = vsel %vm970_vm4, %v2204_v23, -inf }
 0xb9b   : > { %2209 = vmax.xlane.f32.xlu1 %v2208_v25 }
 0xbac   : > { %8297 = vrot.lane.b32.xlu1 %v9397_v7, %s8932_s11 }
 0xbb0   : > { %2477 = vrot.lane.b32.xlu1 %v9618_v62, %s8932_s11 }
 0xbb4   : > { %8302 = vrot.lane.b32.xlu1 %v9476_v0, %s8932_s11 }
 0xbb8   : > { %2656 = vrot.lane.b32.xlu1 %v9618_v62, %s8933_s12 }
 0xc28   : > { %v2210_v63 = vpop.xlane.xlu1 %2209 }
 0xc29   : > { %v2211_v26 = vsub.f32 %v2204_v23, %v2210_v63 }
 0xc2b   : > { %v2212_v27 = vmul.f32 1.442695, %v2211_v26 }
 0xc2c   : > { %v8298_v30 = vpop.permute.xlu1 %8297 }
 0xc2d   : > { %8520 = vpow2.f32 %v2212_v27  ;;  %v8300_v47 = vunpack.i.h.bf16 %v8298_v30  ;;  %v8299_v49 = vunpack.i.l.bf16 %v8298_v30 }
 0xc2f   : > { %v7933_v57 = vpack.c.bf16 %v8300_v47, %v8299_v49 }
 0xc30   : > { %v2478_v31 = vpop.permute.xlu1 %2477 }
 0xc34   : > { %v8303_v37 = vpop.permute.xlu1 %8302 }
 0xc35   : > { %v8305_v59 = vunpack.i.h.bf16 %v8303_v37  ;;  %v8304_v40 = vunpack.i.l.bf16 %v8303_v37 }
 0xc37   : > { %v9626_v34 = vpop.eup %8520  ;;  %v7937_v41 = vpack.c.bf16 %v8305_v59, %v8304_v40 }
 0xc38   : > { %7461 = vmatmul.mubr.msk.f32.vlgmr.msra.gmra.mrb[22].mxu1 %vm970_vm4, %v9626_v34  ;;  %v2657_v40 = vpop.permute.xlu1 %2656 }
 0xc39   : > { %7928 = vmatpush3.bf16.xpose.msk.msra.mxu1 %vm9359_vm3, %v7926_v6  ;;  %7467 = vmatprep.mubr.msk.f32.mxu1 %vm8930_vm1, %v10420_v35 }
 0xc3a   : > { %7936 = vmatprep.subr.bf16.mxu1 %v8929_v32 }
 0xc40   : > { %7468 = vmatmul.mubr.msk.f32.vlgmr.msra.gmra.mrb[24].mxu1 %vm890_vm2, %v9618_v62 }
 0xc41   : > { %7938 = vmatpush3.bf16.msra.mxu1 %v7937_v41  ;;  %7488 = vmatprep.mubr.msk.f32.mxu1 %vm8930_vm1, %v10420_v35 }
 0xc42   : > { %7939 = vmatprep.subr.bf16.mxu1 %v8929_v32 }
 0xd0b   : > { %v9643_v4 = vpop.f32.mrb[22].mxu1 }
 0xd0c   : > { %10463 = vst [vmem:[#allocation33_spill] sm:$0xff] %v9643_v4  ;;  %v7462_v5 = vpop.f32.mrb[23].mxu1 }
 0xd13   : > { %v2387_v6 = vpop.f32.mrb[24].mxu1 }
 0xd14   : > { %v7469_v42 = vpop.f32.mrb[25].mxu1  ;;  %v2391_v43 = vsel %vm970_vm4, %v2387_v6, -inf }
 0xd15   : > { %2392 = vmax.xlane.f32.xlu0 %v2391_v43 }
 0xda2   : > { %v2393_v44 = vpop.xlane.xlu0 %2392 }
 0xda3   : > { %v2394_v45 = vsub.f32 %v2387_v6, %v2393_v44 }
 0xda5   : > { %v2395_v46 = vmul.f32 1.442695, %v2394_v45 }
 0xda7   : > { %8522 = vpow2.f32 %v2395_v46 }
 0xdb1   : > { %v9646_v50 = vpop.eup %8522 }
 0xdb2   : > { %7475 = vmatmul.mubr.msk.f32.vlgmr.msra.gmra.mrb[28].mxu0 %vm970_vm4, %v9646_v50 }
 0xdb3   : > { %7935 = vmatpush3.bf16.xpose.msk.msra.mxu0 %vm9359_vm3, %v7933_v57  ;;  %7481 = vmatprep.mubr.msk.f32.mxu0 %vm8930_vm1, %v10420_v35 }
 0xdb4   : > { %7943 = vmatprep.subr.bf16.mxu0 %v8929_v32 }
 0xdba   : > { %7482 = vmatmul.mubr.msk.f32.vlgmr.msra.gmra.mrb[30].mxu0 %vm890_vm2, %v2478_v31 }
 0xdbb   : > { %7502 = vmatprep.mubr.msk.f32.mxu0 %vm8930_vm1, %v10420_v35 }
 0xe85   : > { %v9658_v58 = vpop.f32.mrb[28].mxu0 }
 0xe86   : > { %v7476_v61 = vpop.f32.mrb[29].mxu0 }
 0xe8d   : > { %v2555_v16 = vpop.f32.mrb[30].mxu0 }
 0xe8e   : > { %v7483_v17 = vpop.f32.mrb[31].mxu0  ;;  %v2559_v51 = vsel %vm970_vm4, %v2555_v16, -inf }
 0xe8f   : > { %2560 = vmax.xlane.f32.xlu0 %v2559_v51 }
 0xea5   : > { %8307 = vrot.lane.b32.xlu0 %v9397_v7, %s8933_s12 }
 0xea9   : > { %8312 = vrot.lane.b32.xlu0 %v9476_v0, %s8933_s12 }
 0xead   : > { %8317 = vrot.lane.b32.xlu0 %v9397_v7, %s8934_s24 }
 0xeb1   : > { %2833 = vrot.lane.b32.xlu0 %v9618_v62, %s8934_s24 }
 0xf1c   : > { %v2561_v28 = vpop.xlane.xlu0 %2560 }
 0xf1d   : > { %v2562_v22 = vsub.f32 %v2555_v16, %v2561_v28 }
 0xf1f   : > { %v2563_v23 = vmul.f32 1.442695, %v2562_v22 }
 0xf20   : > { %v8308_v24 = vpop.permute.xlu0 %8307 }
 0xf21   : > { %8524 = vpow2.f32 %v2563_v23  ;;  %v8310_v27 = vunpack.i.h.bf16 %v8308_v24  ;;  %v8309_v30 = vunpack.i.l.bf16 %v8308_v24 }
 0xf23   : > { %v7940_v59 = vpack.c.bf16 %v8310_v27, %v8309_v30 }
 0xf24   : > { %v8313_v25 = vpop.permute.xlu0 %8312 }
 0xf25   : > { %v8315_v63 = vunpack.i.h.bf16 %v8313_v25  ;;  %v8314_v26 = vunpack.i.l.bf16 %v8313_v25 }
 0xf27   : > { %v7944_v31 = vpack.c.bf16 %v8315_v63, %v8314_v26 }
 0xf28   : > { %v8318_v16 = vpop.permute.xlu0 %8317 }
 0xf29   : > { %7945 = vmatpush3.bf16.msra.mxu0 %v7944_v31  ;;  %v8320_v51 = vunpack.i.h.bf16 %v8318_v16  ;;  %v8319_v28 = vunpack.i.l.bf16 %v8318_v16 }
 0xf2a   : > { %7946 = vmatprep.subr.bf16.mxu0 %v8929_v32 }
 0xf2b   : > { %v9670_v37 = vpop.eup %8524  ;;  %v7947_v24 = vpack.c.bf16 %v8320_v51, %v8319_v28 }
 0xf2c   : > { %7489 = vmatmul.mubr.msk.f32.vlgmr.msra.gmra.mrb[26].mxu1 %vm970_vm4, %v9670_v37  ;;  %v2834_v27 = vpop.permute.xlu0 %2833  ;;  %v2565_v53 = vsel %vm970_vm4, %v9670_v37, 0.0  ;;  %v1858_v37 = vsel %vm970_vm4, %v9578_v36, 0.0  ;;  %v2214_v36 = vsel %vm970_vm4, %v9626_v34, 0.0 }
 0xf2d   : > { %7942 = vmatpush3.bf16.xpose.msk.msra.mxu1 %vm9359_vm3, %v7940_v59  ;;  %7495 = vmatprep.mubr.msk.f32.mxu1 %vm8930_vm1, %v10420_v35 }
 0xf2e   : > { %7950 = vmatprep.subr.bf16.mxu1 %v8929_v32 }
 0xf34   : > { %7496 = vmatmul.mubr.msk.f32.vlgmr.msra.gmra.mrb[28].mxu1 %vm890_vm2, %v2657_v40 }
 0xf35   : > { %7516 = vmatprep.mubr.msk.f32.mxu1 %vm8930_vm1, %v10420_v35 }
 0xfff   : > { %v9682_v41 = vpop.f32.mrb[26].mxu1 }
0x1000   : > { %v7490_v5 = vpop.f32.mrb[27].mxu1 }
0x1007   : > { %v2734_v6 = vpop.f32.mrb[28].mxu1 }
0x1008   : > { %v7497_v42 = vpop.f32.mrb[29].mxu1  ;;  %v2738_v43 = vsel %vm970_vm4, %v2734_v6, -inf }
0x1009   : > { %2739 = vmax.xlane.f32.xlu1 %v2738_v43 }
0x101a   : > { %8322 = vrot.lane.b32.xlu1 %v9476_v0, %s8934_s24 }
0x101e   : > { %8327 = vrot.lane.b32.xlu1 %v9397_v7, %s8935_s27 }
0x1022   : > { %3010 = vrot.lane.b32.xlu1 %v9618_v62, %s8935_s27 }
0x1026   : > { %8332 = vrot.lane.b32.xlu1 %v9476_v0, %s8935_s27 }
0x102a   : > { %3187 = vrot.lane.b32.xlu1 %v9618_v62, %s8936_s18 }
0x1096   : > { %v2740_v44 = vpop.xlane.xlu1 %2739 }
0x1097   : > { %v2741_v45 = vsub.f32 %v2734_v6, %v2740_v44 }
0x1099   : > { %v2742_v46 = vmul.f32 1.442695, %v2741_v45 }
0x109a   : > { %v8323_v47 = vpop.permute.xlu1 %8322 }
0x109b   : > { %8526 = vpow2.f32 %v2742_v46  ;;  %v8325_v49 = vunpack.i.h.bf16 %v8323_v47  ;;  %v8324_v57 = vunpack.i.l.bf16 %v8323_v47 }
0x109d   : > { %v7951_v61 = vpack.c.bf16 %v8325_v49, %v8324_v57 }
0x109e   : > { %v8328_v17 = vpop.permute.xlu1 %8327 }
0x109f   : > { %7952 = vmatpush3.bf16.msra.mxu1 %v7951_v61  ;;  %v8330_v45 = vunpack.i.h.bf16 %v8328_v17  ;;  %v8329_v46 = vunpack.i.l.bf16 %v8328_v17 }
0x10a0   : > { %7953 = vmatprep.subr.bf16.mxu1 %v8929_v32 }
0x10a1   : > { %v7954_v49 = vpack.c.bf16 %v8330_v45, %v8329_v46 }
0x10a2   : > { %v3011_v22 = vpop.permute.xlu1 %3010 }
0x10a5   : > { %v9696_v23 = vpop.eup %8526 }
0x10a6   : > { %7503 = vmatmul.mubr.msk.f32.vlgmr.msra.gmra.mrb[32].mxu0 %vm970_vm4, %v9696_v23  ;;  %v8333_v25 = vpop.permute.xlu1 %8332 }
0x10a7   : > { %7949 = vmatpush3.bf16.xpose.msk.msra.mxu0 %vm9359_vm3, %v7947_v24  ;;  %7509 = vmatprep.mubr.msk.f32.mxu0 %vm8930_vm1, %v10420_v35  ;;  %v8335_v63 = vunpack.i.h.bf16 %v8333_v25  ;;  %v8334_v26 = vunpack.i.l.bf16 %v8333_v25 }
0x10a8   : > { %7957 = vmatprep.subr.bf16.mxu0 %v8929_v32 }
0x10a9   : > { %v7958_v30 = vpack.c.bf16 %v8335_v63, %v8334_v26 }
0x10ae   : > { %7510 = vmatmul.mubr.msk.f32.vlgmr.msra.gmra.mrb[34].mxu0 %vm890_vm2, %v2834_v27 }
0x10af   : > { %7959 = vmatpush3.bf16.msra.mxu0 %v7958_v30  ;;  %7530 = vmatprep.mubr.msk.f32.mxu0 %vm8930_vm1, %v10420_v35 }
0x10b0   : > { %7960 = vmatprep.subr.bf16.mxu0 %v8929_v32 }
0x1179   : > { %v9709_v31 = vpop.f32.mrb[32].mxu0 }
0x117a   : > { %v7504_v59 = vpop.f32.mrb[33].mxu0 }
0x1181   : > { %v2911_v40 = vpop.f32.mrb[34].mxu0 }
0x1182   : > { %v7511_v5 = vpop.f32.mrb[35].mxu0  ;;  %v2915_v6 = vsel %vm970_vm4, %v2911_v40, -inf }
0x1183   : > { %2916 = vmax.xlane.f32.xlu0 %v2915_v6 }
0x1210   : > { %v2917_v42 = vpop.xlane.xlu0 %2916 }
0x1211   : > { %v2918_v43 = vsub.f32 %v2911_v40, %v2917_v42  ;;  %v3188_v42 = vpop.permute.xlu1 %3187 }
0x1213   : > { %v2919_v44 = vmul.f32 1.442695, %v2918_v43 }
0x1215   : > { %8528 = vpow2.f32 %v2919_v44 }
0x121f   : > { %v9712_v47 = vpop.eup %8528 }
0x1220   : > { %7517 = vmatmul.mubr.msk.f32.vlgmr.msra.gmra.mrb[30].mxu1 %vm970_vm4, %v9712_v47 }
0x1221   : > { %7956 = vmatpush3.bf16.xpose.msk.msra.mxu1 %vm9359_vm3, %v7954_v49  ;;  %7523 = vmatprep.mubr.msk.f32.mxu1 %vm8930_vm1, %v10420_v35 }
0x1222   : > { %7964 = vmatprep.subr.bf16.mxu1 %v8929_v32 }
0x1228   : > { %7524 = vmatmul.mubr.msk.f32.vlgmr.msra.gmra.mrb[32].mxu1 %vm890_vm2, %v3011_v22 }
0x1229   : > { %7544 = vmatprep.mubr.msk.f32.mxu1 %vm8930_vm1, %v10420_v35 }
0x12f3   : > { %v9724_v57 = vpop.f32.mrb[30].mxu1 }
0x12f4   : > { %v7518_v61 = vpop.f32.mrb[31].mxu1 }
0x12fb   : > { %v3088_v16 = vpop.f32.mrb[32].mxu1 }
0x12fc   : > { %v7525_v17 = vpop.f32.mrb[33].mxu1  ;;  %v3092_v51 = vsel %vm970_vm4, %v3088_v16, -inf }
0x12fd   : > { %3093 = vmax.xlane.f32.xlu0 %v3092_v51 }
0x1313   : > { %8337 = vrot.lane.b32.xlu0 %v9397_v7, %s8936_s18 }
0x1317   : > { %8342 = vrot.lane.b32.xlu0 %v9476_v0, %s8936_s18 }
0x131b   : > { %8347 = vrot.lane.b32.xlu0 %v9397_v7, %s8937_s16 }
0x131f   : > { %3364 = vrot.lane.b32.xlu0 %v9618_v62, %s8937_s16 }
0x138a   : > { %v3094_v28 = vpop.xlane.xlu0 %3093 }
0x138b   : > { %v3095_v22 = vsub.f32 %v3088_v16, %v3094_v28 }
0x138d   : > { %v3096_v24 = vmul.f32 1.442695, %v3095_v22 }
0x138e   : > { %v8338_v25 = vpop.permute.xlu0 %8337 }
0x138f   : > { %8530 = vpow2.f32 %v3096_v24  ;;  %v8340_v30 = vunpack.i.h.bf16 %v8338_v25  ;;  %v8339_v59 = vunpack.i.l.bf16 %v8338_v25 }
0x1391   : > { %v7961_v6 = vpack.c.bf16 %v8340_v30, %v8339_v59 }
0x1392   : > { %v8343_v63 = vpop.permute.xlu0 %8342 }
0x1393   : > { %v8345_v26 = vunpack.i.h.bf16 %v8343_v63  ;;  %v8344_v27 = vunpack.i.l.bf16 %v8343_v63 }
0x1395   : > { %v7965_v40 = vpack.c.bf16 %v8345_v26, %v8344_v27 }
0x1396   : > { %v8348_v25 = vpop.permute.xlu0 %8347 }
0x1397   : > { %7966 = vmatpush3.bf16.msra.mxu1 %v7965_v40 }
0x1398   : > { %7967 = vmatprep.subr.bf16.mxu1 %v8929_v32 }
0x1399   : > { %v9736_v5 = vpop.eup %8530 }
0x139a   : > { %7531 = vmatmul.mubr.msk.f32.vlgmr.msra.gmra.mrb[36].mxu0 %vm970_vm4, %v9736_v5 }
0x139b   : > { %7963 = vmatpush3.bf16.xpose.msk.msra.mxu0 %vm9359_vm3, %v7961_v6  ;;  %7537 = vmatprep.mubr.msk.f32.mxu0 %vm8930_vm1, %v10420_v35  ;;  %v3365_v6 = vpop.permute.xlu0 %3364 }
0x139c   : > { %7971 = vmatprep.subr.bf16.mxu0 %v8929_v32 }
0x13a2   : > { %7538 = vmatmul.mubr.msk.f32.vlgmr.msra.gmra.mrb[38].mxu0 %vm890_vm2, %v3188_v42 }
0x13a3   : > { %7558 = vmatprep.mubr.msk.f32.mxu0 %vm8930_vm1, %v10420_v35 }
0x146d   : > { %v9748_v43 = vpop.f32.mrb[36].mxu0 }
0x146e   : > { %10464 = vst [vmem:[#allocation34_spill] sm:$0xff] %v9748_v43  ;;  %v7532_v44 = vpop.f32.mrb[37].mxu0 }
0x1475   : > { %v3265_v45 = vpop.f32.mrb[38].mxu0 }
0x1476   : > { %v7539_v46 = vpop.f32.mrb[39].mxu0  ;;  %v3269_v49 = vsel %vm970_vm4, %v3265_v45, -inf }
0x1477   : > { %3270 = vmax.xlane.f32.xlu1 %v3269_v49 }
0x1488   : > { %8352 = vrot.lane.b32.xlu1 %v9476_v0, %s8937_s16 }
0x148c   : > { %8357 = vrot.lane.b32.xlu1 %v9397_v7, %s8938_s3  ;;  %v8350_v7 = vunpack.i.h.bf16 %v8348_v25 }
0x1490   : > { %3541 = vrot.lane.b32.xlu1 %v9618_v62, %s8938_s3  ;;  %v8349_v62 = vunpack.i.l.bf16 %v8348_v25 }
0x1492   : > { %v7968_v27 = vpack.c.bf16 %v8350_v7, %v8349_v62  ;;  %v7986_v7 = vpack.c.bf16 %v9480_v2, %v9478_v1  ;;  %v9808_v2 = vld [vmem:[#allocation2 + $0x10] sm:$0xff] }
0x1494   : > { %8362 = vrot.lane.b32.xlu1 %v9476_v0, %s8938_s3 }
0x1498   : > { %8367 = vrot.lane.b32.xlu1 %v9407_v11, %s8932_s11 }
0x1504   : > { %v3271_v61 = vpop.xlane.xlu1 %3270 }
0x1505   : > { %v3272_v16 = vsub.f32 %v3265_v45, %v3271_v61 }
0x1507   : > { %v3273_v17 = vmul.f32 1.442695, %v3272_v16 }
0x1508   : > { %v8353_v51 = vpop.permute.xlu1 %8352 }
0x1509   : > { %8532 = vpow2.f32 %v3273_v17  ;;  %v8355_v28 = vunpack.i.h.bf16 %v8353_v51  ;;  %v8354_v22 = vunpack.i.l.bf16 %v8353_v51 }
0x150b   : > { %v7972_v24 = vpack.c.bf16 %v8355_v28, %v8354_v22 }
0x150c   : > { %v8358_v63 = vpop.permute.xlu1 %8357 }
0x150d   : > { %7973 = vmatpush3.bf16.msra.mxu0 %v7972_v24  ;;  %v8360_v28 = vunpack.i.h.bf16 %v8358_v63  ;;  %v8359_v22 = vunpack.i.l.bf16 %v8358_v63 }
0x150e   : > { %7974 = vmatprep.subr.bf16.mxu0 %v8929_v32 }
0x150f   : > { %v7975_v25 = vpack.c.bf16 %v8360_v28, %v8359_v22 }
0x1510   : > { %v3542_v26 = vpop.permute.xlu1 %3541 }
0x1513   : > { %v9762_v0 = vpop.eup %8532 }
0x1514   : > { %7545 = vmatmul.mubr.msk.f32.vlgmr.msra.gmra.mrb[34].mxu1 %vm970_vm4, %v9762_v0  ;;  %v8363_v30 = vpop.permute.xlu1 %8362 }
0x1515   : > { %7970 = vmatpush3.bf16.xpose.msk.msra.mxu1 %vm9359_vm3, %v7968_v27  ;;  %7551 = vmatprep.mubr.msk.f32.mxu1 %vm8930_vm1, %v10420_v35  ;;  %v8365_v59 = vunpack.i.h.bf16 %v8363_v30  ;;  %v8364_v40 = vunpack.i.l.bf16 %v8363_v30 }
0x1516   : > { %7978 = vmatprep.subr.bf16.mxu1 %v8929_v32 }
0x1517   : > { %v7979_v42 = vpack.c.bf16 %v8365_v59, %v8364_v40 }
0x151c   : > { %7552 = vmatmul.mubr.msk.f32.vlgmr.msra.gmra.mrb[36].mxu1 %vm890_vm2, %v3365_v6 }
0x151d   : > { %7980 = vmatpush3.bf16.msra.mxu1 %v7979_v42  ;;  %7572 = vmatprep.mubr.msk.f32.mxu1 %vm8930_vm1, %v10420_v35 }
0x151e   : > { %7981 = vmatprep.subr.bf16.mxu1 %v8929_v32 }
0x15e7   : > { %v9775_v44 = vpop.f32.mrb[34].mxu1 }
0x15e8   : > { %v7546_v45 = vpop.f32.mrb[35].mxu1 }
0x15ef   : > { %v3442_v46 = vpop.f32.mrb[36].mxu1 }
0x15f0   : > { %v7553_v49 = vpop.f32.mrb[37].mxu1  ;;  %v3446_v61 = vsel %vm970_vm4, %v3442_v46, -inf }
0x15f1   : > { %3447 = vmax.xlane.f32.xlu0 %v3446_v61 }
0x167e   : > { %v3448_v16 = vpop.xlane.xlu0 %3447 }
0x167f   : > { %v3449_v17 = vsub.f32 %v3442_v46, %v3448_v16 }
0x1681   : > { %v3450_v51 = vmul.f32 1.442695, %v3449_v17  ;;  %v8368_v17 = vpop.permute.xlu1 %8367 }
0x1683   : > { %8534 = vpow2.f32 %v3450_v51 }
0x168d   : > { %v9778_v24 = vpop.eup %8534 }
0x168e   : > { %7559 = vmatmul.mubr.msk.f32.vlgmr.msra.gmra.mrb[40].mxu0 %vm970_vm4, %v9778_v24 }
0x168f   : > { %7977 = vmatpush3.bf16.xpose.msk.msra.mxu0 %vm9359_vm3, %v7975_v25  ;;  %7565 = vmatprep.mubr.msk.f32.mxu0 %vm8930_vm1, %v10420_v35  ;;  %v8370_v25 = vunpack.i.h.bf16 %v8368_v17 }
0x1690   : > { %7985 = vmatprep.subr.bf16.mxu0 %v8929_v32 }
0x1696   : > { %7566 = vmatmul.mubr.msk.f32.vlgmr.msra.gmra.mrb[42].mxu0 %vm890_vm2, %v3542_v26 }
0x1697   : > { %7987 = vmatpush3.bf16.msra.mxu0 %v7986_v7  ;;  %7586 = vmatprep.mubr.msk.f32.mxu0 %vm8930_vm1, %v10420_v35  ;;  %v8369_v7 = vunpack.i.l.bf16 %v8368_v17 }
0x1698   : > { %7988 = vmatprep.subr.bf16.mxu0 %v8929_v32 }
0x1761   : > { %v9793_v63 = vpop.f32.mrb[40].mxu0 }
0x1762   : > { %v7560_v62 = vpop.f32.mrb[41].mxu0 }
0x1769   : > { %v3619_v27 = vpop.f32.mrb[42].mxu0 }
0x176a   : > { %v7567_v30 = vpop.f32.mrb[43].mxu0  ;;  %v3623_v59 = vsel %vm970_vm4, %v3619_v27, -inf }
0x176b   : > { %3624 = vmax.xlane.f32.xlu0 %v3623_v59  ;;  %v7989_v30 = vpack.c.bf16 %v8370_v25, %v8369_v7 }
0x17f8   : > { %v3625_v40 = vpop.xlane.xlu0 %3624 }
0x17f9   : > { %v3626_v6 = vsub.f32 %v3619_v27, %v3625_v40 }
0x17fb   : > { %v3627_v42 = vmul.f32 1.442695, %v3626_v6 }
0x17fd   : > { %8536 = vpow2.f32 %v3627_v42 }
0x1807   : > { %v9796_v1 = vpop.eup %8536 }
0x1808   : > { %7573 = vmatmul.mubr.msk.f32.vlgmr.msra.gmra.mrb[38].mxu1 %vm970_vm4, %v9796_v1 }
0x1809   : > { %7984 = vmatpush3.bf16.xpose.msk.msra.mxu1 %vm9359_vm3, %v7982_v10  ;;  %7579 = vmatprep.mubr.msk.f32.mxu1 %vm8930_vm1, %v10420_v35 }
0x180a   : > { %7992 = vmatprep.subr.bf16.mxu1 %v8929_v32 }
0x1810   : > { %7580 = vmatmul.mubr.msk.f32.vlgmr.msra.gmra.mrb[40].mxu1 %vm890_vm2, %v9808_v2 }
0x1811   : > { %7600 = vmatprep.mubr.msk.f32.mxu1 %vm8930_vm1, %v10420_v35 }
0x18db   : > { %v9814_v26 = vpop.f32.mrb[38].mxu1 }
0x18dc   : > { %10465 = vst [vmem:[#allocation35_spill] sm:$0xff] %v9814_v26  ;;  %v7574_v45 = vpop.f32.mrb[39].mxu1 }
0x18e3   : > { %v3801_v8 = vpop.f32.mrb[40].mxu1 }
0x18e4   : > { %v7581_v9 = vpop.f32.mrb[41].mxu1  ;;  %v3805_v10 = vsel %vm970_vm4, %v3801_v8, -inf }
0x18e5   : > { %3806 = vmax.xlane.f32.xlu0 %v3805_v10 }
0x18fb   : > { %3891 = vrot.lane.b32.xlu0 %v9808_v2, %s8932_s11 }
0x18ff   : > { %8372 = vrot.lane.b32.xlu0 %v9484_v3, %s8932_s11 }
0x1903   : > { %8377 = vrot.lane.b32.xlu0 %v9407_v11, %s8933_s12 }
0x1907   : > { %4070 = vrot.lane.b32.xlu0 %v9808_v2, %s8933_s12 }
0x1972   : > { %v3807_v46 = vpop.xlane.xlu0 %3806 }
0x1973   : > { %v3808_v49 = vsub.f32 %v3801_v8, %v3807_v46 }
0x1975   : > { %v3809_v61 = vmul.f32 1.442695, %v3808_v49 }
0x1976   : > { %v3892_v16 = vpop.permute.xlu0 %3891 }
0x1977   : > { %8538 = vpow2.f32 %v3809_v61 }
0x197a   : > { %v8373_v51 = vpop.permute.xlu0 %8372 }
0x197b   : > { %v8375_v28 = vunpack.i.h.bf16 %v8373_v51  ;;  %v8374_v22 = vunpack.i.l.bf16 %v8373_v51 }
0x197d   : > { %v7993_v62 = vpack.c.bf16 %v8375_v28, %v8374_v22 }
0x197e   : > { %v8378_v17 = vpop.permute.xlu0 %8377 }
0x197f   : > { %7994 = vmatpush3.bf16.msra.mxu1 %v7993_v62  ;;  %v8380_v51 = vunpack.i.h.bf16 %v8378_v17  ;;  %v8379_v28 = vunpack.i.l.bf16 %v8378_v17 }
0x1980   : > { %7995 = vmatprep.subr.bf16.mxu1 %v8929_v32 }
0x1981   : > { %v9826_v27 = vpop.eup %8538  ;;  %v7996_v25 = vpack.c.bf16 %v8380_v51, %v8379_v28 }
0x1982   : > { %7587 = vmatmul.mubr.msk.f32.vlgmr.msra.gmra.mrb[44].mxu0 %vm970_vm4, %v9826_v27  ;;  %v4071_v7 = vpop.permute.xlu0 %4070 }
0x1983   : > { %7991 = vmatpush3.bf16.xpose.msk.msra.mxu0 %vm9359_vm3, %v7989_v30  ;;  %7593 = vmatprep.mubr.msk.f32.mxu0 %vm8930_vm1, %v10420_v35 }
0x1984   : > { %7999 = vmatprep.subr.bf16.mxu0 %v8929_v32 }
0x198a   : > { %7594 = vmatmul.mubr.msk.f32.vlgmr.msra.gmra.mrb[46].mxu0 %vm890_vm2, %v3892_v16 }
0x198b   : > { %7614 = vmatprep.mubr.msk.f32.mxu0 %vm8930_vm1, %v10420_v35 }
0x1a55   : > { %v9838_v59 = vpop.f32.mrb[44].mxu0 }
0x1a56   : > { %10466 = vst [vmem:[#allocation36_spill] sm:$0xff] %v9838_v59  ;;  %v7588_v40 = vpop.f32.mrb[45].mxu0 }
0x1a5d   : > { %v3969_v6 = vpop.f32.mrb[46].mxu0 }
0x1a5e   : > { %v7595_v42 = vpop.f32.mrb[47].mxu0  ;;  %v3973_v45 = vsel %vm970_vm4, %v3969_v6, -inf }
0x1a5f   : > { %3974 = vmax.xlane.f32.xlu1 %v3973_v45 }
0x1a70   : > { %8382 = vrot.lane.b32.xlu1 %v9484_v3, %s8933_s12 }
0x1a74   : > { %8387 = vrot.lane.b32.xlu1 %v9407_v11, %s8934_s24 }
0x1a78   : > { %4247 = vrot.lane.b32.xlu1 %v9808_v2, %s8934_s24 }
0x1aec   : > { %v3975_v8 = vpop.xlane.xlu1 %3974 }
0x1aed   : > { %v3976_v9 = vsub.f32 %v3969_v6, %v3975_v8 }
0x1aef   : > { %v3977_v10 = vmul.f32 1.442695, %v3976_v9 }
0x1af0   : > { %v8383_v46 = vpop.permute.xlu1 %8382 }
0x1af1   : > { %8540 = vpow2.f32 %v3977_v10  ;;  %v8385_v49 = vunpack.i.h.bf16 %v8383_v46  ;;  %v8384_v61 = vunpack.i.l.bf16 %v8383_v46 }
0x1af3   : > { %v8000_v16 = vpack.c.bf16 %v8385_v49, %v8384_v61 }
0x1af5   : > { %8001 = vmatpush3.bf16.msra.mxu0 %v8000_v16  ;;  %v8388_v16 = vpop.permute.xlu1 %8387 }
0x1af6   : > { %8002 = vmatprep.subr.bf16.mxu0 %v8929_v32  ;;  %v8390_v17 = vunpack.i.h.bf16 %v8388_v16  ;;  %v8389_v51 = vunpack.i.l.bf16 %v8388_v16 }
0x1afb   : > { %v9848_v22 = vpop.eup %8540 }
0x1afc   : > { %7601 = vmatmul.mubr.msk.f32.vlgmr.msra.gmra.mrb[42].mxu1 %vm970_vm4, %v9848_v22 }
0x1afd   : > { %7998 = vmatpush3.bf16.xpose.msk.msra.mxu1 %vm9359_vm3, %v7996_v25  ;;  %7607 = vmatprep.mubr.msk.f32.mxu1 %vm8930_vm1, %v10420_v35  ;;  %v8003_v25 = vpack.c.bf16 %v8390_v17, %v8389_v51 }
0x1afe   : > { %8006 = vmatprep.subr.bf16.mxu1 %v8929_v32 }
0x1b04   : > { %7608 = vmatmul.mubr.msk.f32.vlgmr.msra.gmra.mrb[44].mxu1 %vm890_vm2, %v4071_v7  ;;  %v4248_v7 = vpop.permute.xlu1 %4247 }
0x1b05   : > { %7628 = vmatprep.mubr.msk.f32.mxu1 %vm8930_vm1, %v10420_v35 }
0x1bcf   : > { %v9860_v62 = vpop.f32.mrb[42].mxu1 }
0x1bd0   : > { %10467 = vst [vmem:[#allocation37_spill] sm:$0xff] %v9860_v62  ;;  %v7602_v30 = vpop.f32.mrb[43].mxu1 }
0x1bd7   : > { %v4148_v40 = vpop.f32.mrb[44].mxu1 }
0x1bd8   : > { %v7609_v6 = vpop.f32.mrb[45].mxu1  ;;  %v4152_v42 = vsel %vm970_vm4, %v4148_v40, -inf }
0x1bd9   : > { %4153 = vmax.xlane.f32.xlu0 %v4152_v42 }
0x1bef   : > { %8392 = vrot.lane.b32.xlu0 %v9484_v3, %s8934_s24 }
0x1bf3   : > { %8397 = vrot.lane.b32.xlu0 %v9407_v11, %s8935_s27 }
0x1bf7   : > { %4424 = vrot.lane.b32.xlu0 %v9808_v2, %s8935_s27 }
0x1c66   : > { %v4154_v45 = vpop.xlane.xlu0 %4153 }
0x1c67   : > { %v4155_v8 = vsub.f32 %v4148_v40, %v4154_v45 }
0x1c69   : > { %v4156_v9 = vmul.f32 1.442695, %v4155_v8 }
0x1c6a   : > { %v8393_v10 = vpop.permute.xlu0 %8392 }
0x1c6b   : > { %8542 = vpow2.f32 %v4156_v9  ;;  %v8395_v46 = vunpack.i.h.bf16 %v8393_v10  ;;  %v8394_v49 = vunpack.i.l.bf16 %v8393_v10 }
0x1c6d   : > { %v8007_v61 = vpack.c.bf16 %v8395_v46, %v8394_v49 }
0x1c6e   : > { %v8398_v17 = vpop.permute.xlu0 %8397 }
0x1c6f   : > { %8008 = vmatpush3.bf16.msra.mxu1 %v8007_v61  ;;  %v8400_v51 = vunpack.i.h.bf16 %v8398_v17 }
0x1c70   : > { %8009 = vmatprep.subr.bf16.mxu1 %v8929_v32 }
0x1c75   : > { %v9870_v28 = vpop.eup %8542 }
0x1c76   : > { %7615 = vmatmul.mubr.msk.f32.vlgmr.msra.gmra.mrb[48].mxu0 %vm970_vm4, %v9870_v28 }
0x1c77   : > { %8005 = vmatpush3.bf16.xpose.msk.msra.mxu0 %vm9359_vm3, %v8003_v25  ;;  %7621 = vmatprep.mubr.msk.f32.mxu0 %vm8930_vm1, %v10420_v35  ;;  %v8399_v25 = vunpack.i.l.bf16 %v8398_v17 }
0x1c78   : > { %8013 = vmatprep.subr.bf16.mxu0 %v8929_v32 }
0x1c7e   : > { %7622 = vmatmul.mubr.msk.f32.vlgmr.msra.gmra.mrb[50].mxu0 %vm890_vm2, %v4248_v7 }
0x1c7f   : > { %7642 = vmatprep.mubr.msk.f32.mxu0 %vm8930_vm1, %v10420_v35 }
0x1d49   : > { %v9882_v30 = vpop.f32.mrb[48].mxu0 }
0x1d4a   : > { %10468 = vst [vmem:[#allocation38_spill] sm:$0xff] %v9882_v30  ;;  %v7616_v40 = vpop.f32.mrb[49].mxu0 }
0x1d4b   : > { %v8010_v40 = vpack.c.bf16 %v8400_v51, %v8399_v25 }
0x1d51   : > { %v4325_v6 = vpop.f32.mrb[50].mxu0 }
0x1d52   : > { %v7623_v42 = vpop.f32.mrb[51].mxu0  ;;  %v4329_v45 = vsel %vm970_vm4, %v4325_v6, -inf }
0x1d53   : > { %4330 = vmax.xlane.f32.xlu1 %v4329_v45 }
0x1d64   : > { %8402 = vrot.lane.b32.xlu1 %v9484_v3, %s8935_s27 }
0x1d68   : > { %8407 = vrot.lane.b32.xlu1 %v9407_v11, %s8936_s18 }
0x1d6c   : > { %4601 = vrot.lane.b32.xlu1 %v9808_v2, %s8936_s18 }
0x1de0   : > { %v4331_v8 = vpop.xlane.xlu1 %4330 }
0x1de1   : > { %v4332_v9 = vsub.f32 %v4325_v6, %v4331_v8  ;;  %v4425_v6 = vpop.permute.xlu0 %4424 }
0x1de3   : > { %v4333_v10 = vmul.f32 1.442695, %v4332_v9 }
0x1de4   : > { %v8403_v46 = vpop.permute.xlu1 %8402 }
0x1de5   : > { %8544 = vpow2.f32 %v4333_v10  ;;  %v8405_v49 = vunpack.i.h.bf16 %v8403_v46  ;;  %v8404_v61 = vunpack.i.l.bf16 %v8403_v46 }
0x1de7   : > { %v8014_v16 = vpack.c.bf16 %v8405_v49, %v8404_v61 }
0x1de9   : > { %8015 = vmatpush3.bf16.msra.mxu0 %v8014_v16 }
0x1dea   : > { %8016 = vmatprep.subr.bf16.mxu0 %v8929_v32 }
0x1def   : > { %v9892_v7 = vpop.eup %8544 }
0x1df0   : > { %7629 = vmatmul.mubr.msk.f32.vlgmr.msra.gmra.mrb[46].mxu1 %vm970_vm4, %v9892_v7 }
0x1df1   : > { %8012 = vmatpush3.bf16.xpose.msk.msra.mxu1 %vm9359_vm3, %v8010_v40  ;;  %7635 = vmatprep.mubr.msk.f32.mxu1 %vm8930_vm1, %v10420_v35  ;;  %v8408_v40 = vpop.permute.xlu1 %8407 }
0x1df2   : > { %8020 = vmatprep.subr.bf16.mxu1 %v8929_v32 }
0x1df8   : > { %7636 = vmatmul.mubr.msk.f32.vlgmr.msra.gmra.mrb[48].mxu1 %vm890_vm2, %v4425_v6  ;;  %v8410_v6 = vunpack.i.h.bf16 %v8408_v40 }
0x1df9   : > { %7656 = vmatprep.mubr.msk.f32.mxu1 %vm8930_vm1, %v10420_v35 }
0x1ec3   : > { %v9904_v42 = vpop.f32.mrb[46].mxu1 }
0x1ec4   : > { %10469 = vst [vmem:[#allocation39_spill] sm:$0xff] %v9904_v42  ;;  %v7630_v45 = vpop.f32.mrb[47].mxu1 }
0x1ec5   : > { %v8409_v45 = vunpack.i.l.bf16 %v8408_v40 }
0x1ecb   : > { %v4502_v8 = vpop.f32.mrb[48].mxu1 }
0x1ecc   : > { %v7637_v9 = vpop.f32.mrb[49].mxu1  ;;  %v4506_v10 = vsel %vm970_vm4, %v4502_v8, -inf }
0x1ecd   : > { %4507 = vmax.xlane.f32.xlu0 %v4506_v10  ;;  %v8017_v10 = vpack.c.bf16 %v8410_v6, %v8409_v45 }
0x1ee3   : > { %8412 = vrot.lane.b32.xlu0 %v9484_v3, %s8936_s18 }
0x1ee7   : > { %8417 = vrot.lane.b32.xlu0 %v9407_v11, %s8937_s16 }
0x1eeb   : > { %4778 = vrot.lane.b32.xlu0 %v9808_v2, %s8937_s16 }
0x1f5a   : > { %v4508_v46 = vpop.xlane.xlu0 %4507 }
0x1f5b   : > { %v4509_v49 = vsub.f32 %v4502_v8, %v4508_v46  ;;  %v4602_v8 = vpop.permute.xlu1 %4601 }
0x1f5d   : > { %v4510_v61 = vmul.f32 1.442695, %v4509_v49 }
0x1f5e   : > { %v8413_v16 = vpop.permute.xlu0 %8412 }
0x1f5f   : > { %8546 = vpow2.f32 %v4510_v61  ;;  %v8415_v17 = vunpack.i.h.bf16 %v8413_v16  ;;  %v8414_v51 = vunpack.i.l.bf16 %v8413_v16 }
0x1f61   : > { %v8021_v25 = vpack.c.bf16 %v8415_v17, %v8414_v51 }
0x1f63   : > { %8022 = vmatpush3.bf16.msra.mxu1 %v8021_v25 }
0x1f64   : > { %8023 = vmatprep.subr.bf16.mxu1 %v8929_v32 }
0x1f69   : > { %v9914_v9 = vpop.eup %8546 }
0x1f6a   : > { %7643 = vmatmul.mubr.msk.f32.vlgmr.msra.gmra.mrb[52].mxu0 %vm970_vm4, %v9914_v9 }
0x1f6b   : > { %8019 = vmatpush3.bf16.xpose.msk.msra.mxu0 %vm9359_vm3, %v8017_v10  ;;  %7649 = vmatprep.mubr.msk.f32.mxu0 %vm8930_vm1, %v10420_v35 }
0x1f6c   : > { %8027 = vmatprep.subr.bf16.mxu0 %v8929_v32 }
0x1f72   : > { %7650 = vmatmul.mubr.msk.f32.vlgmr.msra.gmra.mrb[54].mxu0 %vm890_vm2, %v4602_v8 }
0x1f73   : > { %7670 = vmatprep.mubr.msk.f32.mxu0 %vm8930_vm1, %v10420_v35 }
0x203d   : > { %v9926_v46 = vpop.f32.mrb[52].mxu0 }
0x203e   : > { %v7644_v49 = vpop.f32.mrb[53].mxu0 }
0x203f   : > { %v8418_v49 = vpop.permute.xlu0 %8417 }
0x2045   : > { %v4679_v61 = vpop.f32.mrb[54].mxu0 }
0x2046   : > { %v7651_v16 = vpop.f32.mrb[55].mxu0  ;;  %v4683_v17 = vsel %vm970_vm4, %v4679_v61, -inf }
0x2047   : > { %4684 = vmax.xlane.f32.xlu1 %v4683_v17  ;;  %v8420_v16 = vunpack.i.h.bf16 %v8418_v49  ;;  %v8419_v17 = vunpack.i.l.bf16 %v8418_v49 }
0x2058   : > { %8422 = vrot.lane.b32.xlu1 %v9484_v3, %s8937_s16 }
0x205c   : > { %8427 = vrot.lane.b32.xlu1 %v9407_v11, %s8938_s3  ;;  %v8024_v11 = vpack.c.bf16 %v8420_v16, %v8419_v17 }
0x2060   : > { %4955 = vrot.lane.b32.xlu1 %v9808_v2, %s8938_s3  ;;  %v4779_v2 = vpop.permute.xlu0 %4778 }
0x20d4   : > { %v4685_v51 = vpop.xlane.xlu1 %4684 }
0x20d5   : > { %v4686_v25 = vsub.f32 %v4679_v61, %v4685_v51 }
0x20d7   : > { %v4687_v40 = vmul.f32 1.442695, %v4686_v25 }
0x20d8   : > { %v8423_v6 = vpop.permute.xlu1 %8422 }
0x20d9   : > { %8548 = vpow2.f32 %v4687_v40  ;;  %v8425_v45 = vunpack.i.h.bf16 %v8423_v6  ;;  %v8424_v10 = vunpack.i.l.bf16 %v8423_v6 }
0x20db   : > { %v8028_v8 = vpack.c.bf16 %v8425_v45, %v8424_v10 }
0x20dd   : > { %8029 = vmatpush3.bf16.msra.mxu0 %v8028_v8 }
0x20de   : > { %8030 = vmatprep.subr.bf16.mxu0 %v8929_v32 }
0x20e3   : > { %v9936_v14 = vpop.eup %8548 }
0x20e4   : > { %7657 = vmatmul.mubr.msk.f32.vlgmr.msra.gmra.mrb[50].mxu1 %vm970_vm4, %v9936_v14 }
0x20e5   : > { %8026 = vmatpush3.bf16.xpose.msk.msra.mxu1 %vm9359_vm3, %v8024_v11  ;;  %7663 = vmatprep.mubr.msk.f32.mxu1 %vm8930_vm1, %v10420_v35 }
0x20e6   : > { %8034 = vmatprep.subr.bf16.mxu1 %v8929_v32 }
0x20ec   : > { %7664 = vmatmul.mubr.msk.f32.vlgmr.msra.gmra.mrb[52].mxu1 %vm890_vm2, %v4779_v2  ;;  %v8428_v2 = vpop.permute.xlu1 %8427 }
0x20ed   : > { %7684 = vmatprep.mubr.msk.f32.mxu1 %vm8930_vm1, %v10420_v35 }
0x21b7   : > { %v9948_v61 = vpop.f32.mrb[50].mxu1 }
0x21b8   : > { %v7658_v51 = vpop.f32.mrb[51].mxu1 }
0x21b9   : > { %v8430_v51 = vunpack.i.h.bf16 %v8428_v2 }
0x21bf   : > { %v4856_v25 = vpop.f32.mrb[52].mxu1 }
0x21c0   : > { %v7665_v40 = vpop.f32.mrb[53].mxu1  ;;  %v4860_v6 = vsel %vm970_vm4, %v4856_v25, -inf }
0x21c1   : > { %4861 = vmax.xlane.f32.xlu0 %v4860_v6  ;;  %v8429_v40 = vunpack.i.l.bf16 %v8428_v2 }
0x21c3   : > { %v8031_v6 = vpack.c.bf16 %v8430_v51, %v8429_v40  ;;  %v8636_v51 = vld [vmem:[#allocation3 + $0x30] sm:$0xff]  ;;  %v8637_v40 = vld [vmem:[#allocation3 + $0x38] sm:$0xff] }
0x21d7   : > { %8432 = vrot.lane.b32.xlu0 %v9484_v3, %s8938_s3  ;;  %v10470_v3 = vmov 0.0  }
0x224e   : > { %v4862_v45 = vpop.xlane.xlu0 %4861 }
0x224f   : > { %v4863_v10 = vsub.f32 %v4856_v25, %v4862_v45  ;;  %v4956_v25 = vpop.permute.xlu1 %4955  ;;  %v8634_v45 = vld [vmem:[#allocation4 + $0x30] sm:$0xff] }
0x2251   : > { %v4864_v8 = vmul.f32 1.442695, %v4863_v10  ;;  %v8635_v10 = vld [vmem:[#allocation4 + $0x38] sm:$0xff] }
0x2252   : > { %v8433_v49 = vpop.permute.xlu0 %8432 }
0x2253   : > { %8550 = vpow2.f32 %v4864_v8  ;;  %v8435_v16 = vunpack.i.h.bf16 %v8433_v49  ;;  %v8434_v17 = vunpack.i.l.bf16 %v8433_v49  ;;  %v8042_v8 = vpack.c.bf16 %v8635_v10, %v8634_v45 }
0x2255   : > { %v8035_v11 = vpack.c.bf16 %v8435_v16, %v8434_v17 }
0x2257   : > { %8036 = vmatpush3.bf16.msra.mxu1 %v8035_v11 }
0x2258   : > { %8037 = vmatprep.subr.bf16.mxu1 %v8929_v32 }
0x225d   : > { %v9954_v35 = vpop.eup %8550 }
0x225e   : > { %7671 = vmatmul.mubr.msk.f32.vlgmr.msra.gmra.mrb[56].mxu0 %vm970_vm4, %v9954_v35 }
0x225f   : > { %8033 = vmatpush3.bf16.xpose.msk.msra.mxu0 %vm9359_vm3, %v8031_v6  ;;  %7677 = vmatprep.mubr.msk.f32.mxu0 %vm8930_vm1, %v10470_v3  ;;  %v8436_v6 = vpack.i.bf16 %v8637_v40, %v8636_v51  ;;  %v10471_v40 = vpack.c.bf16 %v9411_v13, %v9409_v12 }
0x2260   : > { %8041 = vmatprep.subr.bf16.mxu0 %v8929_v32 }
0x2266   : > { %7678 = vmatmul.mubr.msk.f32.vlgmr.msra.gmra.mrb[58].mxu0 %vm890_vm2, %v4956_v25  ;;  %v9971_v25 = vld [vmem:[#allocation2 + $0x18] sm:$0xff] }
0x2267   : > { %8043 = vmatpush3.bf16.msra.mxu0 %v8042_v8  ;;  %7698 = vmatprep.mubr.msk.f32.mxu0 %vm8930_vm1, %v10470_v3 }
0x2268   : > { %8044 = vmatprep.subr.bf16.mxu0 %v8929_v32 }
0x2331   : > { %v9967_v49 = vpop.f32.mrb[56].mxu0 }
0x2332   : > { %v7672_v16 = vpop.f32.mrb[57].mxu0 }
0x2339   : > { %v5033_v17 = vpop.f32.mrb[58].mxu0 }
0x233a   : > { %v7679_v11 = vpop.f32.mrb[59].mxu0  ;;  %v5037_v2 = vsel %vm970_vm4, %v5033_v17, -inf }
0x233b   : > { %5038 = vmax.xlane.f32.xlu1 %v5037_v2 }
0x234c   : > { %8437 = vrot.lane.b32.xlu1 %v8436_v6, %s8932_s11 }
0x2350   : > { %5305 = vrot.lane.b32.xlu1 %v9971_v25, %s8932_s11 }
0x2354   : > { %8442 = vrot.lane.b32.xlu1 %v9486_v18, %s8932_s11 }
0x2358   : > { %5484 = vrot.lane.b32.xlu1 %v9971_v25, %s8933_s12 }
0x23c8   : > { %v5039_v45 = vpop.xlane.xlu1 %5038 }
0x23c9   : > { %v5040_v10 = vsub.f32 %v5033_v17, %v5039_v45 }
0x23cb   : > { %v5041_v8 = vmul.f32 1.442695, %v5040_v10 }
0x23cc   : > { %v8438_v16 = vpop.permute.xlu1 %8437 }
0x23cd   : > { %8552 = vpow2.f32 %v5041_v8  ;;  %v8439_v19 = vunpack.i.l.bf16 %v8438_v16 }
0x23d0   : > { %v5306_v11 = vpop.permute.xlu1 %5305 }
0x23d4   : > { %v8443_v51 = vpop.permute.xlu1 %8442 }
0x23d5   : > { %v8445_v17 = vunpack.i.h.bf16 %v8443_v51  ;;  %v8444_v6 = vunpack.i.l.bf16 %v8443_v51 }
0x23d7   : > { %v9979_v2 = vpop.eup %8552  ;;  %v8049_v45 = vpack.c.bf16 %v8445_v17, %v8444_v6  ;;  %v8440_v6 = vunpack.i.h.bf16 %v8438_v16 }
0x23d8   : > { %7685 = vmatmul.mubr.msk.f32.vlgmr.msra.gmra.mrb[54].mxu1 %vm970_vm4, %v9979_v2 }
0x23d9   : > { %8040 = vmatpush3.bf16.xpose.msk.msra.mxu1 %vm9359_vm3, %v10471_v40  ;;  %7691 = vmatprep.mubr.msk.f32.mxu1 %vm8930_vm1, %v10470_v3  ;;  %v8045_v26 = vpack.c.bf16 %v8440_v6, %v8439_v19 }
0x23da   : > { %8048 = vmatprep.subr.bf16.mxu1 %v8929_v32 }
0x23e0   : > { %7692 = vmatmul.mubr.msk.f32.vlgmr.msra.gmra.mrb[56].mxu1 %vm890_vm2, %v9971_v25 }
0x23e1   : > { %8050 = vmatpush3.bf16.msra.mxu1 %v8049_v45  ;;  %7712 = vmatprep.mubr.msk.f32.mxu1 %vm8930_vm1, %v10470_v3 }
0x23e2   : > { %8051 = vmatprep.subr.bf16.mxu1 %v8929_v32 }
0x24ab   : > { %v9996_v12 = vpop.f32.mrb[54].mxu1 }
0x24ac   : > { %v7686_v13 = vpop.f32.mrb[55].mxu1 }
0x24b3   : > { %v5215_v10 = vpop.f32.mrb[56].mxu1 }
0x24b4   : > { %v7693_v8 = vpop.f32.mrb[57].mxu1  ;;  %v5219_v40 = vsel %vm970_vm4, %v5215_v10, -inf }
0x24b5   : > { %5220 = vmax.xlane.f32.xlu0 %v5219_v40 }
0x2542   : > { %v5221_v59 = vpop.xlane.xlu0 %5220 }
0x2543   : > { %v5222_v51 = vsub.f32 %v5215_v10, %v5221_v59 }
0x2545   : > { %v5223_v17 = vmul.f32 1.442695, %v5222_v51 }
0x2547   : > { %8554 = vpow2.f32 %v5223_v17 }
0x2551   : > { %v9999_v45 = vpop.eup %8554 }
0x2552   : > { %7699 = vmatmul.mubr.msk.f32.vlgmr.msra.gmra.mrb[60].mxu0 %vm970_vm4, %v9999_v45 }
0x2553   : > { %8047 = vmatpush3.bf16.xpose.msk.msra.mxu0 %vm9359_vm3, %v8045_v26  ;;  %7705 = vmatprep.mubr.msk.f32.mxu0 %vm8930_vm1, %v10470_v3 }
0x2554   : > { %8055 = vmatprep.subr.bf16.mxu0 %v8929_v32 }
0x255a   : > { %7706 = vmatmul.mubr.msk.f32.vlgmr.msra.gmra.mrb[62].mxu0 %vm890_vm2, %v5306_v11 }
0x255b   : > { %7726 = vmatprep.mubr.msk.f32.mxu0 %vm8930_vm1, %v10470_v3 }
0x2625   : > { %v10011_v59 = vpop.f32.mrb[60].mxu0 }
0x2626   : > { %v7700_v16 = vpop.f32.mrb[61].mxu0 }
0x262d   : > { %v5383_v19 = vpop.f32.mrb[62].mxu0 }
0x262e   : > { %v7707_v13 = vpop.f32.mrb[63].mxu0  ;;  %v5387_v10 = vsel %vm970_vm4, %v5383_v19, -inf }
0x262f   : > { %5388 = vmax.xlane.f32.xlu0 %v5387_v10 }
0x2645   : > { %8447 = vrot.lane.b32.xlu0 %v9417_v15, %s8933_s12 }
0x2649   : > { %8452 = vrot.lane.b32.xlu0 %v9486_v18, %s8933_s12  ;;  %s10486_s12 = sld [smem:[#allocation45_spill]] }
0x264d   : > { %8457 = vrot.lane.b32.xlu0 %v9417_v15, %s8934_s24 }
0x264f   : > { %s10339_s8 = scalar_lea.hbm %s10486_s12, %s7024_s20 }
0x2651   : > { %5661 = vrot.lane.b32.xlu0 %v9971_v25, %s8934_s24 }
0x26bc   : > { %v5389_v26 = vpop.xlane.xlu0 %5388 }
0x26bd   : > { %v5390_v11 = vsub.f32 %v5383_v19, %v5389_v26  ;;  %v5485_v19 = vpop.permute.xlu1 %5484 }
0x26bf   : > { %v5391_v8 = vmul.f32 1.442695, %v5390_v11 }
0x26c0   : > { %v8448_v40 = vpop.permute.xlu0 %8447 }
0x26c1   : > { %8556 = vpow2.f32 %v5391_v8  ;;  %v8450_v16 = vunpack.i.h.bf16 %v8448_v40  ;;  %v8449_v13 = vunpack.i.l.bf16 %v8448_v40 }
0x26c3   : > { %v8052_v4 = vpack.c.bf16 %v8450_v16, %v8449_v13 }
0x26c4   : > { %v8453_v51 = vpop.permute.xlu0 %8452 }
0x26c5   : > { %v8455_v17 = vunpack.i.h.bf16 %v8453_v51  ;;  %v8454_v6 = vunpack.i.l.bf16 %v8453_v51 }
0x26c7   : > { %v8056_v10 = vpack.c.bf16 %v8455_v17, %v8454_v6 }
0x26c9   : > { %8057 = vmatpush3.bf16.msra.mxu0 %v8056_v10 }
0x26ca   : > { %8058 = vmatprep.subr.bf16.mxu0 %v8929_v32 }
0x26cb   : > { %v10023_v42 = vpop.eup %8556 }
0x26cc   : > { %7713 = vmatmul.mubr.msk.f32.vlgmr.msra.gmra.mrb[58].mxu1 %vm970_vm4, %v10023_v42 }
0x26cd   : > { %8054 = vmatpush3.bf16.xpose.msk.msra.mxu1 %vm9359_vm3, %v8052_v4  ;;  %7719 = vmatprep.mubr.msk.f32.mxu1 %vm8930_vm1, %v10470_v3 }
0x26ce   : > { %8062 = vmatprep.subr.bf16.mxu1 %v8929_v32 }
0x26d4   : > { %7720 = vmatmul.mubr.msk.f32.vlgmr.msra.gmra.mrb[60].mxu1 %vm890_vm2, %v5485_v19 }
0x26d5   : > { %7740 = vmatprep.mubr.msk.f32.mxu1 %vm8930_vm1, %v10470_v3 }
0x279f   : > { %v10035_v26 = vpop.f32.mrb[58].mxu1 }
0x27a0   : > { %v7714_v11 = vpop.f32.mrb[59].mxu1 }
0x27a1   : > { %v8458_v11 = vpop.permute.xlu0 %8457 }
0x27a2   : > { %v8459_v30 = vunpack.i.l.bf16 %v8458_v11 }
0x27a7   : > { %v5562_v8 = vpop.f32.mrb[60].mxu1 }
0x27a8   : > { %v7721_v40 = vpop.f32.mrb[61].mxu1  ;;  %v5566_v51 = vsel %vm970_vm4, %v5562_v8, -inf }
0x27a9   : > { %5567 = vmax.xlane.f32.xlu1 %v5566_v51  ;;  %v8460_v51 = vunpack.i.h.bf16 %v8458_v11 }
0x27ab   : > { %v8059_v43 = vpack.c.bf16 %v8460_v51, %v8459_v30 }
0x27ba   : > { %8462 = vrot.lane.b32.xlu1 %v9486_v18, %s8934_s24  ;;  %s6667_s24 = scalar_lea.sflag [#allocation8], %s9294_s19 }
0x27be   : > { %8467 = vrot.lane.b32.xlu1 %v9417_v15, %s8935_s27 }
0x27c2   : > { %5838 = vrot.lane.b32.xlu1 %v9971_v25, %s8935_s27 }
0x27c6   : > { %8472 = vrot.lane.b32.xlu1 %v9486_v18, %s8935_s27  ;;  %s8946_s27 = smov [#allocation18]  }
0x27ca   : > { %6015 = vrot.lane.b32.xlu1 %v9971_v25, %s8936_s18 }
0x2836   : > { %v5568_v4 = vpop.xlane.xlu1 %5567 }
0x2837   : > { %v5569_v17 = vsub.f32 %v5562_v8, %v5568_v4 }
0x2839   : > { %v5570_v6 = vmul.f32 1.442695, %v5569_v17 }
0x283a   : > { %v8463_v16 = vpop.permute.xlu1 %8462 }
0x283b   : > { %8558 = vpow2.f32 %v5570_v6  ;;  %v8465_v13 = vunpack.i.h.bf16 %v8463_v16  ;;  %v8464_v10 = vunpack.i.l.bf16 %v8463_v16  ;;  %v5662_v6 = vpop.permute.xlu0 %5661 }
0x283d   : > { %v8063_v19 = vpack.c.bf16 %v8465_v13, %v8464_v10 }
0x283e   : > { %v8468_v40 = vpop.permute.xlu1 %8467 }
0x283f   : > { %8064 = vmatpush3.bf16.msra.mxu1 %v8063_v19 }
0x2840   : > { %8065 = vmatprep.subr.bf16.mxu1 %v8929_v32 }
0x2842   : > { %v5839_v21 = vpop.permute.xlu1 %5838 }
0x2845   : > { %v10049_v62 = vpop.eup %8558 }
0x2846   : > { %7727 = vmatmul.mubr.msk.f32.vlgmr.msra.gmra.mrb[64].mxu0 %vm970_vm4, %v10049_v62  ;;  %v8473_v8 = vpop.permute.xlu1 %8472 }
0x2847   : > { %8061 = vmatpush3.bf16.xpose.msk.msra.mxu0 %vm9359_vm3, %v8059_v43  ;;  %7733 = vmatprep.mubr.msk.f32.mxu0 %vm8930_vm1, %v10470_v3  ;;  %v8475_v4 = vunpack.i.h.bf16 %v8473_v8  ;;  %v8474_v17 = vunpack.i.l.bf16 %v8473_v8 }
0x2848   : > { %8069 = vmatprep.subr.bf16.mxu0 %v8929_v32 }
0x2849   : > { %v8070_v16 = vpack.c.bf16 %v8475_v4, %v8474_v17  ;;  %v8470_v4 = vunpack.i.h.bf16 %v8468_v40  ;;  %v8469_v17 = vunpack.i.l.bf16 %v8468_v40 }
0x284e   : > { %7734 = vmatmul.mubr.msk.f32.vlgmr.msra.gmra.mrb[66].mxu0 %vm890_vm2, %v5662_v6 }
0x284f   : > { %8071 = vmatpush3.bf16.msra.mxu0 %v8070_v16  ;;  %7754 = vmatprep.mubr.msk.f32.mxu0 %vm8930_vm1, %v10470_v3  ;;  %v8066_v16 = vpack.c.bf16 %v8470_v4, %v8469_v17 }
0x2850   : > { %8072 = vmatprep.subr.bf16.mxu0 %v8929_v32 }
0x2919   : > { %v10062_v30 = vpop.f32.mrb[64].mxu0 }
0x291a   : > { %v7728_v43 = vpop.f32.mrb[65].mxu0 }
0x2921   : > { %v5739_v13 = vpop.f32.mrb[66].mxu0 }
0x2922   : > { %v7735_v10 = vpop.f32.mrb[67].mxu0  ;;  %v5743_v19 = vsel %vm970_vm4, %v5739_v13, -inf }
0x2923   : > { %5744 = vmax.xlane.f32.xlu0 %v5743_v19 }
0x29b0   : > { %v5745_v11 = vpop.xlane.xlu0 %5744 }
0x29b1   : > { %v5746_v51 = vsub.f32 %v5739_v13, %v5745_v11 }
0x29b3   : > { %v5747_v8 = vmul.f32 1.442695, %v5746_v51 }
0x29b5   : > { %8560 = vpow2.f32 %v5747_v8 }
0x29bf   : > { %v10065_v6 = vpop.eup %8560 }
0x29c0   : > { %7741 = vmatmul.mubr.msk.f32.vlgmr.msra.gmra.mrb[62].mxu1 %vm970_vm4, %v10065_v6 }
0x29c1   : > { %8068 = vmatpush3.bf16.xpose.msk.msra.mxu1 %vm9359_vm3, %v8066_v16  ;;  %7747 = vmatprep.mubr.msk.f32.mxu1 %vm8930_vm1, %v10470_v3 }
0x29c2   : > { %8076 = vmatprep.subr.bf16.mxu1 %v8929_v32 }
0x29c8   : > { %7748 = vmatmul.mubr.msk.f32.vlgmr.msra.gmra.mrb[64].mxu1 %vm890_vm2, %v5839_v21 }
0x29c9   : > { %7768 = vmatprep.mubr.msk.f32.mxu1 %vm8930_vm1, %v10470_v3 }
0x2a93   : > { %v10077_v40 = vpop.f32.mrb[62].mxu1 }
0x2a94   : > { %10472 = vst [vmem:[#allocation40_spill] sm:$0xff] %v10077_v40  ;;  %v7742_v43 = vpop.f32.mrb[63].mxu1 }
0x2a9b   : > { %v5916_v13 = vpop.f32.mrb[64].mxu1 }
0x2a9c   : > { %v7749_v10 = vpop.f32.mrb[65].mxu1  ;;  %v5920_v19 = vsel %vm970_vm4, %v5916_v13, -inf }
0x2a9d   : > { %5921 = vmax.xlane.f32.xlu0 %v5920_v19 }
0x2ab3   : > { %8477 = vrot.lane.b32.xlu0 %v9417_v15, %s8936_s18 }
0x2ab7   : > { %8482 = vrot.lane.b32.xlu0 %v9486_v18, %s8936_s18  ;;  %s8844_s18 = sshll.u32 %s8946_s27, 4  ;;  %s8845_s18 = int_to_ptr.vmem [resolvable:$false] %s8844_s18 }
0x2ab8   : > { %p8847_p13 = scmp.lt.s32.totalorder %s10334_s25, %s8845_s18 }
0x2abb   : > { %8487 = vrot.lane.b32.xlu0 %v9417_v15, %s8937_s16 }
0x2abf   : > { %6192 = vrot.lane.b32.xlu0 %v9971_v25, %s8937_s16 }
0x2b2a   : > { %v5922_v21 = vpop.xlane.xlu0 %5921 }
0x2b2b   : > { %v5923_v11 = vsub.f32 %v5916_v13, %v5922_v21  ;;  %v6016_v13 = vpop.permute.xlu1 %6015 }
0x2b2d   : > { %v5924_v51 = vmul.f32 1.442695, %v5923_v11 }
0x2b2e   : > { %v8478_v8 = vpop.permute.xlu0 %8477 }
0x2b2f   : > { %8562 = vpow2.f32 %v5924_v51  ;;  %v8480_v43 = vunpack.i.h.bf16 %v8478_v8  ;;  %v8479_v10 = vunpack.i.l.bf16 %v8478_v8 }
0x2b31   : > { %v8073_v38 = vpack.c.bf16 %v8480_v43, %v8479_v10 }
0x2b32   : > { %v8483_v4 = vpop.permute.xlu0 %8482 }
0x2b33   : > { %v8485_v17 = vunpack.i.h.bf16 %v8483_v4  ;;  %v8484_v16 = vunpack.i.l.bf16 %v8483_v4 }
0x2b35   : > { %v8077_v19 = vpack.c.bf16 %v8485_v17, %v8484_v16  ;;  %v3275_v17 = vsel %vm970_vm4, %v9762_v0, 0.0  ;;  %v5393_v16 = vsel %vm970_vm4, %v10023_v42, 0.0  ;;  %v4866_v0 = vsel %vm970_vm4, %v9954_v35, 0.0 }
0x2b36   : > { %v5225_v42 = vsel %vm970_vm4, %v9999_v45, 0.0 }
0x2b37   : > { %8078 = vmatpush3.bf16.msra.mxu1 %v8077_v19 }
0x2b38   : > { %8079 = vmatprep.subr.bf16.mxu1 %v8929_v32 }
0x2b39   : > { %v10089_v40 = vpop.eup %8562 }
0x2b3a   : > { %7755 = vmatmul.mubr.msk.f32.vlgmr.msra.gmra.mrb[68].mxu0 %vm970_vm4, %v10089_v40 }
0x2b3b   : > { %8075 = vmatpush3.bf16.xpose.msk.msra.mxu0 %vm9359_vm3, %v8073_v38  ;;  %7761 = vmatprep.mubr.msk.f32.mxu0 %vm8930_vm1, %v10470_v3  ;;  %v1324_v38 = vsel %vm970_vm4, %v9512_v48, 0.0  ;;  %v4689_v48 = vsel %vm970_vm4, %v9936_v14, 0.0 }
0x2b3c   : > { %8083 = vmatprep.subr.bf16.mxu0 %v8929_v32 }
0x2b42   : > { %7762 = vmatmul.mubr.msk.f32.vlgmr.msra.gmra.mrb[70].mxu0 %vm890_vm2, %v6016_v13 }
0x2b43   : > { %7782 = vmatprep.mubr.msk.f32.mxu0 %vm8930_vm1, %v10470_v3 }
0x2c0d   : > { %v10101_v21 = vpop.f32.mrb[68].mxu0 }
0x2c0e   : > { %v7756_v11 = vpop.f32.mrb[69].mxu0 }
0x2c0f   : > { %v8488_v11 = vpop.permute.xlu0 %8487 }
0x2c15   : > { %v6093_v51 = vpop.f32.mrb[70].mxu0 }
0x2c16   : > { %v7763_v8 = vpop.f32.mrb[71].mxu0  ;;  %v6097_v4 = vsel %vm970_vm4, %v6093_v51, -inf }
0x2c17   : > { %6098 = vmax.xlane.f32.xlu1 %v6097_v4 }
0x2c28   : > { %8492 = vrot.lane.b32.xlu1 %v9486_v18, %s8937_s16  ;;  %s8846_s16 = scalar_lea.vmem %s8845_s18, 1024 }
0x2c29   : > { %p8848_p7 = scmp.lt.s32.totalorder %s8846_s16, %s8840_s9 }
0x2c2b   : > { %p8849_p9 = por %p8848_p7, %p8847_p13 }
0x2c2c   : > { %8497 = vrot.lane.b32.xlu1 %v9417_v15, %s8938_s3  ;;  %v3452_v15 = vsel %vm970_vm4, %v9778_v24, 0.0  ;;  %v5043_v24 = vsel %vm970_vm4, %v9979_v2, 0.0  ;;  %v8489_v2 = vunpack.i.l.bf16 %v8488_v11 }
0x2c2d   : > { %p8850_p12 = pnand %p8849_p9, %p8843_p11 }
0x2c30   : > { %6369 = vrot.lane.b32.xlu1 %v9971_v25, %s8938_s3  ;;  %v5572_v25 = vsel %vm970_vm4, %v10049_v62, 0.0  ;;  %v2397_v62 = vsel %vm970_vm4, %v9646_v50, 0.0  ;;  %v8490_v50 = vunpack.i.h.bf16 %v8488_v11 }
0x2c34   : > { %8502 = vrot.lane.b32.xlu1 %v9486_v18, %s8938_s3  ;;  %v4512_v18 = vsel %vm970_vm4, %v9914_v9, 0.0 }
0x2c58   : > { %1325 = vadd.xlane.f32.xlu1 %v1324_v38  ;;  %v8080_v38 = vpack.c.bf16 %v8490_v50, %v8489_v2 }
0x2c5c   : > { %3276 = vadd.xlane.f32.xlu1 %v3275_v17 }
0x2c60   : > { %5394 = vadd.xlane.f32.xlu1 %v5393_v16 }
0x2c64   : > { %3453 = vadd.xlane.f32.xlu1 %v3452_v15  ;;  %v6193_v15 = vpop.permute.xlu0 %6192 }
0x2c68   : > { %5573 = vadd.xlane.f32.xlu1 %v5572_v25 }
0x2c6c   : > { %4513 = vadd.xlane.f32.xlu1 %v4512_v18 }
0x2c70   : > { %4690 = vadd.xlane.f32.xlu1 %v4689_v48 }
0x2c74   : > { %4867 = vadd.xlane.f32.xlu1 %v4866_v0 }
0x2c78   : > { %5044 = vadd.xlane.f32.xlu1 %v5043_v24 }
0x2c7c   : > { %2398 = vadd.xlane.f32.xlu1 %v2397_v62 }
0x2c80   : > { %5226 = vadd.xlane.f32.xlu1 %v5225_v42 }
0x2ca4   : > { %v6099_v9 = vpop.xlane.xlu1 %6098 }
0x2ca5   : > { %v6100_v43 = vsub.f32 %v6093_v51, %v6099_v9 }
0x2ca7   : > { %v6101_v14 = vmul.f32 1.442695, %v6100_v43 }
0x2ca8   : > { %v8493_v10 = vpop.permute.xlu1 %8492 }
0x2ca9   : > { %8564 = vpow2.f32 %v6101_v14  ;;  %v8495_v19 = vunpack.i.h.bf16 %v8493_v10  ;;  %v8494_v35 = vunpack.i.l.bf16 %v8493_v10 }
0x2cab   : > { %v8084_v13 = vpack.c.bf16 %v8495_v19, %v8494_v35 }
0x2cac   : > { %v10134_v8 = vpop.permute.xlu1 %8497 }
0x2cad   : > { %8085 = vmatpush3.bf16.msra.mxu0 %v8084_v13 }
0x2cae   : > { %8086 = vmatprep.subr.bf16.mxu0 %v8929_v32 }
0x2cb0   : > { %v10137_v4 = vpop.permute.xlu1 %6369 }
0x2cb3   : > { %v10139_v45 = vpop.eup %8564 }
0x2cb4   : > { %7769 = vmatmul.mubr.msk.f32.vlgmr.msra.gmra.mrb[66].mxu1 %vm970_vm4, %v10139_v45  ;;  %v8503_v51 = vpop.permute.xlu1 %8502  ;;  %v6103_v34 = vsel %vm970_vm4, %v10139_v45, 0.0 }
0x2cb5   : > { %8082 = vmatpush3.bf16.xpose.msk.msra.mxu1 %vm9359_vm3, %v8080_v38  ;;  %7775 = vmatprep.mubr.msk.f32.mxu1 %vm8930_vm1, %v10470_v3  ;;  %v8505_v17 = vunpack.i.h.bf16 %v8503_v51  ;;  %v8504_v16 = vunpack.i.l.bf16 %v8503_v51 }
0x2cb6   : > { %8090 = vmatprep.subr.bf16.mxu1 %v8929_v32 }
0x2cb7   : > { %v8091_v25 = vpack.c.bf16 %v8505_v17, %v8504_v16 }
0x2cbc   : > { %7776 = vmatmul.mubr.msk.f32.vlgmr.msra.gmra.mrb[68].mxu1 %vm890_vm2, %v6193_v15 }
0x2cbd   : > { %8092 = vmatpush3.bf16.msra.mxu1 %v8091_v25  ;;  %7796 = vmatprep.mubr.msk.f32.mxu1 %vm8930_vm1, %v10470_v3 }
0x2ce5   : > { %v1326_v18 = vpop.xlane.xlu1 %1325 }
0x2ce6   : > { %8566 = vrcp.f32 %v1326_v18 }
0x2ce9   : > { %v3277_v48 = vpop.xlane.xlu1 %3276 }
0x2cea   : > { %8568 = vrcp.f32 %v3277_v48 }
0x2ced   : > { %v5395_v0 = vpop.xlane.xlu1 %5394 }
0x2cee   : > { %8570 = vrcp.f32 %v5395_v0 }
0x2cf0   : > { %v8567_v24 = vpop.eup %8566 }
0x2cf1   : > { %v3454_v62 = vpop.xlane.xlu1 %3453  ;;  %v1407_v32 = vmul.f32 %v8567_v24, %v9526_v56 }
0x2cf2   : > { %8572 = vrcp.f32 %v3454_v62 }
0x2cf3   : > { %1409 = vrot.lane.b32.xlu1 %v1407_v32, %s8939_s23 }
0x2cf4   : > { %v8569_v42 = vpop.eup %8568 }
0x2cf5   : > { %v5574_v9 = vpop.xlane.xlu1 %5573  ;;  %v10154_v43 = vmul.f32 %v8569_v42, %v9775_v44 }
0x2cf6   : > { %8574 = vrcp.f32 %v5574_v9 }
0x2cf8   : > { %v8571_v14 = vpop.eup %8570 }
0x2cf9   : > { %v4514_v10 = vpop.xlane.xlu1 %4513  ;;  %v10157_v19 = vmul.f32 %v8571_v14, %v10035_v26 }
0x2cfa   : > { %8576 = vrcp.f32 %v4514_v10  ;;  %v8499_v10 = vunpack.i.l.bf16 %v10134_v8 }
0x2cfc   : > { %v8573_v35 = vpop.eup %8572 }
0x2cfd   : > { %v4691_v13 = vpop.xlane.xlu1 %4690  ;;  %v10160_v56 = vmul.f32 %v8573_v35, %v9793_v63 }
0x2cfe   : > { %8578 = vrcp.f32 %v4691_v13 }
0x2d00   : > { %v8575_v11 = vpop.eup %8574 }
0x2d01   : > { %v4868_v50 = vpop.xlane.xlu1 %4867  ;;  %v10163_v2 = vmul.f32 %v8575_v11, %v10062_v30 }
0x2d02   : > { %8580 = vrcp.f32 %v4868_v50 }
0x2d04   : > { %v8577_v44 = vpop.eup %8576 }
0x2d05   : > { %v5045_v38 = vpop.xlane.xlu1 %5044  ;;  %v10166_v51 = vmul.f32 %v8577_v44, %v9926_v46 }
0x2d06   : > { %8582 = vrcp.f32 %v5045_v38  ;;  %v1144_v38 = vsel %vm970_vm4, %v9504_v39, 0.0  ;;  %v2921_v39 = vsel %vm970_vm4, %v9712_v47, 0.0  ;;  %v4158_v47 = vsel %vm970_vm4, %v9870_v28, 0.0 }
0x2d07   : > { %v5926_v28 = vsel %vm970_vm4, %v10089_v40, 0.0 }
0x2d08   : > { %v8579_v26 = vpop.eup %8578 }
0x2d09   : > { %v2399_v17 = vpop.xlane.xlu1 %2398  ;;  %v10169_v16 = vmul.f32 %v8579_v26, %v9948_v61  ;;  %v1680_v26 = vsel %vm970_vm4, %v9558_v55, 0.0  ;;  %v2036_v55 = vsel %vm970_vm4, %v9598_v20, 0.0  ;;  %v5749_v20 = vsel %vm970_vm4, %v10065_v6, 0.0 }
0x2d0a   : > { %8584 = vrcp.f32 %v2399_v17 }
0x2d0c   : > { %v8581_v63 = vpop.eup %8580 }
0x2d0d   : > { %v5227_v15 = vpop.xlane.xlu1 %5226  ;;  %v10172_v25 = vmul.f32 %v8581_v63, %v9967_v49 }
0x2d0e   : > { %8586 = vrcp.f32 %v5227_v15 }
0x2d10   : > { %v8583_v30 = vpop.eup %8582 }
0x2d11   : > { %v10175_v18 = vmul.f32 %v8583_v30, %v9996_v12 }
0x2d14   : > { %v8585_v48 = vpop.eup %8584 }
0x2d15   : > { %v2474_v46 = vmul.f32 %v8585_v48, %v9658_v58  ;;  %v8500_v58 = vunpack.i.h.bf16 %v10134_v8 }
0x2d17   : > { %2476 = vst.msk [vmem:[#allocation5 + $0x8] sm:$0xff] %vm890_vm2, %v2474_v46 }
0x2d18   : > { %v8587_v0 = vpop.eup %8586 }
0x2d19   : > { %v5302_v61 = vmul.f32 %v8587_v0, %v10011_v59  ;;  %v8087_v59 = vpack.c.bf16 %v8500_v58, %v8499_v10 }
0x2d1b   : > { %5304 = vst.msk [vmem:[#allocation5 + $0x18] sm:$0xff] %vm890_vm2, %v5302_v61 }
0x2d87   : > { %v10181_v24 = vpop.f32.mrb[66].mxu1 }
0x2d88   : > { %v7770_v62 = vpop.f32.mrb[67].mxu1 }
0x2d8f   : > { %v6270_v49 = vpop.f32.mrb[68].mxu1 }
0x2d90   : > { %v7777_v32 = vpop.f32.mrb[69].mxu1  ;;  %v6274_v42 = vsel %vm970_vm4, %v6270_v49, -inf }
0x2d91   : > { %6275 = vmax.xlane.f32.xlu0 %v6274_v42 }
0x2e1e   : > { %v6276_v12 = vpop.xlane.xlu0 %6275 }
0x2e1f   : > { %v6277_v9 = vsub.f32 %v6270_v49, %v6276_v12 }
0x2e21   : > { %v6278_v14 = vmul.f32 1.442695, %v6277_v9 }
0x2e23   : > { %8588 = vpow2.f32 %v6278_v14 }
0x2e2d   : > { %v8589_v35 = vpop.eup %8588 }
0x2e2e   : > { %7783 = vmatmul.mubr.msk.f32.vlgmr.msra.gmra.mrb[72].mxu0 %vm970_vm4, %v8589_v35  ;;  %v6280_v17 = vsel %vm970_vm4, %v8589_v35, 0.0 }
0x2e2f   : > { %8089 = vmatpush3.bf16.xpose.msk.msra.mxu0 %vm9359_vm3, %v8087_v59  ;;  %7789 = vmatprep.mubr.msk.f32.mxu0 %vm8930_vm1, %v10470_v3  ;;  %v1502_v3 = vsel %vm970_vm4, %v9534_v29, 0.0  ;;  %v3098_v29 = vsel %vm970_vm4, %v9736_v5, 0.0  ;;  %v4335_v5 = vsel %vm970_vm4, %v9892_v7, 0.0  ;;  %v977_v7 = vsel %vm970_vm4, %v9448_v52, 0.0 }
0x2e36   : > { %7790 = vmatmul.mubr.msk.f32.vlgmr.msra.gmra.mrb[74].mxu0 %vm890_vm2, %v10137_v4  ;;  %v2744_v4 = vsel %vm970_vm4, %v9696_v23, 0.0  ;;  %v3979_v23 = vsel %vm970_vm4, %v9848_v22, 0.0  ;;  %v3629_v22 = vsel %vm970_vm4, %v9796_v1, 0.0  ;;  %v3811_v1 = vsel %vm970_vm4, %v9826_v27, 0.0 }
0x2f01   : > { %v10193_v13 = vpop.f32.mrb[72].mxu0 }
0x2f02   : > { %v7784_v11 = vpop.f32.mrb[73].mxu0 }
0x2f09   : > { %v6447_v50 = vpop.f32.mrb[74].mxu0 }
0x2f0a   : > { %v7791_v44 = vpop.f32.mrb[75].mxu0  ;;  %v6451_v8 = vsel %vm970_vm4, %v6447_v50, -inf }
0x2f0b   : > { %6452 = vmax.xlane.f32.xlu0 %v6451_v8 }
0x2f0f   : > { %1145 = vadd.xlane.f32.xlu0 %v1144_v38 }
0x2f13   : > { %2566 = vadd.xlane.f32.xlu0 %v2565_v53 }
0x2f17   : > { %1503 = vadd.xlane.f32.xlu0 %v1502_v3 }
0x2f1b   : > { %2745 = vadd.xlane.f32.xlu0 %v2744_v4 }
0x2f1f   : > { %1681 = vadd.xlane.f32.xlu0 %v1680_v26 }
0x2f23   : > { %2922 = vadd.xlane.f32.xlu0 %v2921_v39 }
0x2f27   : > { %1859 = vadd.xlane.f32.xlu0 %v1858_v37 }
0x2f2b   : > { %3099 = vadd.xlane.f32.xlu0 %v3098_v29  ;;  %v10476_v29 = vld [vmem:[#allocation32_spill] sm:$0xff] }
0x2f2f   : > { %3980 = vadd.xlane.f32.xlu0 %v3979_v23 }
0x2f33   : > { %2037 = vadd.xlane.f32.xlu0 %v2036_v55  ;;  %v6550_v55 = vld [vmem:[#allocation17] sm:$0xff] }
0x2f37   : > { %4159 = vadd.xlane.f32.xlu0 %v4158_v47  ;;  %v6551_v47 = vld [vmem:[#allocation17 + $0x8] sm:$0xff] }
0x2f3b   : > { %2215 = vadd.xlane.f32.xlu0 %v2214_v36 }
0x2f3f   : > { %4336 = vadd.xlane.f32.xlu0 %v4335_v5  ;;  %v8093_v5 = vpack.c.bf16 %v6551_v47, %v6550_v55 }
0x2f41   : > { %8094 = vmatprep.subr.bf16.mxu1 %v8093_v5 }
0x2f43   : > { %3630 = vadd.xlane.f32.xlu0 %v3629_v22 }
0x2f47   : > { %5750 = vadd.xlane.f32.xlu0 %v5749_v20  ;;  %v10477_v20 = vld [vmem:[#allocation38_spill] sm:$0xff] }
0x2f4b   : > { %5927 = vadd.xlane.f32.xlu0 %v5926_v28 }
0x2f4f   : > { %6104 = vadd.xlane.f32.xlu0 %v6103_v34  ;;  %v6552_v34 = vld [vmem:[#allocation17 + $0x10] sm:$0xff] }
0x2f53   : > { %6281 = vadd.xlane.f32.xlu0 %v6280_v17  ;;  %v6553_v17 = vld [vmem:[#allocation17 + $0x18] sm:$0xff] }
0x2f57   : > { %978 = vadd.xlane.f32.xlu0 %v977_v7  ;;  %v8097_v7 = vpack.c.bf16 %v6553_v17, %v6552_v34 }
0x2f5b   : > { %3812 = vadd.xlane.f32.xlu0 %v3811_v1 }
0x2f98   : > { %v6453_v6 = vpop.xlane.xlu0 %6452 }
0x2f99   : > { %v6454_v63 = vsub.f32 %v6447_v50, %v6453_v6  ;;  %v10478_v6 = vld [vmem:[#allocation33_spill] sm:$0xff] }
0x2f9b   : > { %v6455_v15 = vmul.f32 1.442695, %v6454_v63 }
0x2f9c   : > { %v1146_v40 = vpop.xlane.xlu0 %1145 }
0x2f9d   : > { %8590 = vpow2.f32 %v6455_v15  ;;  %v6554_v15 = vld [vmem:[#allocation17 + $0x20] sm:$0xff] }
0x2f9e   : > { %8592 = vrcp.f32 %v1146_v40 }
0x2fa0   : > { %v2567_v30 = vpop.xlane.xlu0 %2566 }
0x2fa4   : > { %v1504_v45 = vpop.xlane.xlu0 %1503 }
0x2fa7   : > { %v8591_v48 = vpop.eup %8590 }
0x2fa8   : > { %v8593_v46 = vpop.eup %8592  ;;  %7797 = vmatmul.mubr.msk.f32.vlgmr.msra.gmra.mrb[70].mxu1 %vm970_vm4, %v8591_v48  ;;  %v2746_v0 = vpop.xlane.xlu0 %2745  ;;  %v6457_v52 = vsel %vm970_vm4, %v8591_v48, 0.0  ;;  %v10479_v48 = vld [vmem:[#allocation39_spill] sm:$0xff] }
0x2fa9   : > { %8594 = vrcp.f32 %v2746_v0  ;;  %6458 = vadd.xlane.f32.xlu1 %v6457_v52  ;;  %v1229_v27 = vmul.f32 %v8593_v46, %v9524_v54  ;;  %8096 = vmatpush3.bf16.msra.mxu1 %v8093_v5  ;;  %v6556_v0 = vld [vmem:[#allocation17 + $0x30] sm:$0xff] }
0x2faa   : > { %8596 = vrcp.f32 %v2567_v30  ;;  %8098 = vmatprep.subr.bf16.mxu1 %v8097_v7 }
0x2fab   : > { %1231 = vrot.lane.b32.xlu0 %v1229_v27, %s8940_s1  ;;  %8598 = vrcp.f32 %v1504_v45 }
0x2fac   : > { %v1682_v61 = vpop.xlane.xlu0 %1681 }
0x2fad   : > { %8100 = vmatpush3.bf16.msra.mxu1 %v8097_v7 }
0x2fb0   : > { %v2923_v62 = vpop.xlane.xlu0 %2922 }
0x2fb1   : > { %8600 = vrcp.f32 %v2923_v62  ;;  %v10480_v62 = vld [vmem:[#allocation35_spill] sm:$0xff] }
0x2fb2   : > { %8602 = vrcp.f32 %v1682_v61 }
0x2fb3   : > { %v8595_v49 = vpop.eup %8594 }
0x2fb4   : > { %v1860_v32 = vpop.xlane.xlu0 %1859  ;;  %v2827_v42 = vmul.f32 %v8595_v49, %v9709_v31  ;;  %v8597_v12 = vpop.eup %8596 }
0x2fb5   : > { %8604 = vrcp.f32 %v1860_v32  ;;  %v2650_v54 = vmul.f32 %v8597_v12, %v9682_v41  ;;  %v8599_v14 = vpop.eup %8598 }
0x2fb6   : > { %2829 = vrot.lane.b32.xlu0 %v2827_v42, %s8939_s23  ;;  %v1585_v35 = vmul.f32 %v8599_v14, %v9546_v33  ;;  %v10473_v33 = vld [vmem:[#allocation31_spill] sm:$0xff]  ;;  %v10481_v42 = vld [vmem:[#allocation40_spill] sm:$0xff] }
0x2fb8   : > { %v3100_v9 = vpop.xlane.xlu0 %3099 }
0x2fb9   : > { %8606 = vrcp.f32 %v3100_v9 }
0x2fba   : > { %2652 = vrot.lane.b32.xlu1 %v2650_v54, %s8940_s1 }
0x2fbb   : > { %v8601_v58 = vpop.eup %8600 }
0x2fbc   : > { %v3981_v10 = vpop.xlane.xlu0 %3980  ;;  %v3004_v59 = vmul.f32 %v8601_v58, %v9724_v57  ;;  %v8603_v11 = vpop.eup %8602  ;;  %v10474_v57 = vld [vmem:[#allocation34_spill] sm:$0xff] }
0x2fbd   : > { %8608 = vrcp.f32 %v3981_v10  ;;  %v1763_v41 = vmul.f32 %v8603_v11, %v9570_v60  ;;  %v10475_v60 = vld [vmem:[#allocation37_spill] sm:$0xff] }
0x2fbe   : > { %1587 = vrot.lane.b32.xlu1 %v1585_v35, %s8941_s22  ;;  %3006 = vrot.lane.b32.xlu0 %v3004_v59, %s8941_s22  ;;  %v10482_v59 = vld [vmem:[#allocation30_spill] sm:$0xff] }
0x2fbf   : > { %v8605_v50 = vpop.eup %8604 }
0x2fc0   : > { %v2038_v31 = vpop.xlane.xlu0 %2037  ;;  %v1941_v38 = vmul.f32 %v8605_v50, %v10473_v33 }
0x2fc1   : > { %8610 = vrcp.f32 %v2038_v31  ;;  %v10483_v31 = vld [vmem:[#allocation36_spill] sm:$0xff] }
0x2fc2   : > { %1765 = vrot.lane.b32.xlu1 %v1763_v41, %s8942_s7 }
0x2fc3   : > { %v8607_v44 = vpop.eup %8606 }
0x2fc4   : > { %v4160_v8 = vpop.xlane.xlu0 %4159  ;;  %v3181_v53 = vmul.f32 %v8607_v44, %v10474_v57 }
0x2fc5   : > { %8612 = vrcp.f32 %v4160_v8 }
0x2fc6   : > { %1943 = vrot.lane.b32.xlu1 %v1941_v38, %s8943_s26  ;;  %3183 = vrot.lane.b32.xlu0 %v3181_v53, %s8942_s7 }
0x2fc7   : > { %v8609_v3 = vpop.eup %8608 }
0x2fc8   : > { %v2216_v4 = vpop.xlane.xlu0 %2215  ;;  %v4064_v26 = vmul.f32 %v8609_v3, %v10475_v60 }
0x2fc9   : > { %8614 = vrcp.f32 %v2216_v4 }
0x2fca   : > { %4066 = vrot.lane.b32.xlu1 %v4064_v26, %s8940_s1 }
0x2fcb   : > { %v8611_v39 = vpop.eup %8610 }
0x2fcc   : > { %v4337_v37 = vpop.xlane.xlu0 %4336  ;;  %v2119_v23 = vmul.f32 %v8611_v39, %v10476_v29 }
0x2fcd   : > { %8616 = vrcp.f32 %v4337_v37 }
0x2fce   : > { %3360 = vrot.lane.b32.xlu1 %v10154_v43, %s8943_s26  ;;  %2121 = vrot.lane.b32.xlu0 %v2119_v23, %s8944_s21 }
0x2fcf   : > { %v8613_v36 = vpop.eup %8612 }
0x2fd0   : > { %v3631_v22 = vpop.xlane.xlu0 %3630  ;;  %v4241_v28 = vmul.f32 %v8613_v36, %v10477_v20 }
0x2fd1   : > { %8618 = vrcp.f32 %v3631_v22 }
0x2fd2   : > { %5480 = vrot.lane.b32.xlu1 %v10157_v19, %s8940_s1  ;;  %4243 = vrot.lane.b32.xlu0 %v4241_v28, %s8939_s23  ;;  %v6555_v19 = vld [vmem:[#allocation17 + $0x28] sm:$0xff] }
0x2fd3   : > { %v8615_v43 = vpop.eup %8614  ;;  %v8101_v30 = vpack.c.bf16 %v6555_v19, %v6554_v15 }
0x2fd4   : > { %v5751_v1 = vpop.xlane.xlu0 %5750  ;;  %v2297_v63 = vmul.f32 %v8615_v43, %v10478_v6 }
0x2fd5   : > { %8620 = vrcp.f32 %v5751_v1  ;;  %8102 = vmatprep.subr.bf16.mxu1 %v8101_v30 }
0x2fd6   : > { %3537 = vrot.lane.b32.xlu1 %v10160_v56, %s8944_s21  ;;  %2299 = vrot.lane.b32.xlu0 %v2297_v63, %s8945_s14  ;;  %v6557_v56 = vld [vmem:[#allocation17 + $0x38] sm:$0xff] }
0x2fd7   : > { %v8617_v40 = vpop.eup %8616  ;;  %8104 = vmatpush3.bf16.msra.mxu1 %v8101_v30  ;;  %v8105_v27 = vpack.c.bf16 %v6557_v56, %v6556_v0 }
0x2fd8   : > { %v5928_v45 = vpop.xlane.xlu0 %5927  ;;  %v4418_v46 = vmul.f32 %v8617_v40, %v10479_v48  ;;  %v7009_v48 = vld [vmem:[%s10484_s15] ss:$0 sm:$0xff] }
0x2fd9   : > { %8622 = vrcp.f32 %v5928_v45  ;;  %8106 = vmatprep.subr.bf16.mxu1 %v8105_v27 }
0x2fda   : > { %5657 = vrot.lane.b32.xlu1 %v10163_v2, %s8939_s23  ;;  %4420 = vrot.lane.b32.xlu0 %v4418_v46, %s8941_s22 }
0x2fdb   : > { %v8619_v52 = vpop.eup %8618  ;;  %8108 = vmatpush3.bf16.msra.mxu1 %v8105_v27 }
0x2fdc   : > { %v6105_v61 = vpop.xlane.xlu0 %6104  ;;  %v3712_v49 = vmul.f32 %v8619_v52, %v10480_v62 }
0x2fdd   : > { %8624 = vrcp.f32 %v6105_v61 }
0x2fde   : > { %4597 = vrot.lane.b32.xlu1 %v10166_v51, %s8942_s7  ;;  %3714 = vrot.lane.b32.xlu0 %v3712_v49, %s8945_s14 }
0x2fdf   : > { %v8621_v32 = vpop.eup %8620 }
0x2fe0   : > { %v6282_v2 = vpop.xlane.xlu0 %6281  ;;  %v5832_v12 = vmul.f32 %v8621_v32, %v10481_v42 }
0x2fe1   : > { %8626 = vrcp.f32 %v6282_v2 }
0x2fe2   : > { %4774 = vrot.lane.b32.xlu1 %v10169_v16, %s8943_s26  ;;  %5834 = vrot.lane.b32.xlu0 %v5832_v12, %s8941_s22 }
0x2fe3   : > { %v8623_v9 = vpop.eup %8622 }
0x2fe4   : > { %v979_v54 = vpop.xlane.xlu0 %978  ;;  %v6009_v14 = vmul.f32 %v8623_v9, %v10101_v21 }
0x2fe5   : > { %8628 = vrcp.f32 %v979_v54 }
0x2fe6   : > { %4951 = vrot.lane.b32.xlu1 %v10172_v25, %s8944_s21  ;;  %6011 = vrot.lane.b32.xlu0 %v6009_v14, %s8942_s7 }
0x2fe7   : > { %v8625_v51 = vpop.eup %8624 }
0x2fe8   : > { %v3813_v58 = vpop.xlane.xlu0 %3812  ;;  %v6186_v10 = vmul.f32 %v8625_v51, %v10181_v24  ;;  %v1410_v24 = vpop.permute.xlu1 %1409 }
0x2fe9   : > { %8630 = vrcp.f32 %v3813_v58 }
0x2fea   : > { %5128 = vrot.lane.b32.xlu1 %v10175_v18, %s8945_s14  ;;  %6188 = vrot.lane.b32.xlu0 %v6186_v10, %s8943_s26 }
0x2feb   : > { %v8627_v16 = vpop.eup %8626 }
0x2fec   : > { %v6363_v35 = vmul.f32 %v8627_v16, %v10193_v13 }
0x2fee   : > { %6365 = vrot.lane.b32.xlu0 %v6363_v35, %s8944_s21 }
0x2fef   : > { %v8629_v21 = vpop.eup %8628 }
0x2ff0   : > { %v1054_v25 = vmul.f32 %v8629_v21, %v10482_v59 }
0x2ff2   : > { %1055 = vst.msk [vmem:[#allocation5] sm:$0xff] %vm890_vm2, %v1054_v25 }
0x2ff3   : > { %v8631_v11 = vpop.eup %8630 }
0x2ff4   : > { %v3888_v41 = vmul.f32 %v8631_v11, %v10483_v31 }
0x2ff6   : > { %3890 = vst.msk [vmem:[#allocation5 + $0x10] sm:$0xff] %vm890_vm2, %v3888_v41 }
0x301d   : > { %v1232_v18 = vpop.permute.xlu0 %1231 }
0x301e   : > { %1235 = vst.msk [vmem:[#allocation5] sm:$0xff] %vm1234_vm5, %v1232_v18 }
0x301f   : > { %1413 = vst.msk [vmem:[#allocation5] sm:$0xff] %vm1412_vm6, %v1410_v24 }
0x3028   : > { %v2830_v13 = vpop.permute.xlu0 %2829 }
0x3030   : > { %v3007_v44 = vpop.permute.xlu0 %3006 }
0x3036   : > { %v6459_v50 = vpop.xlane.xlu1 %6458 }
0x3037   : > { %8632 = vrcp.f32 %v6459_v50 }
0x3038   : > { %v3184_v33 = vpop.permute.xlu0 %3183 }
0x303a   : > { %v2653_v8 = vpop.permute.xlu1 %2652 }
0x303b   : > { %2655 = vst.msk [vmem:[#allocation5 + $0x8] sm:$0xff] %vm1234_vm5, %v2653_v8 }
0x303c   : > { %2832 = vst.msk [vmem:[#allocation5 + $0x8] sm:$0xff] %vm1412_vm6, %v2830_v13 }
0x303d   : > { %3009 = vst.msk [vmem:[#allocation5 + $0x8] sm:$0xff] %vm1590_vm7, %v3007_v44 }
0x303e   : > { %v1588_v38 = vpop.permute.xlu1 %1587  ;;  %3186 = vst.msk [vmem:[#allocation5 + $0x8] sm:$0xff] %vm1768_vm8, %v3184_v33 }
0x303f   : > { %1591 = vst.msk [vmem:[#allocation5] sm:$0xff] %vm1590_vm7, %v1588_v38 }
0x3040   : > { %v2122_v57 = vpop.permute.xlu0 %2121 }
0x3041   : > { %v8633_v63 = vpop.eup %8632 }
0x3042   : > { %v1766_v53 = vpop.permute.xlu1 %1765 }
0x3043   : > { %1769 = vst.msk [vmem:[#allocation5] sm:$0xff] %vm1768_vm8, %v1766_v53 }
0x3044   : > { %v4244_v3 = vpop.permute.xlu0 %4243 }
0x3046   : > { %v1944_v4 = vpop.permute.xlu1 %1943 }
0x3047   : > { %1947 = vst.msk [vmem:[#allocation5] sm:$0xff] %vm1946_vm9, %v1944_v4 }
0x3048   : > { %2125 = vst.msk [vmem:[#allocation5] sm:$0xff] %vm2124_vm10, %v2122_v57  ;;  %v2300_v60 = vpop.permute.xlu0 %2299 }
0x3049   : > { %2303 = vst.msk [vmem:[#allocation5] sm:$0xff] %vm2302_vm11, %v2300_v60 }
0x304a   : > { %v4067_v26 = vpop.permute.xlu1 %4066 }
0x304b   : > { %4069 = vst.msk [vmem:[#allocation5 + $0x10] sm:$0xff] %vm1234_vm5, %v4067_v26 }
0x304c   : > { %4246 = vst.msk [vmem:[#allocation5 + $0x10] sm:$0xff] %vm1412_vm6, %v4244_v3  ;;  %v4421_v39 = vpop.permute.xlu0 %4420 }
0x304d   : > { %4423 = vst.msk [vmem:[#allocation5 + $0x10] sm:$0xff] %vm1590_vm7, %v4421_v39 }
0x304e   : > { %v3361_v37 = vpop.permute.xlu1 %3360 }
0x304f   : > { %3363 = vst.msk [vmem:[#allocation5 + $0x8] sm:$0xff] %vm1946_vm9, %v3361_v37 }
0x3050   : > { %v3715_v29 = vpop.permute.xlu0 %3714  ;;  %v6546_v23 = vld [vmem:[#allocation5] sm:$0xff] }
0x3051   : > { %7815 = vmatprep.mubr.msk.f32.mxu1 %vm477_vm0, %v6546_v23 }
0x3052   : > { %v5481_v55 = vpop.permute.xlu1 %5480 }
0x3053   : > { %5483 = vst.msk [vmem:[#allocation5 + $0x18] sm:$0xff] %vm1234_vm5, %v5481_v55 }
0x3054   : > { %v5835_v47 = vpop.permute.xlu0 %5834 }
0x3056   : > { %v3538_v36 = vpop.permute.xlu1 %3537 }
0x3057   : > { %3540 = vst.msk [vmem:[#allocation5 + $0x8] sm:$0xff] %vm2124_vm10, %v3538_v36 }
0x3058   : > { %3717 = vst.msk [vmem:[#allocation5 + $0x8] sm:$0xff] %vm2302_vm11, %v3715_v29  ;;  %v6012_v5 = vpop.permute.xlu0 %6011 }
0x305a   : > { %v5658_v22 = vpop.permute.xlu1 %5657 }
0x305b   : > { %5660 = vst.msk [vmem:[#allocation5 + $0x18] sm:$0xff] %vm1412_vm6, %v5658_v22 }
0x305c   : > { %5837 = vst.msk [vmem:[#allocation5 + $0x18] sm:$0xff] %vm1590_vm7, %v5835_v47  ;;  %v6189_v20 = vpop.permute.xlu0 %6188 }
0x305d   : > { %6014 = vst.msk [vmem:[#allocation5 + $0x18] sm:$0xff] %vm1768_vm8, %v6012_v5 }
0x305e   : > { %6191 = vst.msk [vmem:[#allocation5 + $0x18] sm:$0xff] %vm1946_vm9, %v6189_v20  ;;  %v4598_v28 = vpop.permute.xlu1 %4597 }
0x305f   : > { %4600 = vst.msk [vmem:[#allocation5 + $0x10] sm:$0xff] %vm1768_vm8, %v4598_v28  ;;  %v6547_v34 = vld [vmem:[#allocation5 + $0x8] sm:$0xff] }
0x3060   : > { %7816 = vmatmul.mubr.msk.f32.vlgmr.msra.gmra.mrb[72].mxu1 %vm477_vm0, %v6547_v34  ;;  %v6366_v17 = vpop.permute.xlu0 %6365 }
0x3061   : > { %6368 = vst.msk [vmem:[#allocation5 + $0x18] sm:$0xff] %vm2124_vm10, %v6366_v17 }
0x3062   : > { %v4775_v43 = vpop.permute.xlu1 %4774 }
0x3063   : > { %4777 = vst.msk [vmem:[#allocation5 + $0x10] sm:$0xff] %vm1946_vm9, %v4775_v43 }
0x3066   : > { %v4952_v7 = vpop.permute.xlu1 %4951 }
0x3067   : > { %4954 = vst.msk [vmem:[#allocation5 + $0x10] sm:$0xff] %vm2124_vm10, %v4952_v7 }
0x306a   : > { %v5129_v1 = vpop.permute.xlu1 %5128 }
0x306b   : > { %5131 = vst.msk [vmem:[#allocation5 + $0x10] sm:$0xff] %vm2302_vm11, %v5129_v1 }
0x3072   : > { %v6548_v6 = vld [vmem:[#allocation5 + $0x10] sm:$0xff] }
0x3073   : > { %7818 = vmatprep.mubr.msk.f32.mxu1 %vm477_vm0, %v6548_v6 }
0x307b   : > { %v6535_v15 = vpop.f32.mrb[70].mxu1 }
0x307c   : > { %v6540_v19 = vmul.f32 %v8633_v63, %v6535_v15  ;;  %v7798_v40 = vpop.f32.mrb[71].mxu1 }
0x307e   : > { %6542 = vrot.lane.b32.xlu1 %v6540_v19, %s8945_s14 }
0x30f0   : > { %v6543_v30 = vpop.permute.xlu1 %6542 }
0x30f1   : > { %6545 = vst.msk [vmem:[#allocation5 + $0x18] sm:$0xff] %vm2302_vm11, %v6543_v30 }
0x30f8   : > { %v6549_v45 = vld [vmem:[#allocation5 + $0x18] sm:$0xff] }
0x30f9   : > { %7819 = vmatmul.mubr.msk.f32.gmra.mrb[74].mxu1 %vm477_vm0, %v6549_v45 }
0x3133   : > { %v7817_v46 = vpop.f32.mrb[72].mxu1 }
0x3134   : > { %v6649_v0 = vadd.f32 %v7817_v46, %v7009_v48  ;;  %v6643_v56 = vpop.f32.mrb[73].mxu1 }
0x3135   : > { %v6644_v52 = vadd.f32 %v7009_v48, %v6643_v56 }
0x3136   : > { %6663 = vst.msk [vmem:[%s460_s29 + $0x8] sm:$0xff] %vm477_vm0, %v6649_v0 }
0x3137   : > { %6662 = vst.msk [vmem:[%s460_s29] sm:$0xff] %vm477_vm0, %v6644_v52 }
0x31cc   : > { %v7820_v27 = vpop.f32.mrb[74].mxu1 }
0x31cd   : > { %v6659_v61 = vadd.f32 %v7820_v27, %v7009_v48  ;;  %v6653_v62 = vpop.f32.mrb[75].mxu1 }
0x31ce   : > { %v6654_v49 = vadd.f32 %v7009_v48, %v6653_v62 }
0x31cf   : > { %6665 = vst.msk [vmem:[%s460_s29 + $0x18] sm:$0xff] %vm477_vm0, %v6659_v61 }
0x31d0   : > { %6664 = vst.msk [vmem:[%s460_s29 + $0x10] sm:$0xff] %vm477_vm0, %v6654_v49 }
0x31d1   : > { %8853 = shalt.err (!%p8850_p12)
}
0x31d2   : > { %s8854_s3 = scalar_lea.hbm %s10339_s8, 512  ;;  %s8858_s7 = scalar_lea.hbm %s10486_s12, 1024 }
0x31d3   : > { %p8855_p8 = scmp.ne.s32.totalorder %s10339_s8, %s8854_s3  ;;  %p8859_p1 = scmp.lt.u32.totalorder %s10339_s8, %s10486_s12 }
0x31d4   : > { %p8860_p6 = scmp.lt.u32.totalorder %s8858_s7, %s8854_s3  ;;  %p8862_p5 = scmp.lt.u32.totalorder %s8854_s3, %s10339_s8 }
0x31d5   : > { %p8856_p10 = pnand %p8855_p8, %p10487_p2 }
0x31d6   : > { %p8861_p3 = por %p8860_p6, %p8859_p1 }
0x31d7   : > { %p8857_p4 = pneg %p8856_p10 }
0x31d8   : > { %p8863_p0 = por %p8862_p5, %p8861_p3 }
0x31da   : > { %p8864_p11 = pnand %p8863_p0, %p8857_p4 }
0x31dc   : > { %8867 = shalt.err (!%p8864_p11)
}
0x31dd   : > { %s8947_s14 = smov 128  }
0x31de   : > { %8131 = dma.vmem_to_hbm [thread:$0]  (%p10487_p2), %s10334_s25, 512, %s10339_s8, %s6667_s24, %s8947_s14, %s8947_s14, %s8940_s1  }
0x31df PF: > { %s10488_s17 = sld [smem:[#allocation24_spill]]  ;;  %s10489_s5 = sld [smem:[#allocation26_spill]] }
0x31e0   : > { %p10491_p7 = scmp.ge.s32.totalorder %s8918_s30, 2 }
0x31e5   : > { %s6695_s15 = sand.u32 1, %s10488_s17   ;;  %p10490_p13 = scmp.ne.s32.totalorder %s10489_s5, 0 }
0x31e6   : > { %s6696_s29 = scalar_lea.sflag [#allocation8], %s6695_s15 }
0x31e7   : > { %p8157_p9 = pnand %p10491_p7, %p10490_p13 }
0x31e9   : > { %8901 = dma.done.wait (!%p8157_p9), %s6696_s29, 512  }
0x31ea   : > { %8903 = vsyncadd (!%p8157_p9), %s6696_s29, 4294966784  ;;  %s10492_s30 = sld [smem:[#allocation27_spill]]  ;;  %s10493_s13 = sld [smem:[#allocation25_spill]] }
0x31eb   : > { %s10494_s29 = sld [smem:[#allocation29_spill]]  ;;  %s10495_s27 = smov %s8910_s28 }
0x31f0   : > { %p26_p12 = scmp.ge.s32.totalorder %s10492_s30, 4   ;;  %s10496_s28 = smov %s10493_s13 }
0x31f2   :  { %28 = sbr.rel (!%p26_p12) target bundleno = 15 (0xf), region = 149 }
0x31f9   :  { %6701 = vsyncpa [#allocation7], 1 }
0x31fa   :  { %6703 = vsyncpa [#allocation7 + $0x1], 1 }
0x31fb   :  { %6704 = vsyncpa [#allocation10], 1 }
0x31fc   :  { %6706 = vsyncpa [#allocation10 + $0x1], 1 }
0x31fd   :  { %6707 = vsyncpa [#allocation13], 1 }
0x31fe   :  { %6708 = vsyncpa [#allocation16], 1 }
0x31ff   :  { %6709 = vsyncpa [#allocation8], 1 }
0x3200   :  { %6711 = vsyncpa [#allocation8 + $0x1], 1 }

</bundles_post_ra>
